<compile_context>
chip_gen: v6e
topology: v6e:2x2x1
jax: 0.10.0
libtpu: 0.0.40
codegen_flags: <defaults>
</compile_context>

<pallas_src>
import jax
import jax.numpy as jnp
from jax.experimental import pallas as pl
from jax.experimental.pallas import tpu as pltpu

HIDDEN = 32
NUM_CLASS = 2


def _round_up(n, m):
    return ((n + m - 1) // m) * m


def classifier_cl_kernel(x_ref, w_aug_ref, fc_w_ref, fc_b_ref, out_ref):
    x = x_ref[...]            # (Bb, T)   f32, batch-major input block
    w_aug = w_aug_ref[...]    # (H+2, 4H) bf16  = [w_hh ; w_ih ; b_ih+b_hh]
    fc_w = fc_w_ref[...]      # (H, C)    f32
    fc_b = fc_b_ref[...]      # (1, C)    f32

    Bb, T = x.shape
    H = w_aug.shape[1] // 4

    ones = jnp.ones((Bb, 1), jnp.float32)          # constant "bias lane", hoisted
    h = jnp.zeros((Bb, H), jnp.float32)
    c = jnp.zeros((Bb, H), jnp.float32)

    # --- Serial LSTM recurrence, statically unrolled (T is a small static constant). ---
    for t in range(T):
        # Augmented LHS folds x_t and the bias into the single recurrent matmul.
        h_aug = jnp.concatenate([h, x[:, t:t + 1], ones], axis=1)          # (Bb, H+2) f32
        gates = jnp.dot(h_aug.astype(jnp.bfloat16), w_aug,
                        preferred_element_type=jnp.float32)                # (Bb, 4H)  f32
        # Full-vreg activations on the packed gates (PyTorch gate order: i, f, g, o).
        # sigmoid via tanh: 2 EUP transcendentals per step, no divide on the critical path.
        sig = 0.5 * jnp.tanh(0.5 * gates) + 0.5
        th = jnp.tanh(gates)
        i_g = sig[:, 0 * H:1 * H]
        f_g = sig[:, 1 * H:2 * H]
        g_g = th[:, 2 * H:3 * H]
        o_g = sig[:, 3 * H:4 * H]
        c = f_g * c + i_g * g_g
        h = o_g * jnp.tanh(c)

    # --- Tail (runs once per block): dropout = identity, fc, softmax(dim=1). ---
    logits = jnp.dot(h, fc_w, preferred_element_type=jnp.float32) + fc_b   # (Bb, C)
    m = jnp.max(logits, axis=1, keepdims=True)
    e = jnp.exp(logits - m)
    out_ref[...] = e / jnp.sum(e, axis=1, keepdims=True)


def classifier_cl_forward(x, params, block_b=32):
    """x: (B, T) float32 (module input before unsqueeze/permute). Returns (B, C) probs."""
    w_ih, w_hh, b, fc_w, fc_b = params
    B, T = x.shape
    H = w_hh.shape[0]
    C = fc_w.shape[1]

    # Constant stacked recurrent weight (bf16: MXU-native; accumulation stays f32 in-kernel).
    w_aug = jnp.concatenate([w_hh, w_ih, b], axis=0).astype(jnp.bfloat16)   # (H+2, 4H)

    # Batch blocking: sublane-multiple block, pad batch if needed, 1-D parallel grid
    # (engages both TensorCores on v7x; trivial single block for small demos).
    Bb = min(block_b, _round_up(B, 8))
    Bb = _round_up(Bb, 8)
    Bp = _round_up(B, Bb)
    x_p = jnp.asarray(x, jnp.float32)
    if Bp != B:
        x_p = jnp.pad(x_p, ((0, Bp - B), (0, 0)))
    grid = (Bp // Bb,)

    out = pl.pallas_call(
        classifier_cl_kernel,
        out_shape=jax.ShapeDtypeStruct((Bp, C), jnp.float32),
        grid=grid,
        in_specs=[
            pl.BlockSpec((Bb, T), lambda i: (i, 0)),          # x block (batch on sublanes)
            pl.BlockSpec((H + 2, 4 * H), lambda i: (0, 0)),   # W_aug (constant)
            pl.BlockSpec((H, C), lambda i: (0, 0)),           # fc_w  (constant)
            pl.BlockSpec((1, C), lambda i: (0, 0)),           # fc_b  (constant)
        ],
        out_specs=pl.BlockSpec((Bb, C), lambda i: (i, 0)),
        compiler_params=pltpu.CompilerParams(
            dimension_semantics=("parallel",)),
    )(x_p, w_aug, fc_w, fc_b)
    return out[:B]


def init_params(key, hidden=HIDDEN, num_class=NUM_CLASS):
    """Deterministic init matching PyTorch LSTM/Linear shapes (uniform(-1/sqrt(H), 1/sqrt(H)))."""
    k = 1.0 / jnp.sqrt(jnp.float32(hidden))
    keys = jax.random.split(key, 6)
    # PyTorch shapes: weight_ih_l0 (4H, 1), weight_hh_l0 (4H, H), bias_ih/hh (4H,) -> transposed
    w_ih_t = jax.random.uniform(keys[0], (1, 4 * hidden), jnp.float32, -k, k)        # (1, 4H)
    w_hh_t = jax.random.uniform(keys[1], (hidden, 4 * hidden), jnp.float32, -k, k)   # (H, 4H)
    b_ih = jax.random.uniform(keys[2], (1, 4 * hidden), jnp.float32, -k, k)
    b_hh = jax.random.uniform(keys[3], (1, 4 * hidden), jnp.float32, -k, k)
    b = b_ih + b_hh                                                                   # (1, 4H)
    # fc: Linear(hidden, num_class): weight (C, H), bias (C,) -> stored transposed
    fc_w_t = jax.random.uniform(keys[4], (hidden, num_class), jnp.float32, -k, k)     # (H, C)
    fc_b = jax.random.uniform(keys[5], (1, num_class), jnp.float32, -k, k)            # (1, C)
    return (w_ih_t, w_hh_t, b, fc_w_t, fc_b)


def classifier_cl_reference(x, params, hidden=HIDDEN):
    """Pure-JAX f32 reference (same math as the PyTorch module, for correctness check)."""
    w_ih, w_hh, b, fc_w, fc_b = params
    B, T = x.shape
    H = hidden

    def step(carry, x_t):
        h, c = carry
        gates = x_t[:, None] * w_ih + jnp.dot(h, w_hh) + b
        i_g = jax.nn.sigmoid(gates[:, 0 * H:1 * H])
        f_g = jax.nn.sigmoid(gates[:, 1 * H:2 * H])
        g_g = jnp.tanh(gates[:, 2 * H:3 * H])
        o_g = jax.nn.sigmoid(gates[:, 3 * H:4 * H])
        c = f_g * c + i_g * g_g
        h = o_g * jnp.tanh(c)
        return (h, c), None

    (h, _), _ = jax.lax.scan(step, (jnp.zeros((B, H), jnp.float32),
                                    jnp.zeros((B, H), jnp.float32)), x.T)
    logits = jnp.dot(h, fc_w) + fc_b
    return jax.nn.softmax(logits, axis=1)


if __name__ == "__main__":
    key = jax.random.PRNGKey(0)
    k_x, k_p = jax.random.split(key)

    # Small but batch-amortized demo: B=64 split into two parallel (32, T) blocks.
    B, T = 64, 16
    x = jax.random.normal(k_x, (B, T), dtype=jnp.float32)

    params = init_params(k_p)

    out = classifier_cl_forward(x, params, block_b=32)
    out = jax.block_until_ready(out)

    assert out.shape == (B, NUM_CLASS)
    # probabilities should sum to 1 per row (softmax tail uses the exact divide)
    assert jnp.allclose(jnp.sum(out, axis=1), 1.0, atol=1e-5)
    # match the pure-f32 reference; tolerance loosened for the bf16-input recurrence matmul
    ref = classifier_cl_reference(x, params)
    assert jnp.allclose(out, ref, atol=2e-2), float(jnp.max(jnp.abs(out - ref)))
    print("KERNEL_OK")
</pallas_src>

<mosaic_0001>
module attributes {stable_mosaic.version = 11 : i64} {
  func.func @classifier_cl_kernel(%arg0: i32, %arg1: memref<32x16xf32, #tpu.memory_space<vmem>>, %arg2: memref<34x128xbf16, #tpu.memory_space<vmem>>, %arg3: memref<32x2xf32, #tpu.memory_space<vmem>>, %arg4: memref<1x2xf32, #tpu.memory_space<vmem>>, %arg5: memref<32x2xf32, #tpu.memory_space<vmem>>) attributes {dimension_semantics = [#tpu.dimension_semantics<parallel>], iteration_bounds = array<i64: 2>, scalar_prefetch = 0 : i64, scratch_operands = 0 : i64, tpu.core_type = #tpu.core_type<tc>, window_params = [{transform_indices = @transform_0, window_bounds = array<i64: 32, 16>}, {pipeline_mode = #tpu.pipeline_mode<synchronous>, transform_indices = @transform_1, window_bounds = array<i64: 34, 128>}, {pipeline_mode = #tpu.pipeline_mode<synchronous>, transform_indices = @transform_2, window_bounds = array<i64: 32, 2>}, {pipeline_mode = #tpu.pipeline_mode<synchronous>, transform_indices = @transform_3, window_bounds = array<i64: 1, 2>}, {transform_indices = @transform_4, window_bounds = array<i64: 32, 2>}]} {
    %c0 = arith.constant 0 : index
    %c0_0 = arith.constant 0 : index
    %0 = vector.load %arg1[%c0, %c0_0] : memref<32x16xf32, #tpu.memory_space<vmem>>, vector<32x16xf32>
    %c0_1 = arith.constant 0 : index
    %c0_2 = arith.constant 0 : index
    %1 = vector.load %arg2[%c0_1, %c0_2] : memref<34x128xbf16, #tpu.memory_space<vmem>>, vector<34x128xbf16>
    %c0_3 = arith.constant 0 : index
    %c0_4 = arith.constant 0 : index
    %2 = vector.load %arg3[%c0_3, %c0_4] : memref<32x2xf32, #tpu.memory_space<vmem>>, vector<32x2xf32>
    %c0_5 = arith.constant 0 : index
    %c0_6 = arith.constant 0 : index
    %3 = vector.load %arg4[%c0_5, %c0_6] : memref<1x2xf32, #tpu.memory_space<vmem>>, vector<1x2xf32>
    %cst = arith.constant 1.000000e+00 : f32
    %4 = vector.broadcast %cst : f32 to vector<32x1xf32>
    %cst_7 = arith.constant 0.000000e+00 : f32
    %5 = vector.broadcast %cst_7 : f32 to vector<32x32xf32>
    %cst_8 = arith.constant 0.000000e+00 : f32
    %6 = vector.broadcast %cst_8 : f32 to vector<32x32xf32>
    %7 = vector.extract_strided_slice %0 {offsets = [0, 0], sizes = [32, 1], strides = [1, 1]} : vector<32x16xf32> to vector<32x1xf32>
    %8 = tpu.concatenate %5, %7, %4 in 1 : vector<32x32xf32>, vector<32x1xf32>, vector<32x1xf32> -> vector<32x34xf32>
    %9 = arith.truncf %8 : vector<32x34xf32> to vector<32x34xbf16>
    %cst_9 = arith.constant dense<0.000000e+00> : vector<32x128xf32>
    %10 = tpu.matmul %9, %1, %cst_9 {dimension_numbers = #tpu.dot_dimension_numbers<[1], [0], [0], [1], [0, 0, 1, 1], [], []>} : vector<32x34xbf16>, vector<34x128xbf16>, vector<32x128xf32> -> vector<32x128xf32>
    %cst_10 = arith.constant 5.000000e-01 : f32
    %11 = vector.broadcast %cst_10 : f32 to vector<32x128xf32>
    %12 = arith.mulf %11, %10 : vector<32x128xf32>
    %13 = math.tanh %12 : vector<32x128xf32>
    %cst_11 = arith.constant 5.000000e-01 : f32
    %14 = vector.broadcast %cst_11 : f32 to vector<32x128xf32>
    %15 = arith.mulf %14, %13 : vector<32x128xf32>
    %cst_12 = arith.constant 5.000000e-01 : f32
    %16 = vector.broadcast %cst_12 : f32 to vector<32x128xf32>
    %17 = arith.addf %15, %16 : vector<32x128xf32>
    %18 = math.tanh %10 : vector<32x128xf32>
    %19 = vector.extract_strided_slice %17 {offsets = [0, 0], sizes = [32, 32], strides = [1, 1]} : vector<32x128xf32> to vector<32x32xf32>
    %20 = vector.extract_strided_slice %17 {offsets = [0, 32], sizes = [32, 32], strides = [1, 1]} : vector<32x128xf32> to vector<32x32xf32>
    %21 = vector.extract_strided_slice %18 {offsets = [0, 64], sizes = [32, 32], strides = [1, 1]} : vector<32x128xf32> to vector<32x32xf32>
    %22 = vector.extract_strided_slice %17 {offsets = [0, 96], sizes = [32, 32], strides = [1, 1]} : vector<32x128xf32> to vector<32x32xf32>
    %23 = arith.mulf %20, %6 : vector<32x32xf32>
    %24 = arith.mulf %19, %21 : vector<32x32xf32>
    %25 = arith.addf %23, %24 : vector<32x32xf32>
    %26 = math.tanh %25 : vector<32x32xf32>
    %27 = arith.mulf %22, %26 : vector<32x32xf32>
    %28 = vector.extract_strided_slice %0 {offsets = [0, 1], sizes = [32, 1], strides = [1, 1]} : vector<32x16xf32> to vector<32x1xf32>
    %29 = tpu.concatenate %27, %28, %4 in 1 : vector<32x32xf32>, vector<32x1xf32>, vector<32x1xf32> -> vector<32x34xf32>
    %30 = arith.truncf %29 : vector<32x34xf32> to vector<32x34xbf16>
    %cst_13 = arith.constant dense<0.000000e+00> : vector<32x128xf32>
    %31 = tpu.matmul %30, %1, %cst_13 {dimension_numbers = #tpu.dot_dimension_numbers<[1], [0], [0], [1], [0, 0, 1, 1], [], []>} : vector<32x34xbf16>, vector<34x128xbf16>, vector<32x128xf32> -> vector<32x128xf32>
    %cst_14 = arith.constant 5.000000e-01 : f32
    %32 = vector.broadcast %cst_14 : f32 to vector<32x128xf32>
    %33 = arith.mulf %32, %31 : vector<32x128xf32>
    %34 = math.tanh %33 : vector<32x128xf32>
    %cst_15 = arith.constant 5.000000e-01 : f32
    %35 = vector.broadcast %cst_15 : f32 to vector<32x128xf32>
    %36 = arith.mulf %35, %34 : vector<32x128xf32>
    %cst_16 = arith.constant 5.000000e-01 : f32
    %37 = vector.broadcast %cst_16 : f32 to vector<32x128xf32>
    %38 = arith.addf %36, %37 : vector<32x128xf32>
    %39 = math.tanh %31 : vector<32x128xf32>
    %40 = vector.extract_strided_slice %38 {offsets = [0, 0], sizes = [32, 32], strides = [1, 1]} : vector<32x128xf32> to vector<32x32xf32>
    %41 = vector.extract_strided_slice %38 {offsets = [0, 32], sizes = [32, 32], strides = [1, 1]} : vector<32x128xf32> to vector<32x32xf32>
    %42 = vector.extract_strided_slice %39 {offsets = [0, 64], sizes = [32, 32], strides = [1, 1]} : vector<32x128xf32> to vector<32x32xf32>
    %43 = vector.extract_strided_slice %38 {offsets = [0, 96], sizes = [32, 32], strides = [1, 1]} : vector<32x128xf32> to vector<32x32xf32>
    %44 = arith.mulf %41, %25 : vector<32x32xf32>
    %45 = arith.mulf %40, %42 : vector<32x32xf32>
    %46 = arith.addf %44, %45 : vector<32x32xf32>
    %47 = math.tanh %46 : vector<32x32xf32>
    %48 = arith.mulf %43, %47 : vector<32x32xf32>
    %49 = vector.extract_strided_slice %0 {offsets = [0, 2], sizes = [32, 1], strides = [1, 1]} : vector<32x16xf32> to vector<32x1xf32>
    %50 = tpu.concatenate %48, %49, %4 in 1 : vector<32x32xf32>, vector<32x1xf32>, vector<32x1xf32> -> vector<32x34xf32>
    %51 = arith.truncf %50 : vector<32x34xf32> to vector<32x34xbf16>
    %cst_17 = arith.constant dense<0.000000e+00> : vector<32x128xf32>
    %52 = tpu.matmul %51, %1, %cst_17 {dimension_numbers = #tpu.dot_dimension_numbers<[1], [0], [0], [1], [0, 0, 1, 1], [], []>} : vector<32x34xbf16>, vector<34x128xbf16>, vector<32x128xf32> -> vector<32x128xf32>
    %cst_18 = arith.constant 5.000000e-01 : f32
    %53 = vector.broadcast %cst_18 : f32 to vector<32x128xf32>
    %54 = arith.mulf %53, %52 : vector<32x128xf32>
    %55 = math.tanh %54 : vector<32x128xf32>
    %cst_19 = arith.constant 5.000000e-01 : f32
    %56 = vector.broadcast %cst_19 : f32 to vector<32x128xf32>
    %57 = arith.mulf %56, %55 : vector<32x128xf32>
    %cst_20 = arith.constant 5.000000e-01 : f32
    %58 = vector.broadcast %cst_20 : f32 to vector<32x128xf32>
    %59 = arith.addf %57, %58 : vector<32x128xf32>
    %60 = math.tanh %52 : vector<32x128xf32>
    %61 = vector.extract_strided_slice %59 {offsets = [0, 0], sizes = [32, 32], strides = [1, 1]} : vector<32x128xf32> to vector<32x32xf32>
    %62 = vector.extract_strided_slice %59 {offsets = [0, 32], sizes = [32, 32], strides = [1, 1]} : vector<32x128xf32> to vector<32x32xf32>
    %63 = vector.extract_strided_slice %60 {offsets = [0, 64], sizes = [32, 32], strides = [1, 1]} : vector<32x128xf32> to vector<32x32xf32>
    %64 = vector.extract_strided_slice %59 {offsets = [0, 96], sizes = [32, 32], strides = [1, 1]} : vector<32x128xf32> to vector<32x32xf32>
    %65 = arith.mulf %62, %46 : vector<32x32xf32>
    %66 = arith.mulf %61, %63 : vector<32x32xf32>
    %67 = arith.addf %65, %66 : vector<32x32xf32>
    %68 = math.tanh %67 : vector<32x32xf32>
    %69 = arith.mulf %64, %68 : vector<32x32xf32>
    %70 = vector.extract_strided_slice %0 {offsets = [0, 3], sizes = [32, 1], strides = [1, 1]} : vector<32x16xf32> to vector<32x1xf32>
    %71 = tpu.concatenate %69, %70, %4 in 1 : vector<32x32xf32>, vector<32x1xf32>, vector<32x1xf32> -> vector<32x34xf32>
    %72 = arith.truncf %71 : vector<32x34xf32> to vector<32x34xbf16>
    %cst_21 = arith.constant dense<0.000000e+00> : vector<32x128xf32>
    %73 = tpu.matmul %72, %1, %cst_21 {dimension_numbers = #tpu.dot_dimension_numbers<[1], [0], [0], [1], [0, 0, 1, 1], [], []>} : vector<32x34xbf16>, vector<34x128xbf16>, vector<32x128xf32> -> vector<32x128xf32>
    %cst_22 = arith.constant 5.000000e-01 : f32
    %74 = vector.broadcast %cst_22 : f32 to vector<32x128xf32>
    %75 = arith.mulf %74, %73 : vector<32x128xf32>
    %76 = math.tanh %75 : vector<32x128xf32>
    %cst_23 = arith.constant 5.000000e-01 : f32
    %77 = vector.broadcast %cst_23 : f32 to vector<32x128xf32>
    %78 = arith.mulf %77, %76 : vector<32x128xf32>
    %cst_24 = arith.constant 5.000000e-01 : f32
    %79 = vector.broadcast %cst_24 : f32 to vector<32x128xf32>
    %80 = arith.addf %78, %79 : vector<32x128xf32>
    %81 = math.tanh %73 : vector<32x128xf32>
    %82 = vector.extract_strided_slice %80 {offsets = [0, 0], sizes = [32, 32], strides = [1, 1]} : vector<32x128xf32> to vector<32x32xf32>
    %83 = vector.extract_strided_slice %80 {offsets = [0, 32], sizes = [32, 32], strides = [1, 1]} : vector<32x128xf32> to vector<32x32xf32>
    %84 = vector.extract_strided_slice %81 {offsets = [0, 64], sizes = [32, 32], strides = [1, 1]} : vector<32x128xf32> to vector<32x32xf32>
    %85 = vector.extract_strided_slice %80 {offsets = [0, 96], sizes = [32, 32], strides = [1, 1]} : vector<32x128xf32> to vector<32x32xf32>
    %86 = arith.mulf %83, %67 : vector<32x32xf32>
    %87 = arith.mulf %82, %84 : vector<32x32xf32>
    %88 = arith.addf %86, %87 : vector<32x32xf32>
    %89 = math.tanh %88 : vector<32x32xf32>
    %90 = arith.mulf %85, %89 : vector<32x32xf32>
    %91 = vector.extract_strided_slice %0 {offsets = [0, 4], sizes = [32, 1], strides = [1, 1]} : vector<32x16xf32> to vector<32x1xf32>
    %92 = tpu.concatenate %90, %91, %4 in 1 : vector<32x32xf32>, vector<32x1xf32>, vector<32x1xf32> -> vector<32x34xf32>
    %93 = arith.truncf %92 : vector<32x34xf32> to vector<32x34xbf16>
    %cst_25 = arith.constant dense<0.000000e+00> : vector<32x128xf32>
    %94 = tpu.matmul %93, %1, %cst_25 {dimension_numbers = #tpu.dot_dimension_numbers<[1], [0], [0], [1], [0, 0, 1, 1], [], []>} : vector<32x34xbf16>, vector<34x128xbf16>, vector<32x128xf32> -> vector<32x128xf32>
    %cst_26 = arith.constant 5.000000e-01 : f32
    %95 = vector.broadcast %cst_26 : f32 to vector<32x128xf32>
    %96 = arith.mulf %95, %94 : vector<32x128xf32>
    %97 = math.tanh %96 : vector<32x128xf32>
    %cst_27 = arith.constant 5.000000e-01 : f32
    %98 = vector.broadcast %cst_27 : f32 to vector<32x128xf32>
    %99 = arith.mulf %98, %97 : vector<32x128xf32>
    %cst_28 = arith.constant 5.000000e-01 : f32
    %100 = vector.broadcast %cst_28 : f32 to vector<32x128xf32>
    %101 = arith.addf %99, %100 : vector<32x128xf32>
    %102 = math.tanh %94 : vector<32x128xf32>
    %103 = vector.extract_strided_slice %101 {offsets = [0, 0], sizes = [32, 32], strides = [1, 1]} : vector<32x128xf32> to vector<32x32xf32>
    %104 = vector.extract_strided_slice %101 {offsets = [0, 32], sizes = [32, 32], strides = [1, 1]} : vector<32x128xf32> to vector<32x32xf32>
    %105 = vector.extract_strided_slice %102 {offsets = [0, 64], sizes = [32, 32], strides = [1, 1]} : vector<32x128xf32> to vector<32x32xf32>
    %106 = vector.extract_strided_slice %101 {offsets = [0, 96], sizes = [32, 32], strides = [1, 1]} : vector<32x128xf32> to vector<32x32xf32>
    %107 = arith.mulf %104, %88 : vector<32x32xf32>
    %108 = arith.mulf %103, %105 : vector<32x32xf32>
    %109 = arith.addf %107, %108 : vector<32x32xf32>
    %110 = math.tanh %109 : vector<32x32xf32>
    %111 = arith.mulf %106, %110 : vector<32x32xf32>
    %112 = vector.extract_strided_slice %0 {offsets = [0, 5], sizes = [32, 1], strides = [1, 1]} : vector<32x16xf32> to vector<32x1xf32>
    %113 = tpu.concatenate %111, %112, %4 in 1 : vector<32x32xf32>, vector<32x1xf32>, vector<32x1xf32> -> vector<32x34xf32>
    %114 = arith.truncf %113 : vector<32x34xf32> to vector<32x34xbf16>
    %cst_29 = arith.constant dense<0.000000e+00> : vector<32x128xf32>
    %115 = tpu.matmul %114, %1, %cst_29 {dimension_numbers = #tpu.dot_dimension_numbers<[1], [0], [0], [1], [0, 0, 1, 1], [], []>} : vector<32x34xbf16>, vector<34x128xbf16>, vector<32x128xf32> -> vector<32x128xf32>
    %cst_30 = arith.constant 5.000000e-01 : f32
    %116 = vector.broadcast %cst_30 : f32 to vector<32x128xf32>
    %117 = arith.mulf %116, %115 : vector<32x128xf32>
    %118 = math.tanh %117 : vector<32x128xf32>
    %cst_31 = arith.constant 5.000000e-01 : f32
    %119 = vector.broadcast %cst_31 : f32 to vector<32x128xf32>
    %120 = arith.mulf %119, %118 : vector<32x128xf32>
    %cst_32 = arith.constant 5.000000e-01 : f32
    %121 = vector.broadcast %cst_32 : f32 to vector<32x128xf32>
    %122 = arith.addf %120, %121 : vector<32x128xf32>
    %123 = math.tanh %115 : vector<32x128xf32>
    %124 = vector.extract_strided_slice %122 {offsets = [0, 0], sizes = [32, 32], strides = [1, 1]} : vector<32x128xf32> to vector<32x32xf32>
    %125 = vector.extract_strided_slice %122 {offsets = [0, 32], sizes = [32, 32], strides = [1, 1]} : vector<32x128xf32> to vector<32x32xf32>
    %126 = vector.extract_strided_slice %123 {offsets = [0, 64], sizes = [32, 32], strides = [1, 1]} : vector<32x128xf32> to vector<32x32xf32>
    %127 = vector.extract_strided_slice %122 {offsets = [0, 96], sizes = [32, 32], strides = [1, 1]} : vector<32x128xf32> to vector<32x32xf32>
    %128 = arith.mulf %125, %109 : vector<32x32xf32>
    %129 = arith.mulf %124, %126 : vector<32x32xf32>
    %130 = arith.addf %128, %129 : vector<32x32xf32>
    %131 = math.tanh %130 : vector<32x32xf32>
    %132 = arith.mulf %127, %131 : vector<32x32xf32>
    %133 = vector.extract_strided_slice %0 {offsets = [0, 6], sizes = [32, 1], strides = [1, 1]} : vector<32x16xf32> to vector<32x1xf32>
    %134 = tpu.concatenate %132, %133, %4 in 1 : vector<32x32xf32>, vector<32x1xf32>, vector<32x1xf32> -> vector<32x34xf32>
    %135 = arith.truncf %134 : vector<32x34xf32> to vector<32x34xbf16>
    %cst_33 = arith.constant dense<0.000000e+00> : vector<32x128xf32>
    %136 = tpu.matmul %135, %1, %cst_33 {dimension_numbers = #tpu.dot_dimension_numbers<[1], [0], [0], [1], [0, 0, 1, 1], [], []>} : vector<32x34xbf16>, vector<34x128xbf16>, vector<32x128xf32> -> vector<32x128xf32>
    %cst_34 = arith.constant 5.000000e-01 : f32
    %137 = vector.broadcast %cst_34 : f32 to vector<32x128xf32>
    %138 = arith.mulf %137, %136 : vector<32x128xf32>
    %139 = math.tanh %138 : vector<32x128xf32>
    %cst_35 = arith.constant 5.000000e-01 : f32
    %140 = vector.broadcast %cst_35 : f32 to vector<32x128xf32>
    %141 = arith.mulf %140, %139 : vector<32x128xf32>
    %cst_36 = arith.constant 5.000000e-01 : f32
    %142 = vector.broadcast %cst_36 : f32 to vector<32x128xf32>
    %143 = arith.addf %141, %142 : vector<32x128xf32>
    %144 = math.tanh %136 : vector<32x128xf32>
    %145 = vector.extract_strided_slice %143 {offsets = [0, 0], sizes = [32, 32], strides = [1, 1]} : vector<32x128xf32> to vector<32x32xf32>
    %146 = vector.extract_strided_slice %143 {offsets = [0, 32], sizes = [32, 32], strides = [1, 1]} : vector<32x128xf32> to vector<32x32xf32>
    %147 = vector.extract_strided_slice %144 {offsets = [0, 64], sizes = [32, 32], strides = [1, 1]} : vector<32x128xf32> to vector<32x32xf32>
    %148 = vector.extract_strided_slice %143 {offsets = [0, 96], sizes = [32, 32], strides = [1, 1]} : vector<32x128xf32> to vector<32x32xf32>
    %149 = arith.mulf %146, %130 : vector<32x32xf32>
    %150 = arith.mulf %145, %147 : vector<32x32xf32>
    %151 = arith.addf %149, %150 : vector<32x32xf32>
    %152 = math.tanh %151 : vector<32x32xf32>
    %153 = arith.mulf %148, %152 : vector<32x32xf32>
    %154 = vector.extract_strided_slice %0 {offsets = [0, 7], sizes = [32, 1], strides = [1, 1]} : vector<32x16xf32> to vector<32x1xf32>
    %155 = tpu.concatenate %153, %154, %4 in 1 : vector<32x32xf32>, vector<32x1xf32>, vector<32x1xf32> -> vector<32x34xf32>
    %156 = arith.truncf %155 : vector<32x34xf32> to vector<32x34xbf16>
    %cst_37 = arith.constant dense<0.000000e+00> : vector<32x128xf32>
    %157 = tpu.matmul %156, %1, %cst_37 {dimension_numbers = #tpu.dot_dimension_numbers<[1], [0], [0], [1], [0, 0, 1, 1], [], []>} : vector<32x34xbf16>, vector<34x128xbf16>, vector<32x128xf32> -> vector<32x128xf32>
    %cst_38 = arith.constant 5.000000e-01 : f32
    %158 = vector.broadcast %cst_38 : f32 to vector<32x128xf32>
    %159 = arith.mulf %158, %157 : vector<32x128xf32>
    %160 = math.tanh %159 : vector<32x128xf32>
    %cst_39 = arith.constant 5.000000e-01 : f32
    %161 = vector.broadcast %cst_39 : f32 to vector<32x128xf32>
    %162 = arith.mulf %161, %160 : vector<32x128xf32>
    %cst_40 = arith.constant 5.000000e-01 : f32
    %163 = vector.broadcast %cst_40 : f32 to vector<32x128xf32>
    %164 = arith.addf %162, %163 : vector<32x128xf32>
    %165 = math.tanh %157 : vector<32x128xf32>
    %166 = vector.extract_strided_slice %164 {offsets = [0, 0], sizes = [32, 32], strides = [1, 1]} : vector<32x128xf32> to vector<32x32xf32>
    %167 = vector.extract_strided_slice %164 {offsets = [0, 32], sizes = [32, 32], strides = [1, 1]} : vector<32x128xf32> to vector<32x32xf32>
    %168 = vector.extract_strided_slice %165 {offsets = [0, 64], sizes = [32, 32], strides = [1, 1]} : vector<32x128xf32> to vector<32x32xf32>
    %169 = vector.extract_strided_slice %164 {offsets = [0, 96], sizes = [32, 32], strides = [1, 1]} : vector<32x128xf32> to vector<32x32xf32>
    %170 = arith.mulf %167, %151 : vector<32x32xf32>
    %171 = arith.mulf %166, %168 : vector<32x32xf32>
    %172 = arith.addf %170, %171 : vector<32x32xf32>
    %173 = math.tanh %172 : vector<32x32xf32>
    %174 = arith.mulf %169, %173 : vector<32x32xf32>
    %175 = vector.extract_strided_slice %0 {offsets = [0, 8], sizes = [32, 1], strides = [1, 1]} : vector<32x16xf32> to vector<32x1xf32>
    %176 = tpu.concatenate %174, %175, %4 in 1 : vector<32x32xf32>, vector<32x1xf32>, vector<32x1xf32> -> vector<32x34xf32>
    %177 = arith.truncf %176 : vector<32x34xf32> to vector<32x34xbf16>
    %cst_41 = arith.constant dense<0.000000e+00> : vector<32x128xf32>
    %178 = tpu.matmul %177, %1, %cst_41 {dimension_numbers = #tpu.dot_dimension_numbers<[1], [0], [0], [1], [0, 0, 1, 1], [], []>} : vector<32x34xbf16>, vector<34x128xbf16>, vector<32x128xf32> -> vector<32x128xf32>
    %cst_42 = arith.constant 5.000000e-01 : f32
    %179 = vector.broadcast %cst_42 : f32 to vector<32x128xf32>
    %180 = arith.mulf %179, %178 : vector<32x128xf32>
    %181 = math.tanh %180 : vector<32x128xf32>
    %cst_43 = arith.constant 5.000000e-01 : f32
    %182 = vector.broadcast %cst_43 : f32 to vector<32x128xf32>
    %183 = arith.mulf %182, %181 : vector<32x128xf32>
    %cst_44 = arith.constant 5.000000e-01 : f32
    %184 = vector.broadcast %cst_44 : f32 to vector<32x128xf32>
    %185 = arith.addf %183, %184 : vector<32x128xf32>
    %186 = math.tanh %178 : vector<32x128xf32>
    %187 = vector.extract_strided_slice %185 {offsets = [0, 0], sizes = [32, 32], strides = [1, 1]} : vector<32x128xf32> to vector<32x32xf32>
    %188 = vector.extract_strided_slice %185 {offsets = [0, 32], sizes = [32, 32], strides = [1, 1]} : vector<32x128xf32> to vector<32x32xf32>
    %189 = vector.extract_strided_slice %186 {offsets = [0, 64], sizes = [32, 32], strides = [1, 1]} : vector<32x128xf32> to vector<32x32xf32>
    %190 = vector.extract_strided_slice %185 {offsets = [0, 96], sizes = [32, 32], strides = [1, 1]} : vector<32x128xf32> to vector<32x32xf32>
    %191 = arith.mulf %188, %172 : vector<32x32xf32>
    %192 = arith.mulf %187, %189 : vector<32x32xf32>
    %193 = arith.addf %191, %192 : vector<32x32xf32>
    %194 = math.tanh %193 : vector<32x32xf32>
    %195 = arith.mulf %190, %194 : vector<32x32xf32>
    %196 = vector.extract_strided_slice %0 {offsets = [0, 9], sizes = [32, 1], strides = [1, 1]} : vector<32x16xf32> to vector<32x1xf32>
    %197 = tpu.concatenate %195, %196, %4 in 1 : vector<32x32xf32>, vector<32x1xf32>, vector<32x1xf32> -> vector<32x34xf32>
    %198 = arith.truncf %197 : vector<32x34xf32> to vector<32x34xbf16>
    %cst_45 = arith.constant dense<0.000000e+00> : vector<32x128xf32>
    %199 = tpu.matmul %198, %1, %cst_45 {dimension_numbers = #tpu.dot_dimension_numbers<[1], [0], [0], [1], [0, 0, 1, 1], [], []>} : vector<32x34xbf16>, vector<34x128xbf16>, vector<32x128xf32> -> vector<32x128xf32>
    %cst_46 = arith.constant 5.000000e-01 : f32
    %200 = vector.broadcast %cst_46 : f32 to vector<32x128xf32>
    %201 = arith.mulf %200, %199 : vector<32x128xf32>
    %202 = math.tanh %201 : vector<32x128xf32>
    %cst_47 = arith.constant 5.000000e-01 : f32
    %203 = vector.broadcast %cst_47 : f32 to vector<32x128xf32>
    %204 = arith.mulf %203, %202 : vector<32x128xf32>
    %cst_48 = arith.constant 5.000000e-01 : f32
    %205 = vector.broadcast %cst_48 : f32 to vector<32x128xf32>
    %206 = arith.addf %204, %205 : vector<32x128xf32>
    %207 = math.tanh %199 : vector<32x128xf32>
    %208 = vector.extract_strided_slice %206 {offsets = [0, 0], sizes = [32, 32], strides = [1, 1]} : vector<32x128xf32> to vector<32x32xf32>
    %209 = vector.extract_strided_slice %206 {offsets = [0, 32], sizes = [32, 32], strides = [1, 1]} : vector<32x128xf32> to vector<32x32xf32>
    %210 = vector.extract_strided_slice %207 {offsets = [0, 64], sizes = [32, 32], strides = [1, 1]} : vector<32x128xf32> to vector<32x32xf32>
    %211 = vector.extract_strided_slice %206 {offsets = [0, 96], sizes = [32, 32], strides = [1, 1]} : vector<32x128xf32> to vector<32x32xf32>
    %212 = arith.mulf %209, %193 : vector<32x32xf32>
    %213 = arith.mulf %208, %210 : vector<32x32xf32>
    %214 = arith.addf %212, %213 : vector<32x32xf32>
    %215 = math.tanh %214 : vector<32x32xf32>
    %216 = arith.mulf %211, %215 : vector<32x32xf32>
    %217 = vector.extract_strided_slice %0 {offsets = [0, 10], sizes = [32, 1], strides = [1, 1]} : vector<32x16xf32> to vector<32x1xf32>
    %218 = tpu.concatenate %216, %217, %4 in 1 : vector<32x32xf32>, vector<32x1xf32>, vector<32x1xf32> -> vector<32x34xf32>
    %219 = arith.truncf %218 : vector<32x34xf32> to vector<32x34xbf16>
    %cst_49 = arith.constant dense<0.000000e+00> : vector<32x128xf32>
    %220 = tpu.matmul %219, %1, %cst_49 {dimension_numbers = #tpu.dot_dimension_numbers<[1], [0], [0], [1], [0, 0, 1, 1], [], []>} : vector<32x34xbf16>, vector<34x128xbf16>, vector<32x128xf32> -> vector<32x128xf32>
    %cst_50 = arith.constant 5.000000e-01 : f32
    %221 = vector.broadcast %cst_50 : f32 to vector<32x128xf32>
    %222 = arith.mulf %221, %220 : vector<32x128xf32>
    %223 = math.tanh %222 : vector<32x128xf32>
    %cst_51 = arith.constant 5.000000e-01 : f32
    %224 = vector.broadcast %cst_51 : f32 to vector<32x128xf32>
    %225 = arith.mulf %224, %223 : vector<32x128xf32>
    %cst_52 = arith.constant 5.000000e-01 : f32
    %226 = vector.broadcast %cst_52 : f32 to vector<32x128xf32>
    %227 = arith.addf %225, %226 : vector<32x128xf32>
    %228 = math.tanh %220 : vector<32x128xf32>
    %229 = vector.extract_strided_slice %227 {offsets = [0, 0], sizes = [32, 32], strides = [1, 1]} : vector<32x128xf32> to vector<32x32xf32>
    %230 = vector.extract_strided_slice %227 {offsets = [0, 32], sizes = [32, 32], strides = [1, 1]} : vector<32x128xf32> to vector<32x32xf32>
    %231 = vector.extract_strided_slice %228 {offsets = [0, 64], sizes = [32, 32], strides = [1, 1]} : vector<32x128xf32> to vector<32x32xf32>
    %232 = vector.extract_strided_slice %227 {offsets = [0, 96], sizes = [32, 32], strides = [1, 1]} : vector<32x128xf32> to vector<32x32xf32>
    %233 = arith.mulf %230, %214 : vector<32x32xf32>
    %234 = arith.mulf %229, %231 : vector<32x32xf32>
    %235 = arith.addf %233, %234 : vector<32x32xf32>
    %236 = math.tanh %235 : vector<32x32xf32>
    %237 = arith.mulf %232, %236 : vector<32x32xf32>
    %238 = vector.extract_strided_slice %0 {offsets = [0, 11], sizes = [32, 1], strides = [1, 1]} : vector<32x16xf32> to vector<32x1xf32>
    %239 = tpu.concatenate %237, %238, %4 in 1 : vector<32x32xf32>, vector<32x1xf32>, vector<32x1xf32> -> vector<32x34xf32>
    %240 = arith.truncf %239 : vector<32x34xf32> to vector<32x34xbf16>
    %cst_53 = arith.constant dense<0.000000e+00> : vector<32x128xf32>
    %241 = tpu.matmul %240, %1, %cst_53 {dimension_numbers = #tpu.dot_dimension_numbers<[1], [0], [0], [1], [0, 0, 1, 1], [], []>} : vector<32x34xbf16>, vector<34x128xbf16>, vector<32x128xf32> -> vector<32x128xf32>
    %cst_54 = arith.constant 5.000000e-01 : f32
    %242 = vector.broadcast %cst_54 : f32 to vector<32x128xf32>
    %243 = arith.mulf %242, %241 : vector<32x128xf32>
    %244 = math.tanh %243 : vector<32x128xf32>
    %cst_55 = arith.constant 5.000000e-01 : f32
    %245 = vector.broadcast %cst_55 : f32 to vector<32x128xf32>
    %246 = arith.mulf %245, %244 : vector<32x128xf32>
    %cst_56 = arith.constant 5.000000e-01 : f32
    %247 = vector.broadcast %cst_56 : f32 to vector<32x128xf32>
    %248 = arith.addf %246, %247 : vector<32x128xf32>
    %249 = math.tanh %241 : vector<32x128xf32>
    %250 = vector.extract_strided_slice %248 {offsets = [0, 0], sizes = [32, 32], strides = [1, 1]} : vector<32x128xf32> to vector<32x32xf32>
    %251 = vector.extract_strided_slice %248 {offsets = [0, 32], sizes = [32, 32], strides = [1, 1]} : vector<32x128xf32> to vector<32x32xf32>
    %252 = vector.extract_strided_slice %249 {offsets = [0, 64], sizes = [32, 32], strides = [1, 1]} : vector<32x128xf32> to vector<32x32xf32>
    %253 = vector.extract_strided_slice %248 {offsets = [0, 96], sizes = [32, 32], strides = [1, 1]} : vector<32x128xf32> to vector<32x32xf32>
    %254 = arith.mulf %251, %235 : vector<32x32xf32>
    %255 = arith.mulf %250, %252 : vector<32x32xf32>
    %256 = arith.addf %254, %255 : vector<32x32xf32>
    %257 = math.tanh %256 : vector<32x32xf32>
    %258 = arith.mulf %253, %257 : vector<32x32xf32>
    %259 = vector.extract_strided_slice %0 {offsets = [0, 12], sizes = [32, 1], strides = [1, 1]} : vector<32x16xf32> to vector<32x1xf32>
    %260 = tpu.concatenate %258, %259, %4 in 1 : vector<32x32xf32>, vector<32x1xf32>, vector<32x1xf32> -> vector<32x34xf32>
    %261 = arith.truncf %260 : vector<32x34xf32> to vector<32x34xbf16>
    %cst_57 = arith.constant dense<0.000000e+00> : vector<32x128xf32>
    %262 = tpu.matmul %261, %1, %cst_57 {dimension_numbers = #tpu.dot_dimension_numbers<[1], [0], [0], [1], [0, 0, 1, 1], [], []>} : vector<32x34xbf16>, vector<34x128xbf16>, vector<32x128xf32> -> vector<32x128xf32>
    %cst_58 = arith.constant 5.000000e-01 : f32
    %263 = vector.broadcast %cst_58 : f32 to vector<32x128xf32>
    %264 = arith.mulf %263, %262 : vector<32x128xf32>
    %265 = math.tanh %264 : vector<32x128xf32>
    %cst_59 = arith.constant 5.000000e-01 : f32
    %266 = vector.broadcast %cst_59 : f32 to vector<32x128xf32>
    %267 = arith.mulf %266, %265 : vector<32x128xf32>
    %cst_60 = arith.constant 5.000000e-01 : f32
    %268 = vector.broadcast %cst_60 : f32 to vector<32x128xf32>
    %269 = arith.addf %267, %268 : vector<32x128xf32>
    %270 = math.tanh %262 : vector<32x128xf32>
    %271 = vector.extract_strided_slice %269 {offsets = [0, 0], sizes = [32, 32], strides = [1, 1]} : vector<32x128xf32> to vector<32x32xf32>
    %272 = vector.extract_strided_slice %269 {offsets = [0, 32], sizes = [32, 32], strides = [1, 1]} : vector<32x128xf32> to vector<32x32xf32>
    %273 = vector.extract_strided_slice %270 {offsets = [0, 64], sizes = [32, 32], strides = [1, 1]} : vector<32x128xf32> to vector<32x32xf32>
    %274 = vector.extract_strided_slice %269 {offsets = [0, 96], sizes = [32, 32], strides = [1, 1]} : vector<32x128xf32> to vector<32x32xf32>
    %275 = arith.mulf %272, %256 : vector<32x32xf32>
    %276 = arith.mulf %271, %273 : vector<32x32xf32>
    %277 = arith.addf %275, %276 : vector<32x32xf32>
    %278 = math.tanh %277 : vector<32x32xf32>
    %279 = arith.mulf %274, %278 : vector<32x32xf32>
    %280 = vector.extract_strided_slice %0 {offsets = [0, 13], sizes = [32, 1], strides = [1, 1]} : vector<32x16xf32> to vector<32x1xf32>
    %281 = tpu.concatenate %279, %280, %4 in 1 : vector<32x32xf32>, vector<32x1xf32>, vector<32x1xf32> -> vector<32x34xf32>
    %282 = arith.truncf %281 : vector<32x34xf32> to vector<32x34xbf16>
    %cst_61 = arith.constant dense<0.000000e+00> : vector<32x128xf32>
    %283 = tpu.matmul %282, %1, %cst_61 {dimension_numbers = #tpu.dot_dimension_numbers<[1], [0], [0], [1], [0, 0, 1, 1], [], []>} : vector<32x34xbf16>, vector<34x128xbf16>, vector<32x128xf32> -> vector<32x128xf32>
    %cst_62 = arith.constant 5.000000e-01 : f32
    %284 = vector.broadcast %cst_62 : f32 to vector<32x128xf32>
    %285 = arith.mulf %284, %283 : vector<32x128xf32>
    %286 = math.tanh %285 : vector<32x128xf32>
    %cst_63 = arith.constant 5.000000e-01 : f32
    %287 = vector.broadcast %cst_63 : f32 to vector<32x128xf32>
    %288 = arith.mulf %287, %286 : vector<32x128xf32>
    %cst_64 = arith.constant 5.000000e-01 : f32
    %289 = vector.broadcast %cst_64 : f32 to vector<32x128xf32>
    %290 = arith.addf %288, %289 : vector<32x128xf32>
    %291 = math.tanh %283 : vector<32x128xf32>
    %292 = vector.extract_strided_slice %290 {offsets = [0, 0], sizes = [32, 32], strides = [1, 1]} : vector<32x128xf32> to vector<32x32xf32>
    %293 = vector.extract_strided_slice %290 {offsets = [0, 32], sizes = [32, 32], strides = [1, 1]} : vector<32x128xf32> to vector<32x32xf32>
    %294 = vector.extract_strided_slice %291 {offsets = [0, 64], sizes = [32, 32], strides = [1, 1]} : vector<32x128xf32> to vector<32x32xf32>
    %295 = vector.extract_strided_slice %290 {offsets = [0, 96], sizes = [32, 32], strides = [1, 1]} : vector<32x128xf32> to vector<32x32xf32>
    %296 = arith.mulf %293, %277 : vector<32x32xf32>
    %297 = arith.mulf %292, %294 : vector<32x32xf32>
    %298 = arith.addf %296, %297 : vector<32x32xf32>
    %299 = math.tanh %298 : vector<32x32xf32>
    %300 = arith.mulf %295, %299 : vector<32x32xf32>
    %301 = vector.extract_strided_slice %0 {offsets = [0, 14], sizes = [32, 1], strides = [1, 1]} : vector<32x16xf32> to vector<32x1xf32>
    %302 = tpu.concatenate %300, %301, %4 in 1 : vector<32x32xf32>, vector<32x1xf32>, vector<32x1xf32> -> vector<32x34xf32>
    %303 = arith.truncf %302 : vector<32x34xf32> to vector<32x34xbf16>
    %cst_65 = arith.constant dense<0.000000e+00> : vector<32x128xf32>
    %304 = tpu.matmul %303, %1, %cst_65 {dimension_numbers = #tpu.dot_dimension_numbers<[1], [0], [0], [1], [0, 0, 1, 1], [], []>} : vector<32x34xbf16>, vector<34x128xbf16>, vector<32x128xf32> -> vector<32x128xf32>
    %cst_66 = arith.constant 5.000000e-01 : f32
    %305 = vector.broadcast %cst_66 : f32 to vector<32x128xf32>
    %306 = arith.mulf %305, %304 : vector<32x128xf32>
    %307 = math.tanh %306 : vector<32x128xf32>
    %cst_67 = arith.constant 5.000000e-01 : f32
    %308 = vector.broadcast %cst_67 : f32 to vector<32x128xf32>
    %309 = arith.mulf %308, %307 : vector<32x128xf32>
    %cst_68 = arith.constant 5.000000e-01 : f32
    %310 = vector.broadcast %cst_68 : f32 to vector<32x128xf32>
    %311 = arith.addf %309, %310 : vector<32x128xf32>
    %312 = math.tanh %304 : vector<32x128xf32>
    %313 = vector.extract_strided_slice %311 {offsets = [0, 0], sizes = [32, 32], strides = [1, 1]} : vector<32x128xf32> to vector<32x32xf32>
    %314 = vector.extract_strided_slice %311 {offsets = [0, 32], sizes = [32, 32], strides = [1, 1]} : vector<32x128xf32> to vector<32x32xf32>
    %315 = vector.extract_strided_slice %312 {offsets = [0, 64], sizes = [32, 32], strides = [1, 1]} : vector<32x128xf32> to vector<32x32xf32>
    %316 = vector.extract_strided_slice %311 {offsets = [0, 96], sizes = [32, 32], strides = [1, 1]} : vector<32x128xf32> to vector<32x32xf32>
    %317 = arith.mulf %314, %298 : vector<32x32xf32>
    %318 = arith.mulf %313, %315 : vector<32x32xf32>
    %319 = arith.addf %317, %318 : vector<32x32xf32>
    %320 = math.tanh %319 : vector<32x32xf32>
    %321 = arith.mulf %316, %320 : vector<32x32xf32>
    %322 = vector.extract_strided_slice %0 {offsets = [0, 15], sizes = [32, 1], strides = [1, 1]} : vector<32x16xf32> to vector<32x1xf32>
    %323 = tpu.concatenate %321, %322, %4 in 1 : vector<32x32xf32>, vector<32x1xf32>, vector<32x1xf32> -> vector<32x34xf32>
    %324 = arith.truncf %323 : vector<32x34xf32> to vector<32x34xbf16>
    %cst_69 = arith.constant dense<0.000000e+00> : vector<32x128xf32>
    %325 = tpu.matmul %324, %1, %cst_69 {dimension_numbers = #tpu.dot_dimension_numbers<[1], [0], [0], [1], [0, 0, 1, 1], [], []>} : vector<32x34xbf16>, vector<34x128xbf16>, vector<32x128xf32> -> vector<32x128xf32>
    %cst_70 = arith.constant 5.000000e-01 : f32
    %326 = vector.broadcast %cst_70 : f32 to vector<32x128xf32>
    %327 = arith.mulf %326, %325 : vector<32x128xf32>
    %328 = math.tanh %327 : vector<32x128xf32>
    %cst_71 = arith.constant 5.000000e-01 : f32
    %329 = vector.broadcast %cst_71 : f32 to vector<32x128xf32>
    %330 = arith.mulf %329, %328 : vector<32x128xf32>
    %cst_72 = arith.constant 5.000000e-01 : f32
    %331 = vector.broadcast %cst_72 : f32 to vector<32x128xf32>
    %332 = arith.addf %330, %331 : vector<32x128xf32>
    %333 = math.tanh %325 : vector<32x128xf32>
    %334 = vector.extract_strided_slice %332 {offsets = [0, 0], sizes = [32, 32], strides = [1, 1]} : vector<32x128xf32> to vector<32x32xf32>
    %335 = vector.extract_strided_slice %332 {offsets = [0, 32], sizes = [32, 32], strides = [1, 1]} : vector<32x128xf32> to vector<32x32xf32>
    %336 = vector.extract_strided_slice %333 {offsets = [0, 64], sizes = [32, 32], strides = [1, 1]} : vector<32x128xf32> to vector<32x32xf32>
    %337 = vector.extract_strided_slice %332 {offsets = [0, 96], sizes = [32, 32], strides = [1, 1]} : vector<32x128xf32> to vector<32x32xf32>
    %338 = arith.mulf %335, %319 : vector<32x32xf32>
    %339 = arith.mulf %334, %336 : vector<32x32xf32>
    %340 = arith.addf %338, %339 : vector<32x32xf32>
    %341 = math.tanh %340 : vector<32x32xf32>
    %342 = arith.mulf %337, %341 : vector<32x32xf32>
    %cst_73 = arith.constant dense<0.000000e+00> : vector<32x2xf32>
    %343 = tpu.matmul %342, %2, %cst_73 {dimension_numbers = #tpu.dot_dimension_numbers<[1], [0], [0], [1], [0, 0, 1, 1], [], []>} : vector<32x32xf32>, vector<32x2xf32>, vector<32x2xf32> -> vector<32x2xf32>
    %344 = vector.broadcast %3 : vector<1x2xf32> to vector<32x2xf32>
    %345 = arith.addf %343, %344 : vector<32x2xf32>
    %cst_74 = arith.constant dense<0xFF800000> : vector<32xf32>
    %346 = vector.multi_reduction <maximumf>, %345, %cst_74 [1] : vector<32x2xf32> to vector<32xf32>
    %347 = vector.shape_cast %346 : vector<32xf32> to vector<32x1xf32>
    %348 = vector.broadcast %347 : vector<32x1xf32> to vector<32x2xf32>
    %349 = arith.subf %345, %348 : vector<32x2xf32>
    %350 = math.exp %349 : vector<32x2xf32>
    %cst_75 = arith.constant dense<0.000000e+00> : vector<32xf32>
    %351 = vector.multi_reduction <add>, %350, %cst_75 [1] : vector<32x2xf32> to vector<32xf32>
    %352 = vector.shape_cast %351 : vector<32xf32> to vector<32x1xf32>
    %353 = vector.broadcast %352 : vector<32x1xf32> to vector<32x2xf32>
    %354 = arith.divf %350, %353 : vector<32x2xf32>
    %c0_76 = arith.constant 0 : index
    %c0_77 = arith.constant 0 : index
    %355 = vector.load %arg5[%c0_76, %c0_77] : memref<32x2xf32, #tpu.memory_space<vmem>>, vector<32x2xf32>
    tpu.vector_store %arg5[%c0_76, %c0_77], %354 {strides = array<i32>} : memref<32x2xf32, #tpu.memory_space<vmem>>, vector<32x2xf32>,
    return
  }
  func.func @transform_0(%arg0: i32) -> (i32, i32) {
    %c0_i32 = arith.constant 0 : i32
    %c0_i32_0 = arith.constant 0 : i32
    return %arg0, %c0_i32 : i32, i32
  }
  func.func @transform_1(%arg0: i32) -> (i32, i32) {
    %c0_i32 = arith.constant 0 : i32
    %c0_i32_0 = arith.constant 0 : i32
    %c0_i32_1 = arith.constant 0 : i32
    return %c0_i32, %c0_i32_0 : i32, i32
  }
  func.func @transform_2(%arg0: i32) -> (i32, i32) {
    %c0_i32 = arith.constant 0 : i32
    %c0_i32_0 = arith.constant 0 : i32
    %c0_i32_1 = arith.constant 0 : i32
    return %c0_i32, %c0_i32_0 : i32, i32
  }
  func.func @transform_3(%arg0: i32) -> (i32, i32) {
    %c0_i32 = arith.constant 0 : i32
    %c0_i32_0 = arith.constant 0 : i32
    %c0_i32_1 = arith.constant 0 : i32
    return %c0_i32, %c0_i32_0 : i32, i32
  }
  func.func @transform_4(%arg0: i32) -> (i32, i32) {
    %c0_i32 = arith.constant 0 : i32
    %c0_i32_0 = arith.constant 0 : i32
    return %arg0, %c0_i32 : i32, i32
  }
}

</mosaic_0001>

<bundles_post_ra>
// kernel: tpu_custom_call.1
= control target key start
LH: loop header
LB: loop body
LE: loop exit
PB: predicated region body
PF: predicated region fallthrough
CT: control target
= control target key end

     0   :  { %s4481_s15 = smov 0   ;;  %s5390_s0 = inlined_call_operand.vmem [shape: f32[64,16], index: 0, kind: input, shape index: {}]   ;;  %s5391_s1 = inlined_call_operand.vmem [shape: bf16[34,128], index: 1, kind: input, shape index: {}]   ;;  %s5392_s2 = inlined_call_operand.vmem [shape: f32[32,2], index: 2, kind: input, shape index: {}]   ;;  %s5393_s3 = inlined_call_operand.vmem [shape: f32[1,2], index: 3, kind: input, shape index: {}]   ;;  %s5394_s4 = inlined_call_operand.vmem [shape: f32[64,2], index: 4, kind: output, shape index: {}]  }
   0x1 LB: > { %s3338_s16 = sadd.s32 4294967295, %s4437_s15   ;;  %p3342_p0 = scmp.ge.s32.totalorder %s4437_s15, 1  ;;  %s4437_s15 = sphi %s4481_s15, %s14_s15  }
   0x2   : > { %p163_p1 = scmp.lt.s32.totalorder %s4437_s15, 3 }
   0x4   : > { %p164_p2 = pnand %p3342_p0, %p163_p1 }
   0x5   : > { %s3343_s17 = sshll.u32 (!%p164_p2), %s3338_s16, 2  ;;  %s4439_s28 = smov (!%p164_p2), 32  }
   0x6   : > { %167 = sbr.rel (%p164_p2) target bundleno = 11951 (0x2eaf), region = 36  ;;  %p190_p3 = scmp.lt.s32.totalorder (!%p164_p2), %s3343_s17, 7 }
   0x7   : > { %s4440_s29 = smov (!%p164_p2), 64   ;;  %s4441_s30 = smov (!%p164_p2), 31  }
   0x8   : > { %s4442_s5 = smov (!%p164_p2), 30   ;;  %s4443_s6 = smov (!%p164_p2), 29  }
   0x9   : > { %s4444_s7 = smov (!%p164_p2), 28   ;;  %s4445_s14 = smov (!%p164_p2), 27  }
   0xa   : > { %s4446_s16 = smov (!%p164_p2), 26   ;;  %s4447_s18 = smov (!%p164_p2), 25  }
   0xb   : > { %vm266_vm0 = vcmask 1040384   ;;  %v4492_v0 = vld [vmem:[%s5391_s1 + $0x8] sm:$0xff]   ;;  %v4497_v1 = vld [vmem:[%s5391_s1 + $0x10] ss:$0 sps:$4 sm:$0x11]   ;;  %s5396_s17 = smov (!%p190_p3, %s3343_s17), 7 }
   0xc   : > { %3659 = vmatprep.subr.msk.bf16.mxu0 %vm266_vm0, %v4497_v1  ;;  %v4505_v2 = vsel %vm266_vm0, %v4497_v1, 0  ;;  %3660 = vmatprep.subr.msk.bf16.mxu1 %vm266_vm0, %v4497_v1  ;;  %s3344_s22 = sshll.u32 %s5396_s17, 3  ;;  %v4516_v3 = vld [vmem:[%s5391_s1] sm:$0xff]   ;;  %vm232_vm1 = vcmask 261120   ;;  %vm237_vm2 = vcmask 269312   ;;  %vm259_vm3 = vcmask 277504  }
   0xd   : > { %3478 = vmatpush3.bf16.msra.mxu0 %v4505_v2  ;;  %3488 = vmatpush3.bf16.msra.mxu1 %v4505_v2  ;;  %s4524_s27 = scalar_lea.vmem %s5390_s0, %s3344_s22  ;;  %s4448_s19 = smov 24   ;;  %vm3233_vm4 = vcmask 15360  }
   0xe   : > { %3479 = vmatprep.subr.bf16.mxu0 %v4492_v0  ;;  %3489 = vmatprep.subr.bf16.mxu1 %v4492_v0  ;;  %v202_v4 = vld [vmem:[%s4524_s27] sm:$0xff]  ;;  %v203_v5 = vld [vmem:[%s4524_s27 + $0x8] sm:$0xff]  ;;  %v204_v6 = vld [vmem:[%s4524_s27 + $0x10] sm:$0xff]  ;;  %s4449_s20 = smov 23   ;;  %s4453_s8 = smov 19  }
   0xf   : > { %v4529_v7 = vpack.i.bf16 %v203_v5, %v202_v4  ;;  %v205_v8 = vld [vmem:[%s4524_s27 + $0x18] sm:$0xff]  ;;  %s4454_s9 = smov 18   ;;  %s4455_s10 = smov 17  }
  0x10   : > { %v4538_v9 = vpack.i.bf16 %v205_v8, %v204_v6  ;;  %s199_s23 = scalar_lea.vmem %s5394_s4, %s3344_s22 }
  0x11   : > { %3480 = vmatpush3.bf16.msra.mxu0 %v4492_v0  ;;  %3490 = vmatpush3.bf16.msra.mxu1 %v4492_v0 }
  0x12   : > { %3481 = vmatprep.subr.bf16.mxu0 %v4516_v3  ;;  %3491 = vmatprep.subr.bf16.mxu1 %v4516_v3 }
  0x13   : > { %3701 = vrot.lane.b32.xlu0 %v4529_v7, %s4439_s28 }
  0x15   : > { %3482 = vmatpush3.bf16.msra.mxu0 %v4516_v3  ;;  %3492 = vmatpush3.bf16.msra.mxu1 %v4516_v3 }
  0x16   : > { %3661 = vmatprep.subr.msk.bf16.mxu0 %vm266_vm0, %v4497_v1  ;;  %3662 = vmatprep.subr.msk.bf16.mxu1 %vm266_vm0, %v4497_v1 }
  0x17   : > { %3706 = vrot.lane.b32.xlu0 %v4538_v9, %s4439_s28 }
  0x85   : > { %v3702_v10 = vpop.permute.xlu0 %3701 }
  0x86   : > { %v3704_v11 = vunpack.i.h.bf16 %v3702_v10  ;;  %v3703_v12 = vunpack.i.l.bf16 %v3702_v10 }
  0x88   : > { %v233_v13 = vsel %vm232_vm1, 0.0, %v3703_v12  ;;  %v234_v14 = vsel %vm232_vm1, 0.0, %v3704_v11 }
  0x89   : > { %v3707_v15 = vpop.permute.xlu0 %3706  ;;  %v238_v16 = vsel %vm237_vm2, %v233_v13, 1.0  ;;  %v239_v17 = vsel %vm237_vm2, %v234_v14, 1.0 }
  0x8a   : > { %v3709_v18 = vunpack.i.h.bf16 %v3707_v15  ;;  %v3708_v19 = vunpack.i.l.bf16 %v3707_v15  ;;  %v242_v20 = vpack.c.bf16 %v239_v17, %v238_v16 }
  0x8c   : > { %v236_v21 = vsel %vm232_vm1, 0.0, %v3709_v18  ;;  %v235_v22 = vsel %vm232_vm1, 0.0, %v3708_v19  ;;  %3483 = vmatprep.mubr.msk.bf16.mxu0 %vm259_vm3, %v242_v20 }
  0x8d   : > { %v241_v23 = vsel %vm237_vm2, %v236_v21, 1.0  ;;  %v240_v24 = vsel %vm237_vm2, %v235_v22, 1.0 }
  0x8e   : > { %v243_v25 = vpack.c.bf16 %v241_v23, %v240_v24 }
  0x90   : > { %3484 = vmatmul.mubr.msk.bf16.vlgmr.msra.gmra.mxu0 %vm259_vm3, %v243_v25 }
  0x91   : > { %3498 = vmatpush3.bf16.msra.mxu0 %v4505_v2 }
  0x92   : > { %3499 = vmatprep.subr.bf16.mxu0 %v4492_v0 }
  0x95   : > { %3500 = vmatpush3.bf16.msra.mxu0 %v4492_v0 }
  0x96   : > { %3501 = vmatprep.subr.bf16.mxu0 %v4516_v3 }
  0x99   : > { %3502 = vmatpush3.bf16.msra.mxu0 %v4516_v3 }
  0x9a   : > { %3663 = vmatprep.subr.msk.bf16.mxu0 %vm266_vm0, %v4497_v1 }
 0x150   : > { %v3485_v26 = vpop.f32.mrf.mxu0 }
 0x151   : > { %4013 = vtanh.f32 %v3485_v26  ;;  %v321_v35 = vmul.f32 0.5, %v3485_v26 }
 0x152   : > { %v304_v27 = vpop.f32.mrf.mxu0 }
 0x153   : > { %4015 = vtanh.f32 %v304_v27  ;;  %v319_v34 = vmul.f32 0.5, %v304_v27 }
 0x154   : > { %v3486_v28 = vpop.f32.mrf.mxu0 }
 0x155   : > { %v322_v37 = vmul.f32 0.5, %v3486_v28 }
 0x156   : > { %v307_v29 = vpop.f32.mrf.mxu0 }
 0x157   : > { %4017 = vtanh.f32 %v307_v29  ;;  %v320_v36 = vmul.f32 0.5, %v307_v29 }
 0x158   : > { %4019 = vtanh.f32 %v3486_v28 }
 0x159   : > { %4021 = vtanh.f32 %v319_v34 }
 0x15a   : > { %4023 = vtanh.f32 %v321_v35 }
 0x15b   : > { %4025 = vtanh.f32 %v320_v36 }
 0x15c   : > { %4027 = vtanh.f32 %v322_v37 }
 0x15e   : > { %v4014_v30 = vpop.eup %4013 }
 0x15f   : > { %351 = vrot.lane.b32.xlu0 %v4014_v30, %s4440_s29 }
 0x160   : > { %v4016_v31 = vpop.eup %4015 }
 0x161   : > { %347 = vrot.lane.b32.xlu1 %v4016_v31, %s4440_s29 }
 0x164   : > { %v4018_v32 = vpop.eup %4017 }
 0x165   : > { %349 = vrot.lane.b32.xlu1 %v4018_v32, %s4440_s29  ;;  %v4020_v33 = vpop.eup %4019 }
 0x166   : > { %v4022_v38 = vpop.eup %4021 }
 0x167   : > { %v4024_v39 = vpop.eup %4023  ;;  %v327_v40 = vmul.f32 0.5, %v4022_v38 }
 0x168   : > { %v4026_v41 = vpop.eup %4025  ;;  %v329_v42 = vmul.f32 0.5, %v4024_v39 }
 0x169   : > { %353 = vrot.lane.b32.xlu1 %v4020_v33, %s4440_s29  ;;  %v328_v43 = vmul.f32 0.5, %v4026_v41  ;;  %v331_v44 = vadd.f32 0.5, %v327_v40  ;;  %v4028_v45 = vpop.eup %4027 }
 0x16a   : > { %v330_v49 = vmul.f32 0.5, %v4028_v45  ;;  %v333_v50 = vadd.f32 0.5, %v329_v42 }
 0x16b   : > { %v332_v51 = vadd.f32 0.5, %v328_v43  ;;  %v339_v58 = vmul.f32 0.0, %v331_v44 }
 0x16c   : > { %v334_v55 = vadd.f32 0.5, %v330_v49  ;;  %v341_v61 = vmul.f32 0.0, %v333_v50 }
 0x16d   : > { %v340_v62 = vmul.f32 0.0, %v332_v51 }
 0x16e   : > { %v342_v8 = vmul.f32 0.0, %v334_v55 }
 0x1d1   : > { %v352_v48 = vpop.permute.xlu0 %351 }
 0x1d2   : > { %v361_v53 = vmul.f32 %v352_v48, %v333_v50 }
 0x1d3   : > { %v348_v46 = vpop.permute.xlu1 %347 }
 0x1d4   : > { %v359_v47 = vmul.f32 %v348_v46, %v331_v44 }
 0x1d6   : > { %367 = vrot.lane.b32.xlu0 %v359_v47, %s4439_s28 }
 0x1d7   : > { %v350_v52 = vpop.permute.xlu1 %349 }
 0x1d8   : > { %v360_v54 = vmul.f32 %v350_v52, %v332_v51 }
 0x1da   : > { %371 = vrot.lane.b32.xlu0 %v361_v53, %s4439_s28  ;;  %369 = vrot.lane.b32.xlu1 %v360_v54, %s4439_s28 }
 0x1db   : > { %v354_v56 = vpop.permute.xlu1 %353 }
 0x1dc   : > { %v362_v57 = vmul.f32 %v354_v56, %v334_v55 }
 0x1de   : > { %373 = vrot.lane.b32.xlu1 %v362_v57, %s4439_s28 }
 0x248   : > { %v368_v59 = vpop.permute.xlu0 %367 }
 0x249   : > { %v4573_v60 = vadd.f32 %v368_v59, %v339_v58 }
 0x24b   : > { %4029 = vtanh.f32 %v4573_v60 }
 0x24c   : > { %v372_v63 = vpop.permute.xlu0 %371  ;;  %v370_v4 = vpop.permute.xlu1 %369 }
 0x24d   : > { %v4576_v5 = vadd.f32 %v372_v63, %v341_v61  ;;  %v4578_v6 = vadd.f32 %v370_v4, %v340_v62 }
 0x24f   : > { %4031 = vtanh.f32 %v4576_v5 }
 0x250   : > { %4033 = vtanh.f32 %v4578_v6  ;;  %v374_v10 = vpop.permute.xlu1 %373 }
 0x251   : > { %v4582_v11 = vadd.f32 %v374_v10, %v342_v8 }
 0x253   : > { %4035 = vtanh.f32 %v4582_v11 }
 0x258   : > { %v4030_v12 = vpop.eup %4029 }
 0x259   : > { %391 = vrot.lane.b32.xlu0 %v4030_v12, %s4440_s29 }
 0x25c   : > { %v4032_v13 = vpop.eup %4031 }
 0x25d   : > { %v4034_v14 = vpop.eup %4033  ;;  %395 = vrot.lane.b32.xlu0 %v4032_v13, %s4440_s29 }
 0x25e   : > { %393 = vrot.lane.b32.xlu1 %v4034_v14, %s4440_s29 }
 0x260   : > { %v4036_v15 = vpop.eup %4035 }
 0x262   : > { %397 = vrot.lane.b32.xlu1 %v4036_v15, %s4440_s29 }
 0x266   : > { %3711 = vrot.lane.b32.xlu1 %v4529_v7, %s4441_s30 }
 0x26a   : > { %3726 = vrot.lane.b32.xlu1 %v4538_v9, %s4441_s30 }
 0x2cb   : > { %v392_v16 = vpop.permute.xlu0 %391 }
 0x2cc   : > { %v403_v18 = vmul.f32 %v392_v16, %v331_v44 }
 0x2cf   : > { %v396_v20 = vpop.permute.xlu0 %395 }
 0x2d0   : > { %v394_v17 = vpop.permute.xlu1 %393  ;;  %v405_v23 = vmul.f32 %v396_v20, %v333_v50 }
 0x2d1   : > { %v404_v19 = vmul.f32 %v394_v17, %v332_v51 }
 0x2d3   : > { %v3715_v21 = vpack.i.bf16 %v404_v19, %v403_v18 }
 0x2d4   : > { %v398_v22 = vpop.permute.xlu1 %397 }
 0x2d5   : > { %v406_v24 = vmul.f32 %v398_v22, %v334_v55  ;;  %3716 = vrot.lane.b32.xlu0 %v3715_v21, %s4439_s28 }
 0x2d7   : > { %v3720_v25 = vpack.i.bf16 %v406_v24, %v405_v23 }
 0x2d8   : > { %v3712_v26 = vpop.permute.xlu1 %3711 }
 0x2d9   : > { %3721 = vrot.lane.b32.xlu0 %v3720_v25, %s4439_s28  ;;  %v3714_v27 = vunpack.i.h.bf16 %v3712_v26  ;;  %v3713_v28 = vunpack.i.l.bf16 %v3712_v26 }
 0x2dc   : > { %v3727_v30 = vpop.permute.xlu1 %3726 }
 0x2dd   : > { %v3729_v33 = vunpack.i.h.bf16 %v3727_v30  ;;  %v3728_v34 = vunpack.i.l.bf16 %v3727_v30 }
 0x347   : > { %v3717_v29 = vpop.permute.xlu0 %3716 }
 0x348   : > { %v3719_v31 = vunpack.i.h.bf16 %v3717_v29  ;;  %v3718_v32 = vunpack.i.l.bf16 %v3717_v29 }
 0x34a   : > { %v435_v35 = vsel %vm232_vm1, %v3718_v32, %v3713_v28  ;;  %v436_v36 = vsel %vm232_vm1, %v3719_v31, %v3714_v27 }
 0x34b   : > { %v3722_v37 = vpop.permute.xlu0 %3721  ;;  %v439_v38 = vsel %vm237_vm2, %v435_v35, 1.0  ;;  %v440_v39 = vsel %vm237_vm2, %v436_v36, 1.0 }
 0x34c   : > { %v3724_v40 = vunpack.i.h.bf16 %v3722_v37  ;;  %v3723_v41 = vunpack.i.l.bf16 %v3722_v37  ;;  %v443_v42 = vpack.c.bf16 %v440_v39, %v439_v38 }
 0x34e   : > { %v438_v43 = vsel %vm232_vm1, %v3724_v40, %v3729_v33  ;;  %v437_v44 = vsel %vm232_vm1, %v3723_v41, %v3728_v34  ;;  %3493 = vmatprep.mubr.msk.bf16.mxu1 %vm259_vm3, %v443_v42 }
 0x34f   : > { %v441_v45 = vsel %vm237_vm2, %v437_v44, 1.0  ;;  %v442_v46 = vsel %vm237_vm2, %v438_v43, 1.0 }
 0x350   : > { %v444_v47 = vpack.c.bf16 %v442_v46, %v441_v45 }
 0x352   : > { %3494 = vmatmul.mubr.msk.bf16.vlgmr.msra.gmra.mxu1 %vm259_vm3, %v444_v47 }
 0x353   : > { %3508 = vmatpush3.bf16.msra.mxu1 %v4505_v2 }
 0x354   : > { %3509 = vmatprep.subr.bf16.mxu1 %v4492_v0 }
 0x357   : > { %3510 = vmatpush3.bf16.msra.mxu1 %v4492_v0 }
 0x358   : > { %3511 = vmatprep.subr.bf16.mxu1 %v4516_v3 }
 0x35b   : > { %3512 = vmatpush3.bf16.msra.mxu1 %v4516_v3 }
 0x35c   : > { %3664 = vmatprep.subr.msk.bf16.mxu1 %vm266_vm0, %v4497_v1 }
 0x412   : > { %v3495_v48 = vpop.f32.mrf.mxu1 }
 0x413   : > { %v502_v57 = vmul.f32 0.5, %v3495_v48 }
 0x414   : > { %v485_v49 = vpop.f32.mrf.mxu1 }
 0x415   : > { %4037 = vtanh.f32 %v485_v49  ;;  %v500_v56 = vmul.f32 0.5, %v485_v49 }
 0x416   : > { %v3496_v50 = vpop.f32.mrf.mxu1  ;;  %4039 = vtanh.f32 %v3495_v48 }
 0x417   : > { %v503_v59 = vmul.f32 0.5, %v3496_v50 }
 0x418   : > { %v488_v51 = vpop.f32.mrf.mxu1 }
 0x419   : > { %4041 = vtanh.f32 %v488_v51  ;;  %v501_v58 = vmul.f32 0.5, %v488_v51 }
 0x41a   : > { %4043 = vtanh.f32 %v3496_v50 }
 0x41b   : > { %4045 = vtanh.f32 %v500_v56 }
 0x41c   : > { %4047 = vtanh.f32 %v502_v57 }
 0x41d   : > { %4049 = vtanh.f32 %v501_v58 }
 0x41e   : > { %4051 = vtanh.f32 %v503_v59 }
 0x422   : > { %v4038_v52 = vpop.eup %4037 }
 0x423   : > { %528 = vrot.lane.b32.xlu0 %v4038_v52, %s4440_s29  ;;  %v4040_v53 = vpop.eup %4039 }
 0x426   : > { %v4042_v54 = vpop.eup %4041 }
 0x427   : > { %532 = vrot.lane.b32.xlu0 %v4040_v53, %s4440_s29  ;;  %530 = vrot.lane.b32.xlu1 %v4042_v54, %s4440_s29  ;;  %v4044_v55 = vpop.eup %4043 }
 0x428   : > { %v4046_v61 = vpop.eup %4045 }
 0x429   : > { %v4048_v62 = vpop.eup %4047  ;;  %v508_v63 = vmul.f32 0.5, %v4046_v61 }
 0x42a   : > { %v4050_v4 = vpop.eup %4049  ;;  %v510_v8 = vmul.f32 0.5, %v4048_v62 }
 0x42b   : > { %534 = vrot.lane.b32.xlu1 %v4044_v55, %s4440_s29  ;;  %v509_v10 = vmul.f32 0.5, %v4050_v4  ;;  %v512_v12 = vadd.f32 0.5, %v508_v63  ;;  %v4052_v13 = vpop.eup %4051 }
 0x42c   : > { %v511_v16 = vmul.f32 0.5, %v4052_v13  ;;  %v514_v17 = vadd.f32 0.5, %v510_v8 }
 0x42d   : > { %v513_v18 = vadd.f32 0.5, %v509_v10  ;;  %v520_v26 = vmul.f32 %v512_v12, %v4573_v60 }
 0x42e   : > { %v515_v23 = vadd.f32 0.5, %v511_v16  ;;  %v522_v29 = vmul.f32 %v514_v17, %v4576_v5 }
 0x42f   : > { %v521_v30 = vmul.f32 %v513_v18, %v4578_v6 }
 0x430   : > { %v523_v35 = vmul.f32 %v515_v23, %v4582_v11 }
 0x495   : > { %v529_v14 = vpop.permute.xlu0 %528 }
 0x496   : > { %v540_v15 = vmul.f32 %v529_v14, %v512_v12 }
 0x498   : > { %548 = vrot.lane.b32.xlu0 %v540_v15, %s4439_s28 }
 0x499   : > { %v533_v19 = vpop.permute.xlu0 %532  ;;  %v531_v20 = vpop.permute.xlu1 %530 }
 0x49a   : > { %v542_v21 = vmul.f32 %v533_v19, %v514_v17  ;;  %v541_v22 = vmul.f32 %v531_v20, %v513_v18 }
 0x49c   : > { %552 = vrot.lane.b32.xlu0 %v542_v21, %s4439_s28  ;;  %550 = vrot.lane.b32.xlu1 %v541_v22, %s4439_s28 }
 0x49d   : > { %v535_v24 = vpop.permute.xlu1 %534 }
 0x49e   : > { %v543_v25 = vmul.f32 %v535_v24, %v515_v23 }
 0x4a0   : > { %554 = vrot.lane.b32.xlu1 %v543_v25, %s4439_s28 }
 0x50a   : > { %v549_v27 = vpop.permute.xlu0 %548 }
 0x50b   : > { %v4619_v28 = vadd.f32 %v549_v27, %v520_v26 }
 0x50d   : > { %4053 = vtanh.f32 %v4619_v28 }
 0x50e   : > { %v553_v31 = vpop.permute.xlu0 %552  ;;  %v551_v32 = vpop.permute.xlu1 %550 }
 0x50f   : > { %v4624_v33 = vadd.f32 %v553_v31, %v522_v29  ;;  %v4626_v34 = vadd.f32 %v551_v32, %v521_v30 }
 0x511   : > { %4055 = vtanh.f32 %v4624_v33 }
 0x512   : > { %4057 = vtanh.f32 %v4626_v34  ;;  %v555_v60 = vpop.permute.xlu1 %554 }
 0x513   : > { %v4631_v36 = vadd.f32 %v555_v60, %v523_v35 }
 0x515   : > { %4059 = vtanh.f32 %v4631_v36 }
 0x51a   : > { %v4054_v5 = vpop.eup %4053 }
 0x51b   : > { %572 = vrot.lane.b32.xlu0 %v4054_v5, %s4440_s29 }
 0x51e   : > { %v4056_v6 = vpop.eup %4055 }
 0x51f   : > { %v4058_v37 = vpop.eup %4057  ;;  %576 = vrot.lane.b32.xlu0 %v4056_v6, %s4440_s29 }
 0x520   : > { %574 = vrot.lane.b32.xlu1 %v4058_v37, %s4440_s29 }
 0x522   : > { %v4060_v38 = vpop.eup %4059 }
 0x524   : > { %578 = vrot.lane.b32.xlu1 %v4060_v38, %s4440_s29 }
 0x528   : > { %3731 = vrot.lane.b32.xlu1 %v4529_v7, %s4442_s5 }
 0x52c   : > { %3746 = vrot.lane.b32.xlu1 %v4538_v9, %s4442_s5  ;;  %s4450_s5 = smov 22  }
 0x58d   : > { %v573_v11 = vpop.permute.xlu0 %572 }
 0x58e   : > { %v584_v40 = vmul.f32 %v573_v11, %v512_v12 }
 0x591   : > { %v577_v42 = vpop.permute.xlu0 %576 }
 0x592   : > { %v575_v39 = vpop.permute.xlu1 %574  ;;  %v586_v45 = vmul.f32 %v577_v42, %v514_v17 }
 0x593   : > { %v585_v41 = vmul.f32 %v575_v39, %v513_v18 }
 0x595   : > { %v3735_v43 = vpack.i.bf16 %v585_v41, %v584_v40 }
 0x596   : > { %v579_v44 = vpop.permute.xlu1 %578 }
 0x597   : > { %v587_v46 = vmul.f32 %v579_v44, %v515_v23  ;;  %3736 = vrot.lane.b32.xlu0 %v3735_v43, %s4439_s28 }
 0x599   : > { %v3740_v47 = vpack.i.bf16 %v587_v46, %v586_v45 }
 0x59a   : > { %v3732_v48 = vpop.permute.xlu1 %3731 }
 0x59b   : > { %3741 = vrot.lane.b32.xlu0 %v3740_v47, %s4439_s28  ;;  %v3734_v49 = vunpack.i.h.bf16 %v3732_v48  ;;  %v3733_v50 = vunpack.i.l.bf16 %v3732_v48 }
 0x59e   : > { %v3747_v52 = vpop.permute.xlu1 %3746 }
 0x59f   : > { %v3749_v57 = vunpack.i.h.bf16 %v3747_v52  ;;  %v3748_v58 = vunpack.i.l.bf16 %v3747_v52 }
 0x609   : > { %v3737_v51 = vpop.permute.xlu0 %3736 }
 0x60a   : > { %v3739_v53 = vunpack.i.h.bf16 %v3737_v51  ;;  %v3738_v54 = vunpack.i.l.bf16 %v3737_v51 }
 0x60c   : > { %v617_v55 = vsel %vm232_vm1, %v3739_v53, %v3734_v49  ;;  %v616_v56 = vsel %vm232_vm1, %v3738_v54, %v3733_v50 }
 0x60d   : > { %v3742_v59 = vpop.permute.xlu0 %3741  ;;  %v620_v61 = vsel %vm237_vm2, %v616_v56, 1.0  ;;  %v621_v62 = vsel %vm237_vm2, %v617_v55, 1.0 }
 0x60e   : > { %v3744_v63 = vunpack.i.h.bf16 %v3742_v59  ;;  %v3743_v4 = vunpack.i.l.bf16 %v3742_v59  ;;  %v624_v8 = vpack.c.bf16 %v621_v62, %v620_v61 }
 0x610   : > { %v619_v10 = vsel %vm232_vm1, %v3744_v63, %v3749_v57  ;;  %v618_v12 = vsel %vm232_vm1, %v3743_v4, %v3748_v58  ;;  %3503 = vmatprep.mubr.msk.bf16.mxu0 %vm259_vm3, %v624_v8 }
 0x611   : > { %v623_v13 = vsel %vm237_vm2, %v619_v10, 1.0  ;;  %v622_v14 = vsel %vm237_vm2, %v618_v12, 1.0 }
 0x612   : > { %v625_v15 = vpack.c.bf16 %v623_v13, %v622_v14 }
 0x614   : > { %3504 = vmatmul.mubr.msk.bf16.vlgmr.msra.gmra.mxu0 %vm259_vm3, %v625_v15 }
 0x615   : > { %3518 = vmatpush3.bf16.msra.mxu0 %v4505_v2 }
 0x616   : > { %3519 = vmatprep.subr.bf16.mxu0 %v4492_v0 }
 0x619   : > { %3520 = vmatpush3.bf16.msra.mxu0 %v4492_v0 }
 0x61a   : > { %3521 = vmatprep.subr.bf16.mxu0 %v4516_v3 }
 0x61d   : > { %3522 = vmatpush3.bf16.msra.mxu0 %v4516_v3 }
 0x61e   : > { %3665 = vmatprep.subr.msk.bf16.mxu0 %vm266_vm0, %v4497_v1 }
 0x6d4   : > { %v3505_v16 = vpop.f32.mrf.mxu0 }
 0x6d5   : > { %v683_v25 = vmul.f32 0.5, %v3505_v16 }
 0x6d6   : > { %v666_v17 = vpop.f32.mrf.mxu0 }
 0x6d7   : > { %4061 = vtanh.f32 %v666_v17  ;;  %v681_v24 = vmul.f32 0.5, %v666_v17 }
 0x6d8   : > { %v3506_v18 = vpop.f32.mrf.mxu0  ;;  %4063 = vtanh.f32 %v3505_v16 }
 0x6d9   : > { %v684_v27 = vmul.f32 0.5, %v3506_v18 }
 0x6da   : > { %v669_v19 = vpop.f32.mrf.mxu0 }
 0x6db   : > { %4065 = vtanh.f32 %v669_v19  ;;  %v682_v26 = vmul.f32 0.5, %v669_v19 }
 0x6dc   : > { %4067 = vtanh.f32 %v3506_v18 }
 0x6dd   : > { %4069 = vtanh.f32 %v681_v24 }
 0x6de   : > { %4071 = vtanh.f32 %v683_v25 }
 0x6df   : > { %4073 = vtanh.f32 %v682_v26 }
 0x6e0   : > { %4075 = vtanh.f32 %v684_v27 }
 0x6e4   : > { %v4062_v20 = vpop.eup %4061 }
 0x6e5   : > { %709 = vrot.lane.b32.xlu0 %v4062_v20, %s4440_s29  ;;  %v4064_v21 = vpop.eup %4063 }
 0x6e8   : > { %v4066_v22 = vpop.eup %4065 }
 0x6e9   : > { %713 = vrot.lane.b32.xlu0 %v4064_v21, %s4440_s29  ;;  %711 = vrot.lane.b32.xlu1 %v4066_v22, %s4440_s29  ;;  %v4068_v23 = vpop.eup %4067 }
 0x6ea   : > { %v4070_v29 = vpop.eup %4069 }
 0x6eb   : > { %v4072_v30 = vpop.eup %4071  ;;  %v689_v31 = vmul.f32 0.5, %v4070_v29 }
 0x6ec   : > { %v4074_v32 = vpop.eup %4073  ;;  %v691_v35 = vmul.f32 0.5, %v4072_v30 }
 0x6ed   : > { %715 = vrot.lane.b32.xlu1 %v4068_v23, %s4440_s29  ;;  %v690_v60 = vmul.f32 0.5, %v4074_v32  ;;  %v693_v5 = vadd.f32 0.5, %v689_v31  ;;  %v4076_v6 = vpop.eup %4075 }
 0x6ee   : > { %v692_v11 = vmul.f32 0.5, %v4076_v6  ;;  %v695_v39 = vadd.f32 0.5, %v691_v35 }
 0x6ef   : > { %v694_v40 = vadd.f32 0.5, %v690_v60  ;;  %v701_v48 = vmul.f32 %v693_v5, %v4619_v28 }
 0x6f0   : > { %v696_v45 = vadd.f32 0.5, %v692_v11  ;;  %v703_v51 = vmul.f32 %v695_v39, %v4624_v33 }
 0x6f1   : > { %v702_v52 = vmul.f32 %v694_v40, %v4626_v34 }
 0x6f2   : > { %v704_v57 = vmul.f32 %v696_v45, %v4631_v36 }
 0x757   : > { %v710_v37 = vpop.permute.xlu0 %709 }
 0x758   : > { %v721_v38 = vmul.f32 %v710_v37, %v693_v5 }
 0x75a   : > { %729 = vrot.lane.b32.xlu0 %v721_v38, %s4439_s28 }
 0x75b   : > { %v714_v41 = vpop.permute.xlu0 %713  ;;  %v712_v42 = vpop.permute.xlu1 %711 }
 0x75c   : > { %v723_v43 = vmul.f32 %v714_v41, %v695_v39  ;;  %v722_v44 = vmul.f32 %v712_v42, %v694_v40 }
 0x75e   : > { %733 = vrot.lane.b32.xlu0 %v723_v43, %s4439_s28  ;;  %731 = vrot.lane.b32.xlu1 %v722_v44, %s4439_s28 }
 0x75f   : > { %v716_v46 = vpop.permute.xlu1 %715 }
 0x760   : > { %v724_v47 = vmul.f32 %v716_v46, %v696_v45 }
 0x762   : > { %735 = vrot.lane.b32.xlu1 %v724_v47, %s4439_s28 }
 0x7cc   : > { %v730_v49 = vpop.permute.xlu0 %729 }
 0x7cd   : > { %v4668_v50 = vadd.f32 %v730_v49, %v701_v48 }
 0x7cf   : > { %4077 = vtanh.f32 %v4668_v50 }
 0x7d0   : > { %v734_v53 = vpop.permute.xlu0 %733  ;;  %v732_v54 = vpop.permute.xlu1 %731 }
 0x7d1   : > { %v4673_v55 = vadd.f32 %v734_v53, %v703_v51  ;;  %v4675_v56 = vadd.f32 %v732_v54, %v702_v52 }
 0x7d3   : > { %4079 = vtanh.f32 %v4673_v55 }
 0x7d4   : > { %4081 = vtanh.f32 %v4675_v56  ;;  %v736_v28 = vpop.permute.xlu1 %735 }
 0x7d5   : > { %v4680_v58 = vadd.f32 %v736_v28, %v704_v57 }
 0x7d7   : > { %4083 = vtanh.f32 %v4680_v58 }
 0x7dc   : > { %v4078_v33 = vpop.eup %4077 }
 0x7dd   : > { %753 = vrot.lane.b32.xlu0 %v4078_v33, %s4440_s29 }
 0x7e0   : > { %v4080_v34 = vpop.eup %4079 }
 0x7e1   : > { %v4082_v59 = vpop.eup %4081  ;;  %757 = vrot.lane.b32.xlu0 %v4080_v34, %s4440_s29 }
 0x7e2   : > { %755 = vrot.lane.b32.xlu1 %v4082_v59, %s4440_s29 }
 0x7e4   : > { %v4084_v61 = vpop.eup %4083 }
 0x7e6   : > { %759 = vrot.lane.b32.xlu1 %v4084_v61, %s4440_s29 }
 0x7ea   : > { %3751 = vrot.lane.b32.xlu1 %v4529_v7, %s4443_s6 }
 0x7ee   : > { %3766 = vrot.lane.b32.xlu1 %v4538_v9, %s4443_s6  ;;  %s4451_s6 = smov 21  }
 0x84f   : > { %v754_v36 = vpop.permute.xlu0 %753 }
 0x850   : > { %v765_v63 = vmul.f32 %v754_v36, %v693_v5 }
 0x853   : > { %v758_v8 = vpop.permute.xlu0 %757 }
 0x854   : > { %v756_v62 = vpop.permute.xlu1 %755  ;;  %v767_v13 = vmul.f32 %v758_v8, %v695_v39 }
 0x855   : > { %v766_v4 = vmul.f32 %v756_v62, %v694_v40 }
 0x857   : > { %v3755_v10 = vpack.i.bf16 %v766_v4, %v765_v63 }
 0x858   : > { %v760_v12 = vpop.permute.xlu1 %759 }
 0x859   : > { %v768_v14 = vmul.f32 %v760_v12, %v696_v45  ;;  %3756 = vrot.lane.b32.xlu0 %v3755_v10, %s4439_s28 }
 0x85b   : > { %v3760_v15 = vpack.i.bf16 %v768_v14, %v767_v13 }
 0x85c   : > { %v3752_v16 = vpop.permute.xlu1 %3751 }
 0x85d   : > { %3761 = vrot.lane.b32.xlu0 %v3760_v15, %s4439_s28  ;;  %v3754_v17 = vunpack.i.h.bf16 %v3752_v16  ;;  %v3753_v18 = vunpack.i.l.bf16 %v3752_v16 }
 0x860   : > { %v3767_v20 = vpop.permute.xlu1 %3766 }
 0x861   : > { %v3769_v25 = vunpack.i.h.bf16 %v3767_v20  ;;  %v3768_v26 = vunpack.i.l.bf16 %v3767_v20 }
 0x8cb   : > { %v3757_v19 = vpop.permute.xlu0 %3756 }
 0x8cc   : > { %v3759_v21 = vunpack.i.h.bf16 %v3757_v19  ;;  %v3758_v22 = vunpack.i.l.bf16 %v3757_v19 }
 0x8ce   : > { %v798_v23 = vsel %vm232_vm1, %v3759_v21, %v3754_v17  ;;  %v797_v24 = vsel %vm232_vm1, %v3758_v22, %v3753_v18 }
 0x8cf   : > { %v3762_v27 = vpop.permute.xlu0 %3761  ;;  %v801_v29 = vsel %vm237_vm2, %v797_v24, 1.0  ;;  %v802_v30 = vsel %vm237_vm2, %v798_v23, 1.0 }
 0x8d0   : > { %v3764_v31 = vunpack.i.h.bf16 %v3762_v27  ;;  %v3763_v32 = vunpack.i.l.bf16 %v3762_v27  ;;  %v805_v35 = vpack.c.bf16 %v802_v30, %v801_v29 }
 0x8d2   : > { %v800_v60 = vsel %vm232_vm1, %v3764_v31, %v3769_v25  ;;  %v799_v5 = vsel %vm232_vm1, %v3763_v32, %v3768_v26  ;;  %3513 = vmatprep.mubr.msk.bf16.mxu1 %vm259_vm3, %v805_v35 }
 0x8d3   : > { %v804_v6 = vsel %vm237_vm2, %v800_v60, 1.0  ;;  %v803_v37 = vsel %vm237_vm2, %v799_v5, 1.0 }
 0x8d4   : > { %v806_v38 = vpack.c.bf16 %v804_v6, %v803_v37 }
 0x8d6   : > { %3514 = vmatmul.mubr.msk.bf16.vlgmr.msra.gmra.mxu1 %vm259_vm3, %v806_v38 }
 0x8d7   : > { %3528 = vmatpush3.bf16.msra.mxu1 %v4505_v2 }
 0x8d8   : > { %3529 = vmatprep.subr.bf16.mxu1 %v4492_v0 }
 0x8db   : > { %3530 = vmatpush3.bf16.msra.mxu1 %v4492_v0 }
 0x8dc   : > { %3531 = vmatprep.subr.bf16.mxu1 %v4516_v3 }
 0x8df   : > { %3532 = vmatpush3.bf16.msra.mxu1 %v4516_v3 }
 0x8e0   : > { %3666 = vmatprep.subr.msk.bf16.mxu1 %vm266_vm0, %v4497_v1 }
 0x996   : > { %v3515_v11 = vpop.f32.mrf.mxu1 }
 0x997   : > { %v864_v44 = vmul.f32 0.5, %v3515_v11 }
 0x998   : > { %v847_v39 = vpop.f32.mrf.mxu1 }
 0x999   : > { %4085 = vtanh.f32 %v847_v39  ;;  %v862_v1 = vmul.f32 0.5, %v847_v39 }
 0x99a   : > { %v3516_v40 = vpop.f32.mrf.mxu1  ;;  %4087 = vtanh.f32 %v3515_v11 }
 0x99b   : > { %v865_v46 = vmul.f32 0.5, %v3516_v40 }
 0x99c   : > { %v850_v41 = vpop.f32.mrf.mxu1 }
 0x99d   : > { %4089 = vtanh.f32 %v850_v41  ;;  %v863_v45 = vmul.f32 0.5, %v850_v41 }
 0x99e   : > { %4091 = vtanh.f32 %v3516_v40 }
 0x99f   : > { %4093 = vtanh.f32 %v862_v1 }
 0x9a0   : > { %4095 = vtanh.f32 %v864_v44 }
 0x9a1   : > { %4097 = vtanh.f32 %v863_v45 }
 0x9a2   : > { %4099 = vtanh.f32 %v865_v46 }
 0x9a6   : > { %v4086_v42 = vpop.eup %4085 }
 0x9a7   : > { %890 = vrot.lane.b32.xlu0 %v4086_v42, %s4440_s29  ;;  %v4088_v43 = vpop.eup %4087 }
 0x9aa   : > { %v4090_v0 = vpop.eup %4089 }
 0x9ab   : > { %894 = vrot.lane.b32.xlu0 %v4088_v43, %s4440_s29  ;;  %892 = vrot.lane.b32.xlu1 %v4090_v0, %s4440_s29  ;;  %v4092_v3 = vpop.eup %4091 }
 0x9ac   : > { %v4094_v47 = vpop.eup %4093 }
 0x9ad   : > { %v4096_v48 = vpop.eup %4095  ;;  %v870_v49 = vmul.f32 0.5, %v4094_v47 }
 0x9ae   : > { %v4098_v51 = vpop.eup %4097  ;;  %v872_v52 = vmul.f32 0.5, %v4096_v48 }
 0x9af   : > { %896 = vrot.lane.b32.xlu1 %v4092_v3, %s4440_s29  ;;  %v871_v53 = vmul.f32 0.5, %v4098_v51  ;;  %v874_v54 = vadd.f32 0.5, %v870_v49  ;;  %v4100_v57 = vpop.eup %4099 }
 0x9b0   : > { %v873_v34 = vmul.f32 0.5, %v4100_v57  ;;  %v876_v59 = vadd.f32 0.5, %v872_v52  ;;  %v4768_v57 = vld [vmem:[%s5391_s1 + $0x10] ss:$0 sps:$4 sm:$0x11]  }
 0x9b1   : > { %v875_v61 = vadd.f32 0.5, %v871_v53  ;;  %v882_v13 = vmul.f32 %v874_v54, %v4668_v50  ;;  %v4754_v53 = vld [vmem:[%s5391_s1 + $0x8] sm:$0xff]  }
 0x9b2   : > { %v877_v8 = vadd.f32 0.5, %v873_v34  ;;  %v884_v16 = vmul.f32 %v876_v59, %v4673_v55 }
 0x9b3   : > { %v883_v17 = vmul.f32 %v875_v61, %v4675_v56 }
 0x9b4   : > { %v885_v22 = vmul.f32 %v877_v8, %v4680_v58 }
 0xa19   : > { %v891_v28 = vpop.permute.xlu0 %890 }
 0xa1a   : > { %v902_v33 = vmul.f32 %v891_v28, %v874_v54 }
 0xa1c   : > { %910 = vrot.lane.b32.xlu0 %v902_v33, %s4439_s28 }
 0xa1d   : > { %v895_v36 = vpop.permute.xlu0 %894  ;;  %v893_v62 = vpop.permute.xlu1 %892 }
 0xa1e   : > { %v904_v63 = vmul.f32 %v895_v36, %v876_v59  ;;  %v903_v4 = vmul.f32 %v893_v62, %v875_v61 }
 0xa20   : > { %914 = vrot.lane.b32.xlu0 %v904_v63, %s4439_s28  ;;  %912 = vrot.lane.b32.xlu1 %v903_v4, %s4439_s28 }
 0xa21   : > { %v897_v10 = vpop.permute.xlu1 %896 }
 0xa22   : > { %v905_v12 = vmul.f32 %v897_v10, %v877_v8 }
 0xa24   : > { %916 = vrot.lane.b32.xlu1 %v905_v12, %s4439_s28 }
 0xa8e   : > { %v911_v14 = vpop.permute.xlu0 %910 }
 0xa8f   : > { %v4717_v15 = vadd.f32 %v911_v14, %v882_v13 }
 0xa91   : > { %4101 = vtanh.f32 %v4717_v15 }
 0xa92   : > { %v915_v18 = vpop.permute.xlu0 %914  ;;  %v913_v19 = vpop.permute.xlu1 %912 }
 0xa93   : > { %v4722_v20 = vadd.f32 %v915_v18, %v884_v16  ;;  %v4724_v21 = vadd.f32 %v913_v19, %v883_v17 }
 0xa95   : > { %4103 = vtanh.f32 %v4722_v20 }
 0xa96   : > { %4105 = vtanh.f32 %v4724_v21  ;;  %v917_v50 = vpop.permute.xlu1 %916 }
 0xa97   : > { %v4729_v23 = vadd.f32 %v917_v50, %v885_v22 }
 0xa99   : > { %4107 = vtanh.f32 %v4729_v23 }
 0xa9e   : > { %v4102_v55 = vpop.eup %4101 }
 0xa9f   : > { %934 = vrot.lane.b32.xlu0 %v4102_v55, %s4440_s29 }
 0xaa2   : > { %v4104_v56 = vpop.eup %4103 }
 0xaa3   : > { %v4106_v24 = vpop.eup %4105  ;;  %938 = vrot.lane.b32.xlu0 %v4104_v56, %s4440_s29 }
 0xaa4   : > { %936 = vrot.lane.b32.xlu1 %v4106_v24, %s4440_s29 }
 0xaa6   : > { %v4108_v25 = vpop.eup %4107 }
 0xaa8   : > { %940 = vrot.lane.b32.xlu1 %v4108_v25, %s4440_s29 }
 0xaac   : > { %3771 = vrot.lane.b32.xlu1 %v4529_v7, %s4444_s7 }
 0xab0   : > { %3786 = vrot.lane.b32.xlu1 %v4538_v9, %s4444_s7  ;;  %s4452_s7 = smov 20  }
 0xb11   : > { %v935_v58 = vpop.permute.xlu0 %934 }
 0xb12   : > { %v946_v27 = vmul.f32 %v935_v58, %v874_v54  ;;  %v4761_v54 = vld [vmem:[%s5391_s1] sm:$0xff]  }
 0xb15   : > { %v939_v30 = vpop.permute.xlu0 %938 }
 0xb16   : > { %v937_v26 = vpop.permute.xlu1 %936  ;;  %v948_v35 = vmul.f32 %v939_v30, %v876_v59 }
 0xb17   : > { %v947_v29 = vmul.f32 %v937_v26, %v875_v61 }
 0xb19   : > { %v3775_v31 = vpack.i.bf16 %v947_v29, %v946_v27 }
 0xb1a   : > { %v941_v32 = vpop.permute.xlu1 %940 }
 0xb1b   : > { %v949_v60 = vmul.f32 %v941_v32, %v877_v8  ;;  %3776 = vrot.lane.b32.xlu0 %v3775_v31, %s4439_s28 }
 0xb1d   : > { %v3780_v5 = vpack.i.bf16 %v949_v60, %v948_v35 }
 0xb1e   : > { %v3772_v6 = vpop.permute.xlu1 %3771 }
 0xb1f   : > { %3781 = vrot.lane.b32.xlu0 %v3780_v5, %s4439_s28  ;;  %v3774_v37 = vunpack.i.h.bf16 %v3772_v6  ;;  %v3773_v38 = vunpack.i.l.bf16 %v3772_v6 }
 0xb22   : > { %v3787_v11 = vpop.permute.xlu1 %3786 }
 0xb23   : > { %v3789_v42 = vunpack.i.h.bf16 %v3787_v11  ;;  %v3788_v43 = vunpack.i.l.bf16 %v3787_v11 }
 0xb8d   : > { %v3777_v7 = vpop.permute.xlu0 %3776 }
 0xb8e   : > { %v3779_v9 = vunpack.i.h.bf16 %v3777_v7  ;;  %v3778_v39 = vunpack.i.l.bf16 %v3777_v7 }
 0xb90   : > { %v979_v40 = vsel %vm232_vm1, %v3779_v9, %v3774_v37  ;;  %v978_v41 = vsel %vm232_vm1, %v3778_v39, %v3773_v38 }
 0xb91   : > { %v3782_v0 = vpop.permute.xlu0 %3781  ;;  %v982_v3 = vsel %vm237_vm2, %v978_v41, 1.0  ;;  %v983_v1 = vsel %vm237_vm2, %v979_v40, 1.0 }
 0xb92   : > { %v3784_v44 = vunpack.i.h.bf16 %v3782_v0  ;;  %v3783_v45 = vunpack.i.l.bf16 %v3782_v0  ;;  %v986_v46 = vpack.c.bf16 %v983_v1, %v982_v3  ;;  %v4417_v0 = vld [vmem:[%s4524_s27 + $0x8] sm:$0xff]  ;;  %v4418_v1 = vld [vmem:[%s4524_s27 + $0x10] sm:$0xff] }
 0xb94   : > { %v981_v47 = vsel %vm232_vm1, %v3784_v44, %v3789_v42  ;;  %v980_v48 = vsel %vm232_vm1, %v3783_v45, %v3788_v43  ;;  %3523 = vmatprep.mubr.msk.bf16.mxu0 %vm259_vm3, %v986_v46  ;;  %v4419_v44 = vld [vmem:[%s4524_s27 + $0x18] sm:$0xff] }
 0xb95   : > { %v985_v49 = vsel %vm237_vm2, %v981_v47, 1.0  ;;  %v984_v51 = vsel %vm237_vm2, %v980_v48, 1.0  ;;  %v4807_v45 = vpack.i.bf16 %v4419_v44, %v4418_v1 }
 0xb96   : > { %v987_v52 = vpack.c.bf16 %v985_v49, %v984_v51 }
 0xb98   : > { %3524 = vmatmul.mubr.msk.bf16.vlgmr.msra.gmra.mxu0 %vm259_vm3, %v987_v52 }
 0xb99   : > { %3538 = vmatpush3.bf16.msra.mxu0 %v4505_v2 }
 0xb9a   : > { %3539 = vmatprep.subr.bf16.mxu0 %v4754_v53 }
 0xb9d   : > { %3540 = vmatpush3.bf16.msra.mxu0 %v4754_v53 }
 0xb9e   : > { %3541 = vmatprep.subr.bf16.mxu0 %v4761_v54 }
 0xba1   : > { %3542 = vmatpush3.bf16.msra.mxu0 %v4761_v54 }
 0xba2   : > { %3667 = vmatprep.subr.msk.bf16.mxu0 %vm266_vm0, %v4768_v57 }
 0xc58   : > { %v3525_v28 = vpop.f32.mrf.mxu0 }
 0xc59   : > { %v1045_v8 = vmul.f32 0.5, %v3525_v28 }
 0xc5a   : > { %v1028_v33 = vpop.f32.mrf.mxu0 }
 0xc5b   : > { %4109 = vtanh.f32 %v1028_v33  ;;  %v1043_v4 = vmul.f32 0.5, %v1028_v33 }
 0xc5c   : > { %v3526_v34 = vpop.f32.mrf.mxu0  ;;  %4111 = vtanh.f32 %v3525_v28 }
 0xc5d   : > { %v1046_v12 = vmul.f32 0.5, %v3526_v34 }
 0xc5e   : > { %v1031_v59 = vpop.f32.mrf.mxu0 }
 0xc5f   : > { %4113 = vtanh.f32 %v1031_v59  ;;  %v1044_v10 = vmul.f32 0.5, %v1031_v59 }
 0xc60   : > { %4115 = vtanh.f32 %v3526_v34 }
 0xc61   : > { %4117 = vtanh.f32 %v1043_v4 }
 0xc62   : > { %4119 = vtanh.f32 %v1045_v8 }
 0xc63   : > { %4121 = vtanh.f32 %v1044_v10 }
 0xc64   : > { %4123 = vtanh.f32 %v1046_v12 }
 0xc68   : > { %v4110_v61 = vpop.eup %4109 }
 0xc69   : > { %1071 = vrot.lane.b32.xlu0 %v4110_v61, %s4440_s29  ;;  %v4112_v36 = vpop.eup %4111 }
 0xc6c   : > { %v4114_v62 = vpop.eup %4113 }
 0xc6d   : > { %1075 = vrot.lane.b32.xlu0 %v4112_v36, %s4440_s29  ;;  %1073 = vrot.lane.b32.xlu1 %v4114_v62, %s4440_s29  ;;  %v4116_v63 = vpop.eup %4115 }
 0xc6e   : > { %v4118_v13 = vpop.eup %4117 }
 0xc6f   : > { %v4120_v14 = vpop.eup %4119  ;;  %v1051_v16 = vmul.f32 0.5, %v4118_v13 }
 0xc70   : > { %v4122_v17 = vpop.eup %4121  ;;  %v1053_v18 = vmul.f32 0.5, %v4120_v14 }
 0xc71   : > { %1077 = vrot.lane.b32.xlu1 %v4116_v63, %s4440_s29  ;;  %v1052_v19 = vmul.f32 0.5, %v4122_v17  ;;  %v1055_v22 = vadd.f32 0.5, %v1051_v16  ;;  %v4124_v50 = vpop.eup %4123 }
 0xc72   : > { %v1054_v24 = vmul.f32 0.5, %v4124_v50  ;;  %v1057_v25 = vadd.f32 0.5, %v1053_v18 }
 0xc73   : > { %v1056_v58 = vadd.f32 0.5, %v1052_v19  ;;  %v1063_v60 = vmul.f32 %v1055_v22, %v4717_v15 }
 0xc74   : > { %v1058_v31 = vadd.f32 0.5, %v1054_v24  ;;  %v1065_v37 = vmul.f32 %v1057_v25, %v4722_v20 }
 0xc75   : > { %v1064_v38 = vmul.f32 %v1056_v58, %v4724_v21 }
 0xc76   : > { %v1066_v15 = vmul.f32 %v1058_v31, %v4729_v23  ;;  %v4416_v23 = vld [vmem:[%s4524_s27] sm:$0xff] }
 0xc77   : > { %v4802_v3 = vpack.i.bf16 %v4417_v0, %v4416_v23 }
 0xcdb   : > { %v1072_v55 = vpop.permute.xlu0 %1071 }
 0xcdc   : > { %v1083_v56 = vmul.f32 %v1072_v55, %v1055_v22 }
 0xcde   : > { %1091 = vrot.lane.b32.xlu0 %v1083_v56, %s4439_s28 }
 0xcdf   : > { %v1076_v26 = vpop.permute.xlu0 %1075  ;;  %v1074_v27 = vpop.permute.xlu1 %1073 }
 0xce0   : > { %v1085_v29 = vmul.f32 %v1076_v26, %v1057_v25  ;;  %v1084_v30 = vmul.f32 %v1074_v27, %v1056_v58 }
 0xce2   : > { %1095 = vrot.lane.b32.xlu0 %v1085_v29, %s4439_s28  ;;  %1093 = vrot.lane.b32.xlu1 %v1084_v30, %s4439_s28 }
 0xce3   : > { %v1078_v32 = vpop.permute.xlu1 %1077 }
 0xce4   : > { %v1086_v35 = vmul.f32 %v1078_v32, %v1058_v31 }
 0xce6   : > { %1097 = vrot.lane.b32.xlu1 %v1086_v35, %s4439_s28 }
 0xd50   : > { %v1092_v5 = vpop.permute.xlu0 %1091 }
 0xd51   : > { %v4781_v6 = vadd.f32 %v1092_v5, %v1063_v60 }
 0xd53   : > { %4125 = vtanh.f32 %v4781_v6 }
 0xd54   : > { %v1096_v7 = vpop.permute.xlu0 %1095  ;;  %v1094_v11 = vpop.permute.xlu1 %1093 }
 0xd55   : > { %v4786_v9 = vadd.f32 %v1096_v7, %v1065_v37  ;;  %v4788_v39 = vadd.f32 %v1094_v11, %v1064_v38 }
 0xd57   : > { %4127 = vtanh.f32 %v4786_v9 }
 0xd58   : > { %4129 = vtanh.f32 %v4788_v39  ;;  %v1098_v40 = vpop.permute.xlu1 %1097 }
 0xd59   : > { %v4793_v41 = vadd.f32 %v1098_v40, %v1066_v15 }
 0xd5b   : > { %4131 = vtanh.f32 %v4793_v41 }
 0xd60   : > { %v4126_v20 = vpop.eup %4125 }
 0xd61   : > { %1115 = vrot.lane.b32.xlu0 %v4126_v20, %s4440_s29 }
 0xd64   : > { %v4128_v21 = vpop.eup %4127 }
 0xd65   : > { %v4130_v42 = vpop.eup %4129  ;;  %1119 = vrot.lane.b32.xlu0 %v4128_v21, %s4440_s29 }
 0xd66   : > { %1117 = vrot.lane.b32.xlu1 %v4130_v42, %s4440_s29 }
 0xd68   : > { %v4132_v43 = vpop.eup %4131 }
 0xd6a   : > { %1121 = vrot.lane.b32.xlu1 %v4132_v43, %s4440_s29 }
 0xd6e   : > { %3791 = vrot.lane.b32.xlu1 %v4802_v3, %s4445_s14 }
 0xd72   : > { %3806 = vrot.lane.b32.xlu1 %v4807_v45, %s4445_s14 }
 0xdd3   : > { %v1116_v46 = vpop.permute.xlu0 %1115 }
 0xdd4   : > { %v1127_v48 = vmul.f32 %v1116_v46, %v1055_v22 }
 0xdd7   : > { %v1120_v51 = vpop.permute.xlu0 %1119 }
 0xdd8   : > { %v1118_v47 = vpop.permute.xlu1 %1117  ;;  %v1129_v33 = vmul.f32 %v1120_v51, %v1057_v25 }
 0xdd9   : > { %v1128_v49 = vmul.f32 %v1118_v47, %v1056_v58 }
 0xddb   : > { %v3795_v52 = vpack.i.bf16 %v1128_v49, %v1127_v48 }
 0xddc   : > { %v1122_v28 = vpop.permute.xlu1 %1121 }
 0xddd   : > { %v1130_v34 = vmul.f32 %v1122_v28, %v1058_v31  ;;  %3796 = vrot.lane.b32.xlu0 %v3795_v52, %s4439_s28 }
 0xddf   : > { %v3800_v59 = vpack.i.bf16 %v1130_v34, %v1129_v33 }
 0xde0   : > { %v3792_v61 = vpop.permute.xlu1 %3791 }
 0xde1   : > { %3801 = vrot.lane.b32.xlu0 %v3800_v59, %s4439_s28  ;;  %v3794_v36 = vunpack.i.h.bf16 %v3792_v61  ;;  %v3793_v62 = vunpack.i.l.bf16 %v3792_v61 }
 0xde4   : > { %v3807_v4 = vpop.permute.xlu1 %3806 }
 0xde5   : > { %v3809_v14 = vunpack.i.h.bf16 %v3807_v4  ;;  %v3808_v16 = vunpack.i.l.bf16 %v3807_v4 }
 0xe4f   : > { %v3797_v63 = vpop.permute.xlu0 %3796 }
 0xe50   : > { %v3799_v8 = vunpack.i.h.bf16 %v3797_v63  ;;  %v3798_v10 = vunpack.i.l.bf16 %v3797_v63 }
 0xe52   : > { %v1160_v12 = vsel %vm232_vm1, %v3799_v8, %v3794_v36  ;;  %v1159_v13 = vsel %vm232_vm1, %v3798_v10, %v3793_v62 }
 0xe53   : > { %v3802_v17 = vpop.permute.xlu0 %3801  ;;  %v1163_v18 = vsel %vm237_vm2, %v1159_v13, 1.0  ;;  %v1164_v19 = vsel %vm237_vm2, %v1160_v12, 1.0 }
 0xe54   : > { %v3804_v22 = vunpack.i.h.bf16 %v3802_v17  ;;  %v3803_v50 = vunpack.i.l.bf16 %v3802_v17  ;;  %v1167_v55 = vpack.c.bf16 %v1164_v19, %v1163_v18 }
 0xe56   : > { %v1162_v56 = vsel %vm232_vm1, %v3804_v22, %v3809_v14  ;;  %v1161_v24 = vsel %vm232_vm1, %v3803_v50, %v3808_v16  ;;  %3533 = vmatprep.mubr.msk.bf16.mxu1 %vm259_vm3, %v1167_v55 }
 0xe57   : > { %v1166_v25 = vsel %vm237_vm2, %v1162_v56, 1.0  ;;  %v1165_v58 = vsel %vm237_vm2, %v1161_v24, 1.0 }
 0xe58   : > { %v1168_v26 = vpack.c.bf16 %v1166_v25, %v1165_v58 }
 0xe5a   : > { %3534 = vmatmul.mubr.msk.bf16.vlgmr.msra.gmra.mxu1 %vm259_vm3, %v1168_v26 }
 0xe5b   : > { %3548 = vmatpush3.bf16.msra.mxu1 %v4505_v2 }
 0xe5c   : > { %3549 = vmatprep.subr.bf16.mxu1 %v4754_v53 }
 0xe5f   : > { %3550 = vmatpush3.bf16.msra.mxu1 %v4754_v53 }
 0xe60   : > { %3551 = vmatprep.subr.bf16.mxu1 %v4761_v54 }
 0xe63   : > { %3552 = vmatpush3.bf16.msra.mxu1 %v4761_v54 }
 0xe64   : > { %3668 = vmatprep.subr.msk.bf16.mxu1 %vm266_vm0, %v4768_v57 }
 0xf1a   : > { %v3535_v27 = vpop.f32.mrf.mxu1 }
 0xf1b   : > { %v1226_v38 = vmul.f32 0.5, %v3535_v27 }
 0xf1c   : > { %v1209_v29 = vpop.f32.mrf.mxu1 }
 0xf1d   : > { %4133 = vtanh.f32 %v1209_v29  ;;  %v1224_v37 = vmul.f32 0.5, %v1209_v29 }
 0xf1e   : > { %v3536_v30 = vpop.f32.mrf.mxu1  ;;  %4135 = vtanh.f32 %v3535_v27 }
 0xf1f   : > { %v1227_v11 = vmul.f32 0.5, %v3536_v30 }
 0xf20   : > { %v1212_v31 = vpop.f32.mrf.mxu1 }
 0xf21   : > { %4137 = vtanh.f32 %v1212_v31  ;;  %v1225_v7 = vmul.f32 0.5, %v1212_v31 }
 0xf22   : > { %4139 = vtanh.f32 %v3536_v30 }
 0xf23   : > { %4141 = vtanh.f32 %v1224_v37 }
 0xf24   : > { %4143 = vtanh.f32 %v1226_v38 }
 0xf25   : > { %4145 = vtanh.f32 %v1225_v7 }
 0xf26   : > { %4147 = vtanh.f32 %v1227_v11 }
 0xf2a   : > { %v4134_v32 = vpop.eup %4133 }
 0xf2b   : > { %1252 = vrot.lane.b32.xlu0 %v4134_v32, %s4440_s29  ;;  %v4136_v35 = vpop.eup %4135 }
 0xf2e   : > { %v4138_v60 = vpop.eup %4137 }
 0xf2f   : > { %1256 = vrot.lane.b32.xlu0 %v4136_v35, %s4440_s29  ;;  %1254 = vrot.lane.b32.xlu1 %v4138_v60, %s4440_s29  ;;  %v4140_v5 = vpop.eup %4139 }
 0xf30   : > { %v4142_v15 = vpop.eup %4141 }
 0xf31   : > { %v4144_v40 = vpop.eup %4143  ;;  %v1232_v20 = vmul.f32 0.5, %v4142_v15 }
 0xf32   : > { %v4146_v21 = vpop.eup %4145  ;;  %v1234_v42 = vmul.f32 0.5, %v4144_v40 }
 0xf33   : > { %1258 = vrot.lane.b32.xlu1 %v4140_v5, %s4440_s29  ;;  %v1233_v43 = vmul.f32 0.5, %v4146_v21  ;;  %v1236_v23 = vadd.f32 0.5, %v1232_v20  ;;  %v4148_v0 = vpop.eup %4147 }
 0xf34   : > { %v1235_v46 = vmul.f32 0.5, %v4148_v0  ;;  %v1238_v47 = vadd.f32 0.5, %v1234_v42 }
 0xf35   : > { %v1237_v48 = vadd.f32 0.5, %v1233_v43  ;;  %v1244_v61 = vmul.f32 %v1236_v23, %v4781_v6 }
 0xf36   : > { %v1239_v33 = vadd.f32 0.5, %v1235_v46  ;;  %v1246_v63 = vmul.f32 %v1238_v47, %v4786_v9 }
 0xf37   : > { %v1245_v4 = vmul.f32 %v1237_v48, %v4788_v39 }
 0xf38   : > { %v1247_v14 = vmul.f32 %v1239_v33, %v4793_v41 }
 0xf9d   : > { %v1253_v1 = vpop.permute.xlu0 %1252 }
 0xf9e   : > { %v1264_v44 = vmul.f32 %v1253_v1, %v1236_v23 }
 0xfa0   : > { %1272 = vrot.lane.b32.xlu0 %v1264_v44, %s4439_s28 }
 0xfa1   : > { %v1257_v49 = vpop.permute.xlu0 %1256  ;;  %v1255_v51 = vpop.permute.xlu1 %1254 }
 0xfa2   : > { %v1266_v52 = vmul.f32 %v1257_v49, %v1238_v47  ;;  %v1265_v28 = vmul.f32 %v1255_v51, %v1237_v48 }
 0xfa4   : > { %1276 = vrot.lane.b32.xlu0 %v1266_v52, %s4439_s28  ;;  %1274 = vrot.lane.b32.xlu1 %v1265_v28, %s4439_s28 }
 0xfa5   : > { %v1259_v34 = vpop.permute.xlu1 %1258 }
 0xfa6   : > { %v1267_v59 = vmul.f32 %v1259_v34, %v1239_v33 }
 0xfa8   : > { %1278 = vrot.lane.b32.xlu1 %v1267_v59, %s4439_s28 }
0x1012   : > { %v1273_v36 = vpop.permute.xlu0 %1272 }
0x1013   : > { %v4838_v62 = vadd.f32 %v1273_v36, %v1244_v61 }
0x1015   : > { %4149 = vtanh.f32 %v4838_v62 }
0x1016   : > { %v1277_v8 = vpop.permute.xlu0 %1276  ;;  %v1275_v10 = vpop.permute.xlu1 %1274 }
0x1017   : > { %v4843_v12 = vadd.f32 %v1277_v8, %v1246_v63  ;;  %v4845_v13 = vadd.f32 %v1275_v10, %v1245_v4 }
0x1019   : > { %4151 = vtanh.f32 %v4843_v12 }
0x101a   : > { %4153 = vtanh.f32 %v4845_v13  ;;  %v1279_v6 = vpop.permute.xlu1 %1278 }
0x101b   : > { %v4850_v16 = vadd.f32 %v1279_v6, %v1247_v14 }
0x101d   : > { %4155 = vtanh.f32 %v4850_v16 }
0x1022   : > { %v4150_v9 = vpop.eup %4149 }
0x1023   : > { %1296 = vrot.lane.b32.xlu0 %v4150_v9, %s4440_s29 }
0x1026   : > { %v4152_v39 = vpop.eup %4151 }
0x1027   : > { %v4154_v17 = vpop.eup %4153  ;;  %1300 = vrot.lane.b32.xlu0 %v4152_v39, %s4440_s29 }
0x1028   : > { %1298 = vrot.lane.b32.xlu1 %v4154_v17, %s4440_s29 }
0x102a   : > { %v4156_v18 = vpop.eup %4155 }
0x102c   : > { %1302 = vrot.lane.b32.xlu1 %v4156_v18, %s4440_s29 }
0x1030   : > { %3811 = vrot.lane.b32.xlu1 %v4802_v3, %s4446_s16 }
0x1034   : > { %3826 = vrot.lane.b32.xlu1 %v4807_v45, %s4446_s16 }
0x1095   : > { %v1297_v41 = vpop.permute.xlu0 %1296 }
0x1096   : > { %v1308_v22 = vmul.f32 %v1297_v41, %v1236_v23 }
0x1099   : > { %v1301_v55 = vpop.permute.xlu0 %1300 }
0x109a   : > { %v1299_v19 = vpop.permute.xlu1 %1298  ;;  %v1310_v25 = vmul.f32 %v1301_v55, %v1238_v47 }
0x109b   : > { %v1309_v50 = vmul.f32 %v1299_v19, %v1237_v48 }
0x109d   : > { %v3815_v56 = vpack.i.bf16 %v1309_v50, %v1308_v22 }
0x109e   : > { %v1303_v24 = vpop.permute.xlu1 %1302 }
0x109f   : > { %v1311_v58 = vmul.f32 %v1303_v24, %v1239_v33  ;;  %3816 = vrot.lane.b32.xlu0 %v3815_v56, %s4439_s28 }
0x10a1   : > { %v3820_v26 = vpack.i.bf16 %v1311_v58, %v1310_v25 }
0x10a2   : > { %v3812_v27 = vpop.permute.xlu1 %3811 }
0x10a3   : > { %3821 = vrot.lane.b32.xlu0 %v3820_v26, %s4439_s28  ;;  %v3814_v29 = vunpack.i.h.bf16 %v3812_v27  ;;  %v3813_v30 = vunpack.i.l.bf16 %v3812_v27 }
0x10a6   : > { %v3827_v32 = vpop.permute.xlu1 %3826 }
0x10a7   : > { %v3829_v38 = vunpack.i.h.bf16 %v3827_v32  ;;  %v3828_v7 = vunpack.i.l.bf16 %v3827_v32 }
0x1111   : > { %v3817_v31 = vpop.permute.xlu0 %3816 }
0x1112   : > { %v3819_v35 = vunpack.i.h.bf16 %v3817_v31  ;;  %v3818_v60 = vunpack.i.l.bf16 %v3817_v31 }
0x1114   : > { %v1341_v5 = vsel %vm232_vm1, %v3819_v35, %v3814_v29  ;;  %v1340_v37 = vsel %vm232_vm1, %v3818_v60, %v3813_v30 }
0x1115   : > { %v3822_v11 = vpop.permute.xlu0 %3821  ;;  %v1344_v15 = vsel %vm237_vm2, %v1340_v37, 1.0  ;;  %v1345_v40 = vsel %vm237_vm2, %v1341_v5, 1.0 }
0x1116   : > { %v3824_v20 = vunpack.i.h.bf16 %v3822_v11  ;;  %v3823_v21 = vunpack.i.l.bf16 %v3822_v11  ;;  %v1348_v42 = vpack.c.bf16 %v1345_v40, %v1344_v15 }
0x1118   : > { %v1343_v43 = vsel %vm232_vm1, %v3824_v20, %v3829_v38  ;;  %v1342_v23 = vsel %vm232_vm1, %v3823_v21, %v3828_v7  ;;  %3543 = vmatprep.mubr.msk.bf16.mxu0 %vm259_vm3, %v1348_v42 }
0x1119   : > { %v1347_v0 = vsel %vm237_vm2, %v1343_v43, 1.0  ;;  %v1346_v1 = vsel %vm237_vm2, %v1342_v23, 1.0 }
0x111a   : > { %v1349_v44 = vpack.c.bf16 %v1347_v0, %v1346_v1 }
0x111c   : > { %3544 = vmatmul.mubr.msk.bf16.vlgmr.msra.gmra.mxu0 %vm259_vm3, %v1349_v44 }
0x111d   : > { %3558 = vmatpush3.bf16.msra.mxu0 %v4505_v2 }
0x111e   : > { %3559 = vmatprep.subr.bf16.mxu0 %v4754_v53 }
0x1121   : > { %3560 = vmatpush3.bf16.msra.mxu0 %v4754_v53 }
0x1122   : > { %3561 = vmatprep.subr.bf16.mxu0 %v4761_v54 }
0x1125   : > { %3562 = vmatpush3.bf16.msra.mxu0 %v4761_v54 }
0x1126   : > { %3669 = vmatprep.subr.msk.bf16.mxu0 %vm266_vm0, %v4768_v57 }
0x11dc   : > { %v3545_v46 = vpop.f32.mrf.mxu0 }
0x11dd   : > { %v1407_v59 = vmul.f32 0.5, %v3545_v46 }
0x11de   : > { %v1390_v47 = vpop.f32.mrf.mxu0 }
0x11df   : > { %4157 = vtanh.f32 %v1390_v47  ;;  %v1405_v34 = vmul.f32 0.5, %v1390_v47 }
0x11e0   : > { %v3546_v48 = vpop.f32.mrf.mxu0  ;;  %4159 = vtanh.f32 %v3545_v46 }
0x11e1   : > { %v1408_v36 = vmul.f32 0.5, %v3546_v48 }
0x11e2   : > { %v1393_v49 = vpop.f32.mrf.mxu0 }
0x11e3   : > { %4161 = vtanh.f32 %v1393_v49  ;;  %v1406_v61 = vmul.f32 0.5, %v1393_v49 }
0x11e4   : > { %4163 = vtanh.f32 %v3546_v48 }
0x11e5   : > { %4165 = vtanh.f32 %v1405_v34 }
0x11e6   : > { %4167 = vtanh.f32 %v1407_v59 }
0x11e7   : > { %4169 = vtanh.f32 %v1406_v61 }
0x11e8   : > { %4171 = vtanh.f32 %v1408_v36 }
0x11ec   : > { %v4158_v51 = vpop.eup %4157 }
0x11ed   : > { %1433 = vrot.lane.b32.xlu0 %v4158_v51, %s4440_s29  ;;  %v4160_v52 = vpop.eup %4159 }
0x11f0   : > { %v4162_v28 = vpop.eup %4161 }
0x11f1   : > { %1437 = vrot.lane.b32.xlu0 %v4160_v52, %s4440_s29  ;;  %1435 = vrot.lane.b32.xlu1 %v4162_v28, %s4440_s29  ;;  %v4164_v33 = vpop.eup %4163 }
0x11f2   : > { %v4166_v63 = vpop.eup %4165 }
0x11f3   : > { %v4168_v4 = vpop.eup %4167  ;;  %v1413_v8 = vmul.f32 0.5, %v4166_v63 }
0x11f4   : > { %v4170_v10 = vpop.eup %4169  ;;  %v1415_v14 = vmul.f32 0.5, %v4168_v4 }
0x11f5   : > { %1439 = vrot.lane.b32.xlu1 %v4164_v33, %s4440_s29  ;;  %v1414_v6 = vmul.f32 0.5, %v4170_v10  ;;  %v1417_v9 = vadd.f32 0.5, %v1413_v8  ;;  %v4172_v39 = vpop.eup %4171 }
0x11f6   : > { %v1416_v41 = vmul.f32 0.5, %v4172_v39  ;;  %v1419_v19 = vadd.f32 0.5, %v1415_v14 }
0x11f7   : > { %v1418_v22 = vadd.f32 0.5, %v1414_v6  ;;  %v1425_v27 = vmul.f32 %v1417_v9, %v4838_v62 }
0x11f8   : > { %v1420_v25 = vadd.f32 0.5, %v1416_v41  ;;  %v1427_v31 = vmul.f32 %v1419_v19, %v4843_v12 }
0x11f9   : > { %v1426_v32 = vmul.f32 %v1418_v22, %v4845_v13 }
0x11fa   : > { %v1428_v38 = vmul.f32 %v1420_v25, %v4850_v16 }
0x125f   : > { %v1434_v17 = vpop.permute.xlu0 %1433 }
0x1260   : > { %v1445_v18 = vmul.f32 %v1434_v17, %v1417_v9 }
0x1262   : > { %1453 = vrot.lane.b32.xlu0 %v1445_v18, %s4439_s28 }
0x1263   : > { %v1438_v50 = vpop.permute.xlu0 %1437  ;;  %v1436_v55 = vpop.permute.xlu1 %1435 }
0x1264   : > { %v1447_v56 = vmul.f32 %v1438_v50, %v1419_v19  ;;  %v1446_v24 = vmul.f32 %v1436_v55, %v1418_v22 }
0x1266   : > { %1457 = vrot.lane.b32.xlu0 %v1447_v56, %s4439_s28  ;;  %1455 = vrot.lane.b32.xlu1 %v1446_v24, %s4439_s28 }
0x1267   : > { %v1440_v58 = vpop.permute.xlu1 %1439 }
0x1268   : > { %v1448_v26 = vmul.f32 %v1440_v58, %v1420_v25 }
0x126a   : > { %1459 = vrot.lane.b32.xlu1 %v1448_v26, %s4439_s28 }
0x12d4   : > { %v1454_v29 = vpop.permute.xlu0 %1453 }
0x12d5   : > { %v4887_v30 = vadd.f32 %v1454_v29, %v1425_v27 }
0x12d7   : > { %4173 = vtanh.f32 %v4887_v30 }
0x12d8   : > { %v1458_v35 = vpop.permute.xlu0 %1457  ;;  %v1456_v60 = vpop.permute.xlu1 %1455 }
0x12d9   : > { %v4892_v5 = vadd.f32 %v1458_v35, %v1427_v31  ;;  %v4894_v37 = vadd.f32 %v1456_v60, %v1426_v32 }
0x12db   : > { %4175 = vtanh.f32 %v4892_v5 }
0x12dc   : > { %4177 = vtanh.f32 %v4894_v37  ;;  %v1460_v62 = vpop.permute.xlu1 %1459 }
0x12dd   : > { %v4899_v7 = vadd.f32 %v1460_v62, %v1428_v38 }
0x12df   : > { %4179 = vtanh.f32 %v4899_v7 }
0x12e4   : > { %v4174_v12 = vpop.eup %4173 }
0x12e5   : > { %1477 = vrot.lane.b32.xlu0 %v4174_v12, %s4440_s29 }
0x12e8   : > { %v4176_v13 = vpop.eup %4175 }
0x12e9   : > { %v4178_v11 = vpop.eup %4177  ;;  %1481 = vrot.lane.b32.xlu0 %v4176_v13, %s4440_s29 }
0x12ea   : > { %1479 = vrot.lane.b32.xlu1 %v4178_v11, %s4440_s29 }
0x12ec   : > { %v4180_v15 = vpop.eup %4179 }
0x12ee   : > { %1483 = vrot.lane.b32.xlu1 %v4180_v15, %s4440_s29 }
0x12f2   : > { %3831 = vrot.lane.b32.xlu1 %v4802_v3, %s4447_s18 }
0x12f6   : > { %3846 = vrot.lane.b32.xlu1 %v4807_v45, %s4447_s18 }
0x1357   : > { %v1478_v16 = vpop.permute.xlu0 %1477 }
0x1358   : > { %v1489_v20 = vmul.f32 %v1478_v16, %v1417_v9 }
0x135b   : > { %v1482_v42 = vpop.permute.xlu0 %1481 }
0x135c   : > { %v1480_v40 = vpop.permute.xlu1 %1479  ;;  %v1491_v0 = vmul.f32 %v1482_v42, %v1419_v19 }
0x135d   : > { %v1490_v21 = vmul.f32 %v1480_v40, %v1418_v22 }
0x135f   : > { %v3835_v43 = vpack.i.bf16 %v1490_v21, %v1489_v20 }
0x1360   : > { %v1484_v23 = vpop.permute.xlu1 %1483 }
0x1361   : > { %v1492_v1 = vmul.f32 %v1484_v23, %v1420_v25  ;;  %3836 = vrot.lane.b32.xlu0 %v3835_v43, %s4439_s28 }
0x1363   : > { %v3840_v44 = vpack.i.bf16 %v1492_v1, %v1491_v0 }
0x1364   : > { %v3832_v46 = vpop.permute.xlu1 %3831 }
0x1365   : > { %3841 = vrot.lane.b32.xlu0 %v3840_v44, %s4439_s28  ;;  %v3834_v47 = vunpack.i.h.bf16 %v3832_v46  ;;  %v3833_v48 = vunpack.i.l.bf16 %v3832_v46 }
0x1368   : > { %v3847_v51 = vpop.permute.xlu1 %3846 }
0x1369   : > { %v3849_v59 = vunpack.i.h.bf16 %v3847_v51  ;;  %v3848_v61 = vunpack.i.l.bf16 %v3847_v51 }
0x13d3   : > { %v3837_v49 = vpop.permute.xlu0 %3836 }
0x13d4   : > { %v3839_v52 = vunpack.i.h.bf16 %v3837_v49  ;;  %v3838_v28 = vunpack.i.l.bf16 %v3837_v49 }
0x13d6   : > { %v1522_v33 = vsel %vm232_vm1, %v3839_v52, %v3834_v47  ;;  %v1521_v34 = vsel %vm232_vm1, %v3838_v28, %v3833_v48 }
0x13d7   : > { %v3842_v36 = vpop.permute.xlu0 %3841  ;;  %v1525_v63 = vsel %vm237_vm2, %v1521_v34, 1.0  ;;  %v1526_v4 = vsel %vm237_vm2, %v1522_v33, 1.0 }
0x13d8   : > { %v3844_v8 = vunpack.i.h.bf16 %v3842_v36  ;;  %v3843_v10 = vunpack.i.l.bf16 %v3842_v36  ;;  %v1529_v14 = vpack.c.bf16 %v1526_v4, %v1525_v63 }
0x13da   : > { %v1524_v6 = vsel %vm232_vm1, %v3844_v8, %v3849_v59  ;;  %v1523_v9 = vsel %vm232_vm1, %v3843_v10, %v3848_v61  ;;  %3553 = vmatprep.mubr.msk.bf16.mxu1 %vm259_vm3, %v1529_v14 }
0x13db   : > { %v1528_v39 = vsel %vm237_vm2, %v1524_v6, 1.0  ;;  %v1527_v17 = vsel %vm237_vm2, %v1523_v9, 1.0 }
0x13dc   : > { %v1530_v18 = vpack.c.bf16 %v1528_v39, %v1527_v17 }
0x13de   : > { %3554 = vmatmul.mubr.msk.bf16.vlgmr.msra.gmra.mxu1 %vm259_vm3, %v1530_v18 }
0x13df   : > { %3568 = vmatpush3.bf16.msra.mxu1 %v4505_v2 }
0x13e0   : > { %3569 = vmatprep.subr.bf16.mxu1 %v4754_v53 }
0x13e3   : > { %3570 = vmatpush3.bf16.msra.mxu1 %v4754_v53 }
0x13e4   : > { %3571 = vmatprep.subr.bf16.mxu1 %v4761_v54 }
0x13e7   : > { %3572 = vmatpush3.bf16.msra.mxu1 %v4761_v54 }
0x13e8   : > { %3670 = vmatprep.subr.msk.bf16.mxu1 %vm266_vm0, %v4768_v57 }
0x149e   : > { %v3555_v41 = vpop.f32.mrf.mxu1 }
0x149f   : > { %v1588_v26 = vmul.f32 0.5, %v3555_v41 }
0x14a0   : > { %v1571_v19 = vpop.f32.mrf.mxu1 }
0x14a1   : > { %4181 = vtanh.f32 %v1571_v19  ;;  %v1586_v58 = vmul.f32 0.5, %v1571_v19 }
0x14a2   : > { %v3556_v22 = vpop.f32.mrf.mxu1  ;;  %4183 = vtanh.f32 %v3555_v41 }
0x14a3   : > { %v1589_v29 = vmul.f32 0.5, %v3556_v22 }
0x14a4   : > { %v1574_v50 = vpop.f32.mrf.mxu1 }
0x14a5   : > { %4185 = vtanh.f32 %v1574_v50  ;;  %v1587_v27 = vmul.f32 0.5, %v1574_v50 }
0x14a6   : > { %4187 = vtanh.f32 %v3556_v22 }
0x14a7   : > { %4189 = vtanh.f32 %v1586_v58 }
0x14a8   : > { %4191 = vtanh.f32 %v1588_v26 }
0x14a9   : > { %4193 = vtanh.f32 %v1587_v27 }
0x14aa   : > { %4195 = vtanh.f32 %v1589_v29 }
0x14ae   : > { %v4182_v55 = vpop.eup %4181 }
0x14af   : > { %1614 = vrot.lane.b32.xlu0 %v4182_v55, %s4440_s29  ;;  %v4184_v56 = vpop.eup %4183 }
0x14b2   : > { %v4186_v24 = vpop.eup %4185 }
0x14b3   : > { %1618 = vrot.lane.b32.xlu0 %v4184_v56, %s4440_s29  ;;  %1616 = vrot.lane.b32.xlu1 %v4186_v24, %s4440_s29  ;;  %v4188_v25 = vpop.eup %4187 }
0x14b4   : > { %v4190_v31 = vpop.eup %4189 }
0x14b5   : > { %v4192_v32 = vpop.eup %4191  ;;  %v1594_v35 = vmul.f32 0.5, %v4190_v31 }
0x14b6   : > { %v4194_v60 = vpop.eup %4193  ;;  %v1596_v38 = vmul.f32 0.5, %v4192_v32 }
0x14b7   : > { %1620 = vrot.lane.b32.xlu1 %v4188_v25, %s4440_s29  ;;  %v1595_v62 = vmul.f32 0.5, %v4194_v60  ;;  %v1598_v12 = vadd.f32 0.5, %v1594_v35  ;;  %v4196_v13 = vpop.eup %4195 }
0x14b8   : > { %v1597_v16 = vmul.f32 0.5, %v4196_v13  ;;  %v1600_v40 = vadd.f32 0.5, %v1596_v38 }
0x14b9   : > { %v1599_v20 = vadd.f32 0.5, %v1595_v62  ;;  %v1606_v46 = vmul.f32 %v1598_v12, %v4887_v30 }
0x14ba   : > { %v1601_v0 = vadd.f32 0.5, %v1597_v16  ;;  %v1608_v49 = vmul.f32 %v1600_v40, %v4892_v5 }
0x14bb   : > { %v1607_v51 = vmul.f32 %v1599_v20, %v4894_v37 }
0x14bc   : > { %v1609_v59 = vmul.f32 %v1601_v0, %v4899_v7 }
0x1521   : > { %v1615_v11 = vpop.permute.xlu0 %1614 }
0x1522   : > { %v1626_v15 = vmul.f32 %v1615_v11, %v1598_v12 }
0x1524   : > { %1634 = vrot.lane.b32.xlu0 %v1626_v15, %s4439_s28 }
0x1525   : > { %v1619_v21 = vpop.permute.xlu0 %1618  ;;  %v1617_v42 = vpop.permute.xlu1 %1616 }
0x1526   : > { %v1628_v43 = vmul.f32 %v1619_v21, %v1600_v40  ;;  %v1627_v23 = vmul.f32 %v1617_v42, %v1599_v20 }
0x1528   : > { %1638 = vrot.lane.b32.xlu0 %v1628_v43, %s4439_s28  ;;  %1636 = vrot.lane.b32.xlu1 %v1627_v23, %s4439_s28 }
0x1529   : > { %v1621_v1 = vpop.permute.xlu1 %1620 }
0x152a   : > { %v1629_v44 = vmul.f32 %v1621_v1, %v1601_v0 }
0x152c   : > { %1640 = vrot.lane.b32.xlu1 %v1629_v44, %s4439_s28 }
0x1596   : > { %v1635_v47 = vpop.permute.xlu0 %1634 }
0x1597   : > { %v4936_v48 = vadd.f32 %v1635_v47, %v1606_v46 }
0x1599   : > { %4197 = vtanh.f32 %v4936_v48 }
0x159a   : > { %v1639_v52 = vpop.permute.xlu0 %1638  ;;  %v1637_v28 = vpop.permute.xlu1 %1636 }
0x159b   : > { %v4941_v33 = vadd.f32 %v1639_v52, %v1608_v49  ;;  %v4943_v34 = vadd.f32 %v1637_v28, %v1607_v51 }
0x159d   : > { %4199 = vtanh.f32 %v4941_v33 }
0x159e   : > { %4201 = vtanh.f32 %v4943_v34  ;;  %v1641_v30 = vpop.permute.xlu1 %1640 }
0x159f   : > { %v4948_v61 = vadd.f32 %v1641_v30, %v1609_v59 }
0x15a1   : > { %4203 = vtanh.f32 %v4948_v61 }
0x15a6   : > { %v4198_v5 = vpop.eup %4197 }
0x15a7   : > { %1658 = vrot.lane.b32.xlu0 %v4198_v5, %s4440_s29 }
0x15aa   : > { %v4200_v37 = vpop.eup %4199 }
0x15ab   : > { %v4202_v36 = vpop.eup %4201  ;;  %1662 = vrot.lane.b32.xlu0 %v4200_v37, %s4440_s29 }
0x15ac   : > { %1660 = vrot.lane.b32.xlu1 %v4202_v36, %s4440_s29 }
0x15ae   : > { %v4204_v63 = vpop.eup %4203 }
0x15b0   : > { %1664 = vrot.lane.b32.xlu1 %v4204_v63, %s4440_s29 }
0x15b4   : > { %3851 = vrot.lane.b32.xlu1 %v4802_v3, %s4448_s19 }
0x15b8   : > { %3866 = vrot.lane.b32.xlu1 %v4807_v45, %s4448_s19 }
0x1619   : > { %v1659_v7 = vpop.permute.xlu0 %1658 }
0x161a   : > { %v1670_v8 = vmul.f32 %v1659_v7, %v1598_v12 }
0x161d   : > { %v1663_v14 = vpop.permute.xlu0 %1662 }
0x161e   : > { %v1661_v4 = vpop.permute.xlu1 %1660  ;;  %v1672_v39 = vmul.f32 %v1663_v14, %v1600_v40 }
0x161f   : > { %v1671_v10 = vmul.f32 %v1661_v4, %v1599_v20 }
0x1621   : > { %v3855_v6 = vpack.i.bf16 %v1671_v10, %v1670_v8 }
0x1622   : > { %v1665_v9 = vpop.permute.xlu1 %1664 }
0x1623   : > { %v1673_v17 = vmul.f32 %v1665_v9, %v1601_v0  ;;  %3856 = vrot.lane.b32.xlu0 %v3855_v6, %s4439_s28 }
0x1625   : > { %v3860_v18 = vpack.i.bf16 %v1673_v17, %v1672_v39 }
0x1626   : > { %v3852_v41 = vpop.permute.xlu1 %3851 }
0x1627   : > { %3861 = vrot.lane.b32.xlu0 %v3860_v18, %s4439_s28  ;;  %v3854_v19 = vunpack.i.h.bf16 %v3852_v41  ;;  %v3853_v22 = vunpack.i.l.bf16 %v3852_v41 }
0x162a   : > { %v3867_v55 = vpop.permute.xlu1 %3866 }
0x162b   : > { %v3869_v26 = vunpack.i.h.bf16 %v3867_v55  ;;  %v3868_v27 = vunpack.i.l.bf16 %v3867_v55 }
0x1695   : > { %v3857_v50 = vpop.permute.xlu0 %3856 }
0x1696   : > { %v3859_v56 = vunpack.i.h.bf16 %v3857_v50  ;;  %v3858_v24 = vunpack.i.l.bf16 %v3857_v50 }
0x1698   : > { %v1703_v25 = vsel %vm232_vm1, %v3859_v56, %v3854_v19  ;;  %v1702_v58 = vsel %vm232_vm1, %v3858_v24, %v3853_v22 }
0x1699   : > { %v3862_v29 = vpop.permute.xlu0 %3861  ;;  %v1706_v31 = vsel %vm237_vm2, %v1702_v58, 1.0  ;;  %v1707_v32 = vsel %vm237_vm2, %v1703_v25, 1.0 }
0x169a   : > { %v3864_v35 = vunpack.i.h.bf16 %v3862_v29  ;;  %v3863_v60 = vunpack.i.l.bf16 %v3862_v29  ;;  %v1710_v38 = vpack.c.bf16 %v1707_v32, %v1706_v31 }
0x169c   : > { %v1705_v62 = vsel %vm232_vm1, %v3864_v35, %v3869_v26  ;;  %v1704_v12 = vsel %vm232_vm1, %v3863_v60, %v3868_v27  ;;  %3563 = vmatprep.mubr.msk.bf16.mxu0 %vm259_vm3, %v1710_v38 }
0x169d   : > { %v1709_v13 = vsel %vm237_vm2, %v1705_v62, 1.0  ;;  %v1708_v11 = vsel %vm237_vm2, %v1704_v12, 1.0 }
0x169e   : > { %v1711_v15 = vpack.c.bf16 %v1709_v13, %v1708_v11 }
0x16a0   : > { %3564 = vmatmul.mubr.msk.bf16.vlgmr.msra.gmra.mxu0 %vm259_vm3, %v1711_v15 }
0x16a1   : > { %3578 = vmatpush3.bf16.msra.mxu0 %v4505_v2 }
0x16a2   : > { %3579 = vmatprep.subr.bf16.mxu0 %v4754_v53 }
0x16a5   : > { %3580 = vmatpush3.bf16.msra.mxu0 %v4754_v53 }
0x16a6   : > { %3581 = vmatprep.subr.bf16.mxu0 %v4761_v54 }
0x16a9   : > { %3582 = vmatpush3.bf16.msra.mxu0 %v4761_v54 }
0x16aa   : > { %3671 = vmatprep.subr.msk.bf16.mxu0 %vm266_vm0, %v4768_v57 }
0x1760   : > { %v3565_v16 = vpop.f32.mrf.mxu0 }
0x1761   : > { %v1769_v23 = vmul.f32 0.5, %v3565_v16 }
0x1762   : > { %v1752_v40 = vpop.f32.mrf.mxu0 }
0x1763   : > { %4205 = vtanh.f32 %v1752_v40  ;;  %v1767_v57 = vmul.f32 0.5, %v1752_v40 }
0x1764   : > { %v3566_v20 = vpop.f32.mrf.mxu0  ;;  %4207 = vtanh.f32 %v3565_v16 }
0x1765   : > { %v1770_v1 = vmul.f32 0.5, %v3566_v20 }
0x1766   : > { %v1755_v21 = vpop.f32.mrf.mxu0 }
0x1767   : > { %4209 = vtanh.f32 %v1755_v21  ;;  %v1768_v0 = vmul.f32 0.5, %v1755_v21 }
0x1768   : > { %4211 = vtanh.f32 %v3566_v20 }
0x1769   : > { %4213 = vtanh.f32 %v1767_v57 }
0x176a   : > { %4215 = vtanh.f32 %v1769_v23 }
0x176b   : > { %4217 = vtanh.f32 %v1768_v0 }
0x176c   : > { %4219 = vtanh.f32 %v1770_v1 }
0x1770   : > { %v4206_v42 = vpop.eup %4205 }
0x1771   : > { %1795 = vrot.lane.b32.xlu0 %v4206_v42, %s4440_s29  ;;  %v4208_v43 = vpop.eup %4207 }
0x1774   : > { %v4210_v53 = vpop.eup %4209 }
0x1775   : > { %1799 = vrot.lane.b32.xlu0 %v4208_v43, %s4440_s29  ;;  %1797 = vrot.lane.b32.xlu1 %v4210_v53, %s4440_s29  ;;  %v4212_v54 = vpop.eup %4211 }
0x1776   : > { %v4214_v44 = vpop.eup %4213 }
0x1777   : > { %v4216_v46 = vpop.eup %4215  ;;  %v1775_v47 = vmul.f32 0.5, %v4214_v44 }
0x1778   : > { %v4218_v49 = vpop.eup %4217  ;;  %v1777_v51 = vmul.f32 0.5, %v4216_v46 }
0x1779   : > { %1801 = vrot.lane.b32.xlu1 %v4212_v54, %s4440_s29  ;;  %v1776_v52 = vmul.f32 0.5, %v4218_v49  ;;  %v1779_v28 = vadd.f32 0.5, %v1775_v47  ;;  %v4220_v59 = vpop.eup %4219 }
0x177a   : > { %v1778_v37 = vmul.f32 0.5, %v4220_v59  ;;  %v1781_v36 = vadd.f32 0.5, %v1777_v51  ;;  %v5036_v59 = vld [vmem:[%s5391_s1 + $0x10] ss:$0 sps:$4 sm:$0x11]  }
0x177b   : > { %v1780_v63 = vadd.f32 0.5, %v1776_v52  ;;  %v1787_v39 = vmul.f32 %v1779_v28, %v4936_v48  ;;  %v5022_v52 = vld [vmem:[%s5391_s1 + $0x8] sm:$0xff]  }
0x177c   : > { %v1782_v14 = vadd.f32 0.5, %v1778_v37  ;;  %v1789_v41 = vmul.f32 %v1781_v36, %v4941_v33 }
0x177d   : > { %v1788_v19 = vmul.f32 %v1780_v63, %v4943_v34 }
0x177e   : > { %v1790_v24 = vmul.f32 %v1782_v14, %v4948_v61 }
0x17e3   : > { %v1796_v30 = vpop.permute.xlu0 %1795 }
0x17e4   : > { %v1807_v5 = vmul.f32 %v1796_v30, %v1779_v28 }
0x17e6   : > { %1815 = vrot.lane.b32.xlu0 %v1807_v5, %s4439_s28 }
0x17e7   : > { %v1800_v7 = vpop.permute.xlu0 %1799  ;;  %v1798_v4 = vpop.permute.xlu1 %1797 }
0x17e8   : > { %v1809_v8 = vmul.f32 %v1800_v7, %v1781_v36  ;;  %v1808_v10 = vmul.f32 %v1798_v4, %v1780_v63 }
0x17ea   : > { %1819 = vrot.lane.b32.xlu0 %v1809_v8, %s4439_s28  ;;  %1817 = vrot.lane.b32.xlu1 %v1808_v10, %s4439_s28 }
0x17eb   : > { %v1802_v6 = vpop.permute.xlu1 %1801 }
0x17ec   : > { %v1810_v9 = vmul.f32 %v1802_v6, %v1782_v14 }
0x17ee   : > { %1821 = vrot.lane.b32.xlu1 %v1810_v9, %s4439_s28 }
0x1858   : > { %v1816_v17 = vpop.permute.xlu0 %1815 }
0x1859   : > { %v4985_v18 = vadd.f32 %v1816_v17, %v1787_v39 }
0x185b   : > { %4221 = vtanh.f32 %v4985_v18 }
0x185c   : > { %v1820_v22 = vpop.permute.xlu0 %1819  ;;  %v1818_v50 = vpop.permute.xlu1 %1817 }
0x185d   : > { %v4990_v55 = vadd.f32 %v1820_v22, %v1789_v41  ;;  %v4992_v56 = vadd.f32 %v1818_v50, %v1788_v19 }
0x185f   : > { %4223 = vtanh.f32 %v4990_v55 }
0x1860   : > { %4225 = vtanh.f32 %v4992_v56  ;;  %v1822_v48 = vpop.permute.xlu1 %1821 }
0x1861   : > { %v4997_v25 = vadd.f32 %v1822_v48, %v1790_v24 }
0x1863   : > { %4227 = vtanh.f32 %v4997_v25 }
0x1868   : > { %v4222_v33 = vpop.eup %4221 }
0x1869   : > { %1839 = vrot.lane.b32.xlu0 %v4222_v33, %s4440_s29 }
0x186c   : > { %v4224_v34 = vpop.eup %4223 }
0x186d   : > { %v4226_v58 = vpop.eup %4225  ;;  %1843 = vrot.lane.b32.xlu0 %v4224_v34, %s4440_s29 }
0x186e   : > { %1841 = vrot.lane.b32.xlu1 %v4226_v58, %s4440_s29 }
0x1870   : > { %v4228_v26 = vpop.eup %4227 }
0x1872   : > { %1845 = vrot.lane.b32.xlu1 %v4228_v26, %s4440_s29 }
0x1876   : > { %3871 = vrot.lane.b32.xlu1 %v4802_v3, %s4449_s20 }
0x187a   : > { %3886 = vrot.lane.b32.xlu1 %v4807_v45, %s4449_s20 }
0x18db   : > { %v1840_v61 = vpop.permute.xlu0 %1839 }
0x18dc   : > { %v1851_v29 = vmul.f32 %v1840_v61, %v1779_v28  ;;  %v5029_v28 = vld [vmem:[%s5391_s1] sm:$0xff]  }
0x18df   : > { %v1844_v32 = vpop.permute.xlu0 %1843 }
0x18e0   : > { %v1842_v27 = vpop.permute.xlu1 %1841  ;;  %v1853_v38 = vmul.f32 %v1844_v32, %v1781_v36 }
0x18e1   : > { %v1852_v31 = vmul.f32 %v1842_v27, %v1780_v63 }
0x18e3   : > { %v3875_v35 = vpack.i.bf16 %v1852_v31, %v1851_v29 }
0x18e4   : > { %v1846_v60 = vpop.permute.xlu1 %1845 }
0x18e5   : > { %v1854_v62 = vmul.f32 %v1846_v60, %v1782_v14  ;;  %3876 = vrot.lane.b32.xlu0 %v3875_v35, %s4439_s28 }
0x18e7   : > { %v3880_v12 = vpack.i.bf16 %v1854_v62, %v1853_v38 }
0x18e8   : > { %v3872_v13 = vpop.permute.xlu1 %3871 }
0x18e9   : > { %3881 = vrot.lane.b32.xlu0 %v3880_v12, %s4439_s28  ;;  %v3874_v11 = vunpack.i.h.bf16 %v3872_v13  ;;  %v3873_v15 = vunpack.i.l.bf16 %v3872_v13 }
0x18ec   : > { %v3887_v16 = vpop.permute.xlu1 %3886 }
0x18ed   : > { %v3889_v42 = vunpack.i.h.bf16 %v3887_v16  ;;  %v3888_v43 = vunpack.i.l.bf16 %v3887_v16 }
0x1957   : > { %v3877_v3 = vpop.permute.xlu0 %3876 }
0x1958   : > { %v3879_v45 = vunpack.i.h.bf16 %v3877_v3  ;;  %v3878_v40 = vunpack.i.l.bf16 %v3877_v3 }
0x195a   : > { %v1884_v20 = vsel %vm232_vm1, %v3879_v45, %v3874_v11  ;;  %v1883_v21 = vsel %vm232_vm1, %v3878_v40, %v3873_v15 }
0x195b   : > { %v3882_v53 = vpop.permute.xlu0 %3881  ;;  %v1887_v54 = vsel %vm237_vm2, %v1883_v21, 1.0  ;;  %v1888_v57 = vsel %vm237_vm2, %v1884_v20, 1.0 }
0x195c   : > { %v3884_v23 = vunpack.i.h.bf16 %v3882_v53  ;;  %v3883_v0 = vunpack.i.l.bf16 %v3882_v53  ;;  %v1891_v1 = vpack.c.bf16 %v1888_v57, %v1887_v54  ;;  %v4424_v53 = vld [vmem:[%s4524_s27 + $0x8] sm:$0xff]  ;;  %v4425_v57 = vld [vmem:[%s4524_s27 + $0x10] sm:$0xff] }
0x195e   : > { %v1886_v44 = vsel %vm232_vm1, %v3884_v23, %v3889_v42  ;;  %v1885_v46 = vsel %vm232_vm1, %v3883_v0, %v3888_v43  ;;  %3573 = vmatprep.mubr.msk.bf16.mxu1 %vm259_vm3, %v1891_v1  ;;  %v4426_v23 = vld [vmem:[%s4524_s27 + $0x18] sm:$0xff] }
0x195f   : > { %v1890_v47 = vsel %vm237_vm2, %v1886_v44, 1.0  ;;  %v1889_v49 = vsel %vm237_vm2, %v1885_v46, 1.0  ;;  %v5075_v0 = vpack.i.bf16 %v4426_v23, %v4425_v57 }
0x1960   : > { %v1892_v51 = vpack.c.bf16 %v1890_v47, %v1889_v49 }
0x1962   : > { %3574 = vmatmul.mubr.msk.bf16.vlgmr.msra.gmra.mxu1 %vm259_vm3, %v1892_v51 }
0x1963   : > { %3588 = vmatpush3.bf16.msra.mxu1 %v4505_v2 }
0x1964   : > { %3589 = vmatprep.subr.bf16.mxu1 %v5022_v52 }
0x1967   : > { %3590 = vmatpush3.bf16.msra.mxu1 %v5022_v52 }
0x1968   : > { %3591 = vmatprep.subr.bf16.mxu1 %v5029_v28 }
0x196b   : > { %3592 = vmatpush3.bf16.msra.mxu1 %v5029_v28 }
0x196c   : > { %3672 = vmatprep.subr.msk.bf16.mxu1 %vm266_vm0, %v5036_v59 }
0x1a22   : > { %v3575_v30 = vpop.f32.mrf.mxu1 }
0x1a23   : > { %v1950_v14 = vmul.f32 0.5, %v3575_v30 }
0x1a24   : > { %v1933_v5 = vpop.f32.mrf.mxu1 }
0x1a25   : > { %4229 = vtanh.f32 %v1933_v5  ;;  %v1948_v10 = vmul.f32 0.5, %v1933_v5 }
0x1a26   : > { %v3576_v37 = vpop.f32.mrf.mxu1  ;;  %4231 = vtanh.f32 %v3575_v30 }
0x1a27   : > { %v1951_v9 = vmul.f32 0.5, %v3576_v37 }
0x1a28   : > { %v1936_v36 = vpop.f32.mrf.mxu1 }
0x1a29   : > { %4233 = vtanh.f32 %v1936_v36  ;;  %v1949_v6 = vmul.f32 0.5, %v1936_v36 }
0x1a2a   : > { %4235 = vtanh.f32 %v3576_v37 }
0x1a2b   : > { %4237 = vtanh.f32 %v1948_v10 }
0x1a2c   : > { %4239 = vtanh.f32 %v1950_v14 }
0x1a2d   : > { %4241 = vtanh.f32 %v1949_v6 }
0x1a2e   : > { %4243 = vtanh.f32 %v1951_v9 }
0x1a32   : > { %v4230_v63 = vpop.eup %4229 }
0x1a33   : > { %1976 = vrot.lane.b32.xlu0 %v4230_v63, %s4440_s29  ;;  %v4232_v7 = vpop.eup %4231 }
0x1a36   : > { %v4234_v4 = vpop.eup %4233 }
0x1a37   : > { %1980 = vrot.lane.b32.xlu0 %v4232_v7, %s4440_s29  ;;  %1978 = vrot.lane.b32.xlu1 %v4234_v4, %s4440_s29  ;;  %v4236_v8 = vpop.eup %4235 }
0x1a38   : > { %v4238_v39 = vpop.eup %4237 }
0x1a39   : > { %v4240_v17 = vpop.eup %4239  ;;  %v1956_v41 = vmul.f32 0.5, %v4238_v39 }
0x1a3a   : > { %v4242_v19 = vpop.eup %4241  ;;  %v1958_v22 = vmul.f32 0.5, %v4240_v17 }
0x1a3b   : > { %1982 = vrot.lane.b32.xlu1 %v4236_v8, %s4440_s29  ;;  %v1957_v50 = vmul.f32 0.5, %v4242_v19  ;;  %v1960_v24 = vadd.f32 0.5, %v1956_v41  ;;  %v4244_v48 = vpop.eup %4243 }
0x1a3c   : > { %v1959_v58 = vmul.f32 0.5, %v4244_v48  ;;  %v1962_v26 = vadd.f32 0.5, %v1958_v22 }
0x1a3d   : > { %v1961_v61 = vadd.f32 0.5, %v1957_v50  ;;  %v1968_v62 = vmul.f32 %v1960_v24, %v4985_v18 }
0x1a3e   : > { %v1963_v35 = vadd.f32 0.5, %v1959_v58  ;;  %v1970_v11 = vmul.f32 %v1962_v26, %v4990_v55 }
0x1a3f   : > { %v1969_v15 = vmul.f32 %v1961_v61, %v4992_v56 }
0x1a40   : > { %v1971_v18 = vmul.f32 %v1963_v35, %v4997_v25  ;;  %v4423_v25 = vld [vmem:[%s4524_s27] sm:$0xff] }
0x1a41   : > { %v5070_v54 = vpack.i.bf16 %v4424_v53, %v4423_v25 }
0x1aa5   : > { %v1977_v33 = vpop.permute.xlu0 %1976 }
0x1aa6   : > { %v1988_v34 = vmul.f32 %v1977_v33, %v1960_v24 }
0x1aa8   : > { %1996 = vrot.lane.b32.xlu0 %v1988_v34, %s4439_s28 }
0x1aa9   : > { %v1981_v27 = vpop.permute.xlu0 %1980  ;;  %v1979_v29 = vpop.permute.xlu1 %1978 }
0x1aaa   : > { %v1990_v31 = vmul.f32 %v1981_v27, %v1962_v26  ;;  %v1989_v32 = vmul.f32 %v1979_v29, %v1961_v61 }
0x1aac   : > { %2000 = vrot.lane.b32.xlu0 %v1990_v31, %s4439_s28  ;;  %1998 = vrot.lane.b32.xlu1 %v1989_v32, %s4439_s28 }
0x1aad   : > { %v1983_v60 = vpop.permute.xlu1 %1982 }
0x1aae   : > { %v1991_v38 = vmul.f32 %v1983_v60, %v1963_v35 }
0x1ab0   : > { %2002 = vrot.lane.b32.xlu1 %v1991_v38, %s4439_s28 }
0x1b1a   : > { %v1997_v12 = vpop.permute.xlu0 %1996 }
0x1b1b   : > { %v5049_v13 = vadd.f32 %v1997_v12, %v1968_v62 }
0x1b1d   : > { %4245 = vtanh.f32 %v5049_v13 }
0x1b1e   : > { %v2001_v3 = vpop.permute.xlu0 %2000  ;;  %v1999_v16 = vpop.permute.xlu1 %1998 }
0x1b1f   : > { %v5054_v45 = vadd.f32 %v2001_v3, %v1970_v11  ;;  %v5056_v40 = vadd.f32 %v1999_v16, %v1969_v15 }
0x1b21   : > { %4247 = vtanh.f32 %v5054_v45 }
0x1b22   : > { %4249 = vtanh.f32 %v5056_v40  ;;  %v2003_v20 = vpop.permute.xlu1 %2002 }
0x1b23   : > { %v5061_v21 = vadd.f32 %v2003_v20, %v1971_v18 }
0x1b25   : > { %4251 = vtanh.f32 %v5061_v21 }
0x1b2a   : > { %v4246_v55 = vpop.eup %4245 }
0x1b2b   : > { %2020 = vrot.lane.b32.xlu0 %v4246_v55, %s4440_s29 }
0x1b2e   : > { %v4248_v56 = vpop.eup %4247 }
0x1b2f   : > { %v4250_v42 = vpop.eup %4249  ;;  %2024 = vrot.lane.b32.xlu0 %v4248_v56, %s4440_s29 }
0x1b30   : > { %2022 = vrot.lane.b32.xlu1 %v4250_v42, %s4440_s29 }
0x1b32   : > { %v4252_v43 = vpop.eup %4251 }
0x1b34   : > { %2026 = vrot.lane.b32.xlu1 %v4252_v43, %s4440_s29 }
0x1b38   : > { %3891 = vrot.lane.b32.xlu1 %v5070_v54, %s4450_s5 }
0x1b3c   : > { %3906 = vrot.lane.b32.xlu1 %v5075_v0, %s4450_s5 }
0x1b9d   : > { %v2021_v1 = vpop.permute.xlu0 %2020 }
0x1b9e   : > { %v2032_v46 = vmul.f32 %v2021_v1, %v1960_v24 }
0x1ba1   : > { %v2025_v49 = vpop.permute.xlu0 %2024 }
0x1ba2   : > { %v2023_v44 = vpop.permute.xlu1 %2022  ;;  %v2034_v5 = vmul.f32 %v2025_v49, %v1962_v26 }
0x1ba3   : > { %v2033_v47 = vmul.f32 %v2023_v44, %v1961_v61 }
0x1ba5   : > { %v3895_v51 = vpack.i.bf16 %v2033_v47, %v2032_v46 }
0x1ba6   : > { %v2027_v30 = vpop.permute.xlu1 %2026 }
0x1ba7   : > { %v2035_v37 = vmul.f32 %v2027_v30, %v1963_v35  ;;  %3896 = vrot.lane.b32.xlu0 %v3895_v51, %s4439_s28 }
0x1ba9   : > { %v3900_v36 = vpack.i.bf16 %v2035_v37, %v2034_v5 }
0x1baa   : > { %v3892_v63 = vpop.permute.xlu1 %3891 }
0x1bab   : > { %3901 = vrot.lane.b32.xlu0 %v3900_v36, %s4439_s28  ;;  %v3894_v7 = vunpack.i.h.bf16 %v3892_v63  ;;  %v3893_v4 = vunpack.i.l.bf16 %v3892_v63 }
0x1bae   : > { %v3907_v10 = vpop.permute.xlu1 %3906 }
0x1baf   : > { %v3909_v17 = vunpack.i.h.bf16 %v3907_v10  ;;  %v3908_v41 = vunpack.i.l.bf16 %v3907_v10 }
0x1c19   : > { %v3897_v8 = vpop.permute.xlu0 %3896 }
0x1c1a   : > { %v3899_v14 = vunpack.i.h.bf16 %v3897_v8  ;;  %v3898_v6 = vunpack.i.l.bf16 %v3897_v8 }
0x1c1c   : > { %v2065_v9 = vsel %vm232_vm1, %v3899_v14, %v3894_v7  ;;  %v2064_v39 = vsel %vm232_vm1, %v3898_v6, %v3893_v4 }
0x1c1d   : > { %v3902_v19 = vpop.permute.xlu0 %3901  ;;  %v2068_v22 = vsel %vm237_vm2, %v2064_v39, 1.0  ;;  %v2069_v50 = vsel %vm237_vm2, %v2065_v9, 1.0 }
0x1c1e   : > { %v3904_v24 = vunpack.i.h.bf16 %v3902_v19  ;;  %v3903_v48 = vunpack.i.l.bf16 %v3902_v19  ;;  %v2072_v33 = vpack.c.bf16 %v2069_v50, %v2068_v22 }
0x1c20   : > { %v2067_v34 = vsel %vm232_vm1, %v3904_v24, %v3909_v17  ;;  %v2066_v58 = vsel %vm232_vm1, %v3903_v48, %v3908_v41  ;;  %3583 = vmatprep.mubr.msk.bf16.mxu0 %vm259_vm3, %v2072_v33 }
0x1c21   : > { %v2071_v26 = vsel %vm237_vm2, %v2067_v34, 1.0  ;;  %v2070_v61 = vsel %vm237_vm2, %v2066_v58, 1.0 }
0x1c22   : > { %v2073_v27 = vpack.c.bf16 %v2071_v26, %v2070_v61 }
0x1c24   : > { %3584 = vmatmul.mubr.msk.bf16.vlgmr.msra.gmra.mxu0 %vm259_vm3, %v2073_v27 }
0x1c25   : > { %3598 = vmatpush3.bf16.msra.mxu0 %v4505_v2 }
0x1c26   : > { %3599 = vmatprep.subr.bf16.mxu0 %v5022_v52 }
0x1c29   : > { %3600 = vmatpush3.bf16.msra.mxu0 %v5022_v52 }
0x1c2a   : > { %3601 = vmatprep.subr.bf16.mxu0 %v5029_v28 }
0x1c2d   : > { %3602 = vmatpush3.bf16.msra.mxu0 %v5029_v28 }
0x1c2e   : > { %3673 = vmatprep.subr.msk.bf16.mxu0 %vm266_vm0, %v5036_v59 }
0x1ce4   : > { %v3585_v29 = vpop.f32.mrf.mxu0 }
0x1ce5   : > { %v2131_v15 = vmul.f32 0.5, %v3585_v29 }
0x1ce6   : > { %v2114_v31 = vpop.f32.mrf.mxu0 }
0x1ce7   : > { %4253 = vtanh.f32 %v2114_v31  ;;  %v2129_v11 = vmul.f32 0.5, %v2114_v31 }
0x1ce8   : > { %v3586_v32 = vpop.f32.mrf.mxu0  ;;  %4255 = vtanh.f32 %v3585_v29 }
0x1ce9   : > { %v2132_v16 = vmul.f32 0.5, %v3586_v32 }
0x1cea   : > { %v2117_v35 = vpop.f32.mrf.mxu0 }
0x1ceb   : > { %4257 = vtanh.f32 %v2117_v35  ;;  %v2130_v3 = vmul.f32 0.5, %v2117_v35 }
0x1cec   : > { %4259 = vtanh.f32 %v3586_v32 }
0x1ced   : > { %4261 = vtanh.f32 %v2129_v11 }
0x1cee   : > { %4263 = vtanh.f32 %v2131_v15 }
0x1cef   : > { %4265 = vtanh.f32 %v2130_v3 }
0x1cf0   : > { %4267 = vtanh.f32 %v2132_v16 }
0x1cf4   : > { %v4254_v60 = vpop.eup %4253 }
0x1cf5   : > { %2157 = vrot.lane.b32.xlu0 %v4254_v60, %s4440_s29  ;;  %v4256_v38 = vpop.eup %4255 }
0x1cf8   : > { %v4258_v62 = vpop.eup %4257 }
0x1cf9   : > { %2161 = vrot.lane.b32.xlu0 %v4256_v38, %s4440_s29  ;;  %2159 = vrot.lane.b32.xlu1 %v4258_v62, %s4440_s29  ;;  %v4260_v12 = vpop.eup %4259 }
0x1cfa   : > { %v4262_v18 = vpop.eup %4261 }
0x1cfb   : > { %v4264_v20 = vpop.eup %4263  ;;  %v2137_v55 = vmul.f32 0.5, %v4262_v18 }
0x1cfc   : > { %v4266_v56 = vpop.eup %4265  ;;  %v2139_v42 = vmul.f32 0.5, %v4264_v20 }
0x1cfd   : > { %2163 = vrot.lane.b32.xlu1 %v4260_v12, %s4440_s29  ;;  %v2138_v43 = vmul.f32 0.5, %v4266_v56  ;;  %v2141_v25 = vadd.f32 0.5, %v2137_v55  ;;  %v4268_v53 = vpop.eup %4267 }
0x1cfe   : > { %v2140_v1 = vmul.f32 0.5, %v4268_v53  ;;  %v2143_v44 = vadd.f32 0.5, %v2139_v42 }
0x1cff   : > { %v2142_v46 = vadd.f32 0.5, %v2138_v43  ;;  %v2149_v63 = vmul.f32 %v2141_v25, %v5049_v13 }
0x1d00   : > { %v2144_v5 = vadd.f32 0.5, %v2140_v1  ;;  %v2151_v8 = vmul.f32 %v2143_v44, %v5054_v45 }
0x1d01   : > { %v2150_v10 = vmul.f32 %v2142_v46, %v5056_v40 }
0x1d02   : > { %v2152_v17 = vmul.f32 %v2144_v5, %v5061_v21 }
0x1d67   : > { %v2158_v57 = vpop.permute.xlu0 %2157 }
0x1d68   : > { %v2169_v23 = vmul.f32 %v2158_v57, %v2141_v25 }
0x1d6a   : > { %2177 = vrot.lane.b32.xlu0 %v2169_v23, %s4439_s28 }
0x1d6b   : > { %v2162_v47 = vpop.permute.xlu0 %2161  ;;  %v2160_v49 = vpop.permute.xlu1 %2159 }
0x1d6c   : > { %v2171_v51 = vmul.f32 %v2162_v47, %v2143_v44  ;;  %v2170_v30 = vmul.f32 %v2160_v49, %v2142_v46 }
0x1d6e   : > { %2181 = vrot.lane.b32.xlu0 %v2171_v51, %s4439_s28  ;;  %2179 = vrot.lane.b32.xlu1 %v2170_v30, %s4439_s28 }
0x1d6f   : > { %v2164_v37 = vpop.permute.xlu1 %2163 }
0x1d70   : > { %v2172_v36 = vmul.f32 %v2164_v37, %v2144_v5 }
0x1d72   : > { %2183 = vrot.lane.b32.xlu1 %v2172_v36, %s4439_s28 }
0x1ddc   : > { %v2178_v7 = vpop.permute.xlu0 %2177 }
0x1ddd   : > { %v5106_v4 = vadd.f32 %v2178_v7, %v2149_v63 }
0x1ddf   : > { %4269 = vtanh.f32 %v5106_v4 }
0x1de0   : > { %v2182_v14 = vpop.permute.xlu0 %2181  ;;  %v2180_v6 = vpop.permute.xlu1 %2179 }
0x1de1   : > { %v5111_v9 = vadd.f32 %v2182_v14, %v2151_v8  ;;  %v5113_v39 = vadd.f32 %v2180_v6, %v2150_v10 }
0x1de3   : > { %4271 = vtanh.f32 %v5111_v9 }
0x1de4   : > { %4273 = vtanh.f32 %v5113_v39  ;;  %v2184_v13 = vpop.permute.xlu1 %2183 }
0x1de5   : > { %v5118_v41 = vadd.f32 %v2184_v13, %v2152_v17 }
0x1de7   : > { %4275 = vtanh.f32 %v5118_v41 }
0x1dec   : > { %v4270_v45 = vpop.eup %4269 }
0x1ded   : > { %2201 = vrot.lane.b32.xlu0 %v4270_v45, %s4440_s29 }
0x1df0   : > { %v4272_v40 = vpop.eup %4271 }
0x1df1   : > { %v4274_v19 = vpop.eup %4273  ;;  %2205 = vrot.lane.b32.xlu0 %v4272_v40, %s4440_s29 }
0x1df2   : > { %2203 = vrot.lane.b32.xlu1 %v4274_v19, %s4440_s29 }
0x1df4   : > { %v4276_v22 = vpop.eup %4275 }
0x1df6   : > { %2207 = vrot.lane.b32.xlu1 %v4276_v22, %s4440_s29 }
0x1dfa   : > { %3911 = vrot.lane.b32.xlu1 %v5070_v54, %s4451_s6 }
0x1dfe   : > { %3926 = vrot.lane.b32.xlu1 %v5075_v0, %s4451_s6 }
0x1e5f   : > { %v2202_v21 = vpop.permute.xlu0 %2201 }
0x1e60   : > { %v2213_v24 = vmul.f32 %v2202_v21, %v2141_v25 }
0x1e63   : > { %v2206_v33 = vpop.permute.xlu0 %2205 }
0x1e64   : > { %v2204_v50 = vpop.permute.xlu1 %2203  ;;  %v2215_v26 = vmul.f32 %v2206_v33, %v2143_v44 }
0x1e65   : > { %v2214_v48 = vmul.f32 %v2204_v50, %v2142_v46 }
0x1e67   : > { %v3915_v34 = vpack.i.bf16 %v2214_v48, %v2213_v24 }
0x1e68   : > { %v2208_v58 = vpop.permute.xlu1 %2207 }
0x1e69   : > { %v2216_v61 = vmul.f32 %v2208_v58, %v2144_v5  ;;  %3916 = vrot.lane.b32.xlu0 %v3915_v34, %s4439_s28 }
0x1e6b   : > { %v3920_v27 = vpack.i.bf16 %v2216_v61, %v2215_v26 }
0x1e6c   : > { %v3912_v29 = vpop.permute.xlu1 %3911 }
0x1e6d   : > { %3921 = vrot.lane.b32.xlu0 %v3920_v27, %s4439_s28  ;;  %v3914_v31 = vunpack.i.h.bf16 %v3912_v29  ;;  %v3913_v32 = vunpack.i.l.bf16 %v3912_v29 }
0x1e70   : > { %v3927_v60 = vpop.permute.xlu1 %3926 }
0x1e71   : > { %v3929_v15 = vunpack.i.h.bf16 %v3927_v60  ;;  %v3928_v3 = vunpack.i.l.bf16 %v3927_v60 }
0x1edb   : > { %v3917_v35 = vpop.permute.xlu0 %3916 }
0x1edc   : > { %v3919_v38 = vunpack.i.h.bf16 %v3917_v35  ;;  %v3918_v62 = vunpack.i.l.bf16 %v3917_v35 }
0x1ede   : > { %v2246_v12 = vsel %vm232_vm1, %v3919_v38, %v3914_v31  ;;  %v2245_v11 = vsel %vm232_vm1, %v3918_v62, %v3913_v32 }
0x1edf   : > { %v2250_v16 = vsel %vm237_vm2, %v2246_v12, 1.0  ;;  %v2249_v18 = vsel %vm237_vm2, %v2245_v11, 1.0  ;;  %v3922_v20 = vpop.permute.xlu0 %3921 }
0x1ee0   : > { %v3924_v55 = vunpack.i.h.bf16 %v3922_v20  ;;  %v3923_v56 = vunpack.i.l.bf16 %v3922_v20  ;;  %v2253_v42 = vpack.c.bf16 %v2250_v16, %v2249_v18 }
0x1ee2   : > { %v2248_v43 = vsel %vm232_vm1, %v3924_v55, %v3929_v15  ;;  %v2247_v25 = vsel %vm232_vm1, %v3923_v56, %v3928_v3  ;;  %3593 = vmatprep.mubr.msk.bf16.mxu1 %vm259_vm3, %v2253_v42 }
0x1ee3   : > { %v2252_v53 = vsel %vm237_vm2, %v2248_v43, 1.0  ;;  %v2251_v57 = vsel %vm237_vm2, %v2247_v25, 1.0 }
0x1ee4   : > { %v2254_v23 = vpack.c.bf16 %v2252_v53, %v2251_v57 }
0x1ee6   : > { %3594 = vmatmul.mubr.msk.bf16.vlgmr.msra.gmra.mxu1 %vm259_vm3, %v2254_v23 }
0x1ee7   : > { %3608 = vmatpush3.bf16.msra.mxu1 %v4505_v2 }
0x1ee8   : > { %3609 = vmatprep.subr.bf16.mxu1 %v5022_v52 }
0x1eeb   : > { %3610 = vmatpush3.bf16.msra.mxu1 %v5022_v52 }
0x1eec   : > { %3611 = vmatprep.subr.bf16.mxu1 %v5029_v28 }
0x1eef   : > { %3612 = vmatpush3.bf16.msra.mxu1 %v5029_v28 }
0x1ef0   : > { %3674 = vmatprep.subr.msk.bf16.mxu1 %vm266_vm0, %v5036_v59 }
0x1fa6   : > { %v3595_v1 = vpop.f32.mrf.mxu1 }
0x1fa7   : > { %v2312_v37 = vmul.f32 0.5, %v3595_v1 }
0x1fa8   : > { %v2295_v44 = vpop.f32.mrf.mxu1 }
0x1fa9   : > { %4277 = vtanh.f32 %v2295_v44  ;;  %v2310_v59 = vmul.f32 0.5, %v2295_v44 }
0x1faa   : > { %v3596_v46 = vpop.f32.mrf.mxu1  ;;  %4279 = vtanh.f32 %v3595_v1 }
0x1fab   : > { %v2313_v63 = vmul.f32 0.5, %v3596_v46 }
0x1fac   : > { %v2298_v47 = vpop.f32.mrf.mxu1 }
0x1fad   : > { %4281 = vtanh.f32 %v2298_v47  ;;  %v2311_v36 = vmul.f32 0.5, %v2298_v47 }
0x1fae   : > { %4283 = vtanh.f32 %v3596_v46 }
0x1faf   : > { %4285 = vtanh.f32 %v2310_v59 }
0x1fb0   : > { %4287 = vtanh.f32 %v2312_v37 }
0x1fb1   : > { %4289 = vtanh.f32 %v2311_v36 }
0x1fb2   : > { %4291 = vtanh.f32 %v2313_v63 }
0x1fb6   : > { %v4278_v49 = vpop.eup %4277 }
0x1fb7   : > { %2338 = vrot.lane.b32.xlu0 %v4278_v49, %s4440_s29  ;;  %v4280_v51 = vpop.eup %4279 }
0x1fba   : > { %v4282_v30 = vpop.eup %4281 }
0x1fbb   : > { %2342 = vrot.lane.b32.xlu0 %v4280_v51, %s4440_s29  ;;  %2340 = vrot.lane.b32.xlu1 %v4282_v30, %s4440_s29  ;;  %v4284_v5 = vpop.eup %4283 }
0x1fbc   : > { %v4286_v7 = vpop.eup %4285 }
0x1fbd   : > { %v4288_v8 = vpop.eup %4287  ;;  %v2318_v10 = vmul.f32 0.5, %v4286_v7 }
0x1fbe   : > { %v4290_v14 = vpop.eup %4289  ;;  %v2320_v17 = vmul.f32 0.5, %v4288_v8 }
0x1fbf   : > { %2344 = vrot.lane.b32.xlu1 %v4284_v5, %s4440_s29  ;;  %v2322_v6 = vadd.f32 0.5, %v2318_v10  ;;  %v2319_v13 = vmul.f32 0.5, %v4290_v14  ;;  %v4292_v45 = vpop.eup %4291 }
0x1fc0   : > { %v2324_v22 = vadd.f32 0.5, %v2320_v17  ;;  %v2321_v50 = vmul.f32 0.5, %v4292_v45 }
0x1fc1   : > { %v2323_v21 = vadd.f32 0.5, %v2319_v13  ;;  %v2330_v27 = vmul.f32 %v2322_v6, %v5106_v4 }
0x1fc2   : > { %v2325_v58 = vadd.f32 0.5, %v2321_v50  ;;  %v2332_v32 = vmul.f32 %v2324_v22, %v5111_v9 }
0x1fc3   : > { %v2331_v35 = vmul.f32 %v2323_v21, %v5113_v39 }
0x1fc4   : > { %v2333_v11 = vmul.f32 %v2325_v58, %v5118_v41 }
0x2029   : > { %v2339_v40 = vpop.permute.xlu0 %2338 }
0x202a   : > { %v2350_v19 = vmul.f32 %v2339_v40, %v2322_v6 }
0x202c   : > { %2358 = vrot.lane.b32.xlu0 %v2350_v19, %s4439_s28 }
0x202d   : > { %v2343_v24 = vpop.permute.xlu0 %2342  ;;  %v2341_v48 = vpop.permute.xlu1 %2340 }
0x202e   : > { %v2352_v33 = vmul.f32 %v2343_v24, %v2324_v22  ;;  %v2351_v34 = vmul.f32 %v2341_v48, %v2323_v21 }
0x2030   : > { %2362 = vrot.lane.b32.xlu0 %v2352_v33, %s4439_s28  ;;  %2360 = vrot.lane.b32.xlu1 %v2351_v34, %s4439_s28 }
0x2031   : > { %v2345_v26 = vpop.permute.xlu1 %2344 }
0x2032   : > { %v2353_v61 = vmul.f32 %v2345_v26, %v2325_v58 }
0x2034   : > { %2364 = vrot.lane.b32.xlu1 %v2353_v61, %s4439_s28 }
0x209e   : > { %v2359_v29 = vpop.permute.xlu0 %2358 }
0x209f   : > { %v5155_v31 = vadd.f32 %v2359_v29, %v2330_v27 }
0x20a1   : > { %4293 = vtanh.f32 %v5155_v31 }
0x20a2   : > { %v2363_v60 = vpop.permute.xlu0 %2362  ;;  %v2361_v38 = vpop.permute.xlu1 %2360 }
0x20a3   : > { %v5160_v62 = vadd.f32 %v2363_v60, %v2332_v32  ;;  %v5162_v12 = vadd.f32 %v2361_v38, %v2331_v35 }
0x20a5   : > { %4295 = vtanh.f32 %v5160_v62 }
0x20a6   : > { %4297 = vtanh.f32 %v5162_v12  ;;  %v2365_v4 = vpop.permute.xlu1 %2364 }
0x20a7   : > { %v5167_v15 = vadd.f32 %v2365_v4, %v2333_v11 }
0x20a9   : > { %4299 = vtanh.f32 %v5167_v15 }
0x20ae   : > { %v4294_v9 = vpop.eup %4293 }
0x20af   : > { %2382 = vrot.lane.b32.xlu0 %v4294_v9, %s4440_s29 }
0x20b2   : > { %v4296_v39 = vpop.eup %4295 }
0x20b3   : > { %v4298_v3 = vpop.eup %4297  ;;  %2386 = vrot.lane.b32.xlu0 %v4296_v39, %s4440_s29 }
0x20b4   : > { %2384 = vrot.lane.b32.xlu1 %v4298_v3, %s4440_s29 }
0x20b6   : > { %v4300_v16 = vpop.eup %4299 }
0x20b8   : > { %2388 = vrot.lane.b32.xlu1 %v4300_v16, %s4440_s29 }
0x20bc   : > { %3931 = vrot.lane.b32.xlu1 %v5070_v54, %s4452_s7 }
0x20c0   : > { %3946 = vrot.lane.b32.xlu1 %v5075_v0, %s4452_s7 }
0x2121   : > { %v2383_v41 = vpop.permute.xlu0 %2382 }
0x2122   : > { %v2394_v20 = vmul.f32 %v2383_v41, %v2322_v6 }
0x2125   : > { %v2387_v56 = vpop.permute.xlu0 %2386 }
0x2126   : > { %v2385_v18 = vpop.permute.xlu1 %2384  ;;  %v2396_v25 = vmul.f32 %v2387_v56, %v2324_v22 }
0x2127   : > { %v2395_v55 = vmul.f32 %v2385_v18, %v2323_v21 }
0x2129   : > { %v3935_v42 = vpack.i.bf16 %v2395_v55, %v2394_v20 }
0x212a   : > { %v2389_v43 = vpop.permute.xlu1 %2388 }
0x212b   : > { %v2397_v53 = vmul.f32 %v2389_v43, %v2325_v58  ;;  %3936 = vrot.lane.b32.xlu0 %v3935_v42, %s4439_s28 }
0x212d   : > { %v3940_v57 = vpack.i.bf16 %v2397_v53, %v2396_v25 }
0x212e   : > { %v3932_v23 = vpop.permute.xlu1 %3931 }
0x212f   : > { %3941 = vrot.lane.b32.xlu0 %v3940_v57, %s4439_s28  ;;  %v3934_v1 = vunpack.i.h.bf16 %v3932_v23  ;;  %v3933_v44 = vunpack.i.l.bf16 %v3932_v23 }
0x2132   : > { %v3947_v47 = vpop.permute.xlu1 %3946 }
0x2133   : > { %v3949_v59 = vunpack.i.h.bf16 %v3947_v47  ;;  %v3948_v37 = vunpack.i.l.bf16 %v3947_v47 }
0x219d   : > { %v3937_v46 = vpop.permute.xlu0 %3936 }
0x219e   : > { %v3939_v49 = vunpack.i.h.bf16 %v3937_v46  ;;  %v3938_v51 = vunpack.i.l.bf16 %v3937_v46 }
0x21a0   : > { %v2427_v30 = vsel %vm232_vm1, %v3939_v49, %v3934_v1  ;;  %v2426_v5 = vsel %vm232_vm1, %v3938_v51, %v3933_v44 }
0x21a1   : > { %v2431_v36 = vsel %vm237_vm2, %v2427_v30, 1.0  ;;  %v2430_v63 = vsel %vm237_vm2, %v2426_v5, 1.0  ;;  %v3942_v7 = vpop.permute.xlu0 %3941 }
0x21a2   : > { %v3944_v8 = vunpack.i.h.bf16 %v3942_v7  ;;  %v3943_v10 = vunpack.i.l.bf16 %v3942_v7  ;;  %v2434_v14 = vpack.c.bf16 %v2431_v36, %v2430_v63 }
0x21a4   : > { %v2429_v6 = vsel %vm232_vm1, %v3944_v8, %v3949_v59  ;;  %v2428_v17 = vsel %vm232_vm1, %v3943_v10, %v3948_v37  ;;  %3603 = vmatprep.mubr.msk.bf16.mxu0 %vm259_vm3, %v2434_v14 }
0x21a5   : > { %v2433_v13 = vsel %vm237_vm2, %v2429_v6, 1.0  ;;  %v2432_v45 = vsel %vm237_vm2, %v2428_v17, 1.0 }
0x21a6   : > { %v2435_v40 = vpack.c.bf16 %v2433_v13, %v2432_v45 }
0x21a8   : > { %3604 = vmatmul.mubr.msk.bf16.vlgmr.msra.gmra.mxu0 %vm259_vm3, %v2435_v40 }
0x21a9   : > { %3618 = vmatpush3.bf16.msra.mxu0 %v4505_v2 }
0x21aa   : > { %3619 = vmatprep.subr.bf16.mxu0 %v5022_v52 }
0x21ad   : > { %3620 = vmatpush3.bf16.msra.mxu0 %v5022_v52 }
0x21ae   : > { %3621 = vmatprep.subr.bf16.mxu0 %v5029_v28 }
0x21b1   : > { %3622 = vmatpush3.bf16.msra.mxu0 %v5029_v28 }
0x2268   : > { %v3605_v19 = vpop.f32.mrf.mxu0 }
0x2269   : > { %v2493_v26 = vmul.f32 0.5, %v3605_v19 }
0x226a   : > { %v2476_v22 = vpop.f32.mrf.mxu0 }
0x226b   : > { %4301 = vtanh.f32 %v2476_v22  ;;  %v2491_v58 = vmul.f32 0.5, %v2476_v22 }
0x226c   : > { %v3606_v21 = vpop.f32.mrf.mxu0  ;;  %4303 = vtanh.f32 %v3605_v19 }
0x226d   : > { %v2494_v27 = vmul.f32 0.5, %v3606_v21 }
0x226e   : > { %v2479_v50 = vpop.f32.mrf.mxu0 }
0x226f   : > { %4305 = vtanh.f32 %v2479_v50  ;;  %v2492_v61 = vmul.f32 0.5, %v2479_v50 }
0x2270   : > { %4307 = vtanh.f32 %v3606_v21 }
0x2271   : > { %4309 = vtanh.f32 %v2491_v58 }
0x2272   : > { %4311 = vtanh.f32 %v2493_v26 }
0x2273   : > { %4313 = vtanh.f32 %v2492_v61 }
0x2274   : > { %4315 = vtanh.f32 %v2494_v27 }
0x2278   : > { %v4302_v24 = vpop.eup %4301 }
0x2279   : > { %2519 = vrot.lane.b32.xlu0 %v4302_v24, %s4440_s29  ;;  %v4304_v48 = vpop.eup %4303 }
0x227c   : > { %v4306_v33 = vpop.eup %4305 }
0x227d   : > { %2523 = vrot.lane.b32.xlu0 %v4304_v48, %s4440_s29  ;;  %2521 = vrot.lane.b32.xlu1 %v4306_v33, %s4440_s29  ;;  %v4308_v34 = vpop.eup %4307 }
0x227e   : > { %v4310_v29 = vpop.eup %4309 }
0x227f   : > { %v4312_v32 = vpop.eup %4311  ;;  %v2499_v35 = vmul.f32 0.5, %v4310_v29 }
0x2280   : > { %v4314_v60 = vpop.eup %4313  ;;  %v2501_v11 = vmul.f32 0.5, %v4312_v32 }
0x2281   : > { %2525 = vrot.lane.b32.xlu1 %v4308_v34, %s4440_s29  ;;  %v2503_v38 = vadd.f32 0.5, %v2499_v35  ;;  %v2500_v4 = vmul.f32 0.5, %v4314_v60  ;;  %v4316_v9 = vpop.eup %4315 }
0x2282   : > { %v2505_v16 = vadd.f32 0.5, %v2501_v11  ;;  %v2502_v18 = vmul.f32 0.5, %v4316_v9 }
0x2283   : > { %v2504_v41 = vadd.f32 0.5, %v2500_v4  ;;  %v2511_v57 = vmul.f32 %v2503_v38, %v5155_v31 }
0x2284   : > { %v2506_v43 = vadd.f32 0.5, %v2502_v18  ;;  %v2513_v44 = vmul.f32 %v2505_v16, %v5160_v62 }
0x2285   : > { %v2512_v46 = vmul.f32 %v2504_v41, %v5162_v12 }
0x2286   : > { %v2514_v5 = vmul.f32 %v2506_v43, %v5167_v15 }
0x22eb   : > { %v2520_v39 = vpop.permute.xlu0 %2519 }
0x22ec   : > { %v2531_v3 = vmul.f32 %v2520_v39, %v2503_v38 }
0x22ee   : > { %2539 = vrot.lane.b32.xlu0 %v2531_v3, %s4439_s28 }
0x22ef   : > { %v2524_v20 = vpop.permute.xlu0 %2523  ;;  %v2522_v55 = vpop.permute.xlu1 %2521 }
0x22f0   : > { %v2533_v56 = vmul.f32 %v2524_v20, %v2505_v16  ;;  %v2532_v42 = vmul.f32 %v2522_v55, %v2504_v41 }
0x22f2   : > { %2543 = vrot.lane.b32.xlu0 %v2533_v56, %s4439_s28  ;;  %2541 = vrot.lane.b32.xlu1 %v2532_v42, %s4439_s28 }
0x22f3   : > { %v2526_v25 = vpop.permute.xlu1 %2525 }
0x22f4   : > { %v2534_v53 = vmul.f32 %v2526_v25, %v2506_v43 }
0x22f6   : > { %2545 = vrot.lane.b32.xlu1 %v2534_v53, %s4439_s28 }
0x2360   : > { %v2540_v23 = vpop.permute.xlu0 %2539 }
0x2361   : > { %v5202_v1 = vadd.f32 %v2540_v23, %v2511_v57 }
0x2363   : > { %4317 = vtanh.f32 %v5202_v1 }
0x2364   : > { %v2544_v47 = vpop.permute.xlu0 %2543  ;;  %v2542_v49 = vpop.permute.xlu1 %2541 }
0x2365   : > { %v5207_v51 = vadd.f32 %v2544_v47, %v2513_v44  ;;  %v5209_v30 = vadd.f32 %v2542_v49, %v2512_v46 }
0x2367   : > { %4319 = vtanh.f32 %v5207_v51 }
0x2368   : > { %4321 = vtanh.f32 %v5209_v30  ;;  %v2546_v31 = vpop.permute.xlu1 %2545 }
0x2369   : > { %v5214_v59 = vadd.f32 %v2546_v31, %v2514_v5 }
0x236b   : > { %4323 = vtanh.f32 %v5214_v59 }
0x2370   : > { %v4318_v62 = vpop.eup %4317 }
0x2371   : > { %2563 = vrot.lane.b32.xlu0 %v4318_v62, %s4440_s29 }
0x2374   : > { %v4320_v12 = vpop.eup %4319 }
0x2375   : > { %v4322_v37 = vpop.eup %4321  ;;  %2567 = vrot.lane.b32.xlu0 %v4320_v12, %s4440_s29 }
0x2376   : > { %2565 = vrot.lane.b32.xlu1 %v4322_v37, %s4440_s29 }
0x2378   : > { %v4324_v36 = vpop.eup %4323 }
0x237a   : > { %2569 = vrot.lane.b32.xlu1 %v4324_v36, %s4440_s29 }
0x237e   : > { %3951 = vrot.lane.b32.xlu1 %v5070_v54, %s4453_s8 }
0x2382   : > { %3966 = vrot.lane.b32.xlu1 %v5075_v0, %s4453_s8 }
0x23e3   : > { %v2564_v15 = vpop.permute.xlu0 %2563 }
0x23e4   : > { %v2575_v7 = vmul.f32 %v2564_v15, %v2503_v38 }
0x23e7   : > { %v2568_v10 = vpop.permute.xlu0 %2567 }
0x23e8   : > { %v2566_v63 = vpop.permute.xlu1 %2565  ;;  %v2577_v17 = vmul.f32 %v2568_v10, %v2505_v16 }
0x23e9   : > { %v2576_v8 = vmul.f32 %v2566_v63, %v2504_v41 }
0x23eb   : > { %v3955_v14 = vpack.i.bf16 %v2576_v8, %v2575_v7 }
0x23ec   : > { %v2570_v6 = vpop.permute.xlu1 %2569 }
0x23ed   : > { %v2578_v13 = vmul.f32 %v2570_v6, %v2506_v43  ;;  %3956 = vrot.lane.b32.xlu0 %v3955_v14, %s4439_s28 }
0x23ef   : > { %v3960_v45 = vpack.i.bf16 %v2578_v13, %v2577_v17 }
0x23f0   : > { %v3952_v40 = vpop.permute.xlu1 %3951 }
0x23f1   : > { %3961 = vrot.lane.b32.xlu0 %v3960_v45, %s4439_s28  ;;  %v3954_v19 = vunpack.i.h.bf16 %v3952_v40  ;;  %v3953_v22 = vunpack.i.l.bf16 %v3952_v40 }
0x23f4   : > { %v3967_v50 = vpop.permute.xlu1 %3966 }
0x23f5   : > { %v3969_v58 = vunpack.i.h.bf16 %v3967_v50  ;;  %v3968_v26 = vunpack.i.l.bf16 %v3967_v50 }
0x245f   : > { %v3957_v21 = vpop.permute.xlu0 %3956 }
0x2460   : > { %v3959_v24 = vunpack.i.h.bf16 %v3957_v21  ;;  %v3958_v48 = vunpack.i.l.bf16 %v3957_v21 }
0x2462   : > { %v2608_v33 = vsel %vm232_vm1, %v3959_v24, %v3954_v19  ;;  %v2607_v34 = vsel %vm232_vm1, %v3958_v48, %v3953_v22 }
0x2463   : > { %v2612_v61 = vsel %vm237_vm2, %v2608_v33, 1.0  ;;  %v2611_v27 = vsel %vm237_vm2, %v2607_v34, 1.0  ;;  %v3962_v29 = vpop.permute.xlu0 %3961 }
0x2464   : > { %v3964_v32 = vunpack.i.h.bf16 %v3962_v29  ;;  %v3963_v35 = vunpack.i.l.bf16 %v3962_v29  ;;  %v2615_v60 = vpack.c.bf16 %v2612_v61, %v2611_v27 }
0x2466   : > { %v2610_v38 = vsel %vm232_vm1, %v3964_v32, %v3969_v58  ;;  %v2609_v11 = vsel %vm232_vm1, %v3963_v35, %v3968_v26  ;;  %3613 = vmatprep.mubr.msk.bf16.mxu1 %vm259_vm3, %v2615_v60 }
0x2467   : > { %v2614_v4 = vsel %vm237_vm2, %v2610_v38, 1.0  ;;  %v2613_v9 = vsel %vm237_vm2, %v2609_v11, 1.0 }
0x2468   : > { %v2616_v39 = vpack.c.bf16 %v2614_v4, %v2613_v9 }
0x246a   : > { %3614 = vmatmul.mubr.msk.bf16.vlgmr.msra.gmra.mxu1 %vm259_vm3, %v2616_v39 }
0x246b   : > { %3628 = vmatpush3.bf16.msra.mxu1 %v4505_v2 }
0x246c   : > { %3629 = vmatprep.subr.bf16.mxu1 %v5022_v52 }
0x246f   : > { %3630 = vmatpush3.bf16.msra.mxu1 %v5022_v52 }
0x2470   : > { %3631 = vmatprep.subr.bf16.mxu1 %v5029_v28 }
0x2473   : > { %3632 = vmatpush3.bf16.msra.mxu1 %v5029_v28 }
0x252a   : > { %v3615_v3 = vpop.f32.mrf.mxu1 }
0x252b   : > { %v2674_v56 = vmul.f32 0.5, %v3615_v3 }
0x252c   : > { %v2657_v16 = vpop.f32.mrf.mxu1 }
0x252d   : > { %4325 = vtanh.f32 %v2657_v16  ;;  %v2672_v28 = vmul.f32 0.5, %v2657_v16 }
0x252e   : > { %v3616_v41 = vpop.f32.mrf.mxu1  ;;  %4327 = vtanh.f32 %v3615_v3 }
0x252f   : > { %v2675_v43 = vmul.f32 0.5, %v3616_v41 }
0x2530   : > { %v2660_v18 = vpop.f32.mrf.mxu1 }
0x2531   : > { %4329 = vtanh.f32 %v2660_v18  ;;  %v2673_v42 = vmul.f32 0.5, %v2660_v18 }
0x2532   : > { %4331 = vtanh.f32 %v3616_v41 }
0x2533   : > { %4333 = vtanh.f32 %v2672_v28 }
0x2534   : > { %4335 = vtanh.f32 %v2674_v56 }
0x2535   : > { %4337 = vtanh.f32 %v2673_v42 }
0x2536   : > { %4339 = vtanh.f32 %v2675_v43 }
0x253a   : > { %v4326_v20 = vpop.eup %4325 }
0x253b   : > { %2700 = vrot.lane.b32.xlu0 %v4326_v20, %s4440_s29  ;;  %v4328_v2 = vpop.eup %4327 }
0x253e   : > { %v4330_v55 = vpop.eup %4329 }
0x253f   : > { %2704 = vrot.lane.b32.xlu0 %v4328_v2, %s4440_s29  ;;  %2702 = vrot.lane.b32.xlu1 %v4330_v55, %s4440_s29  ;;  %v4332_v52 = vpop.eup %4331 }
0x2540   : > { %v4334_v25 = vpop.eup %4333 }
0x2541   : > { %v4336_v53 = vpop.eup %4335  ;;  %v2680_v57 = vmul.f32 0.5, %v4334_v25 }
0x2542   : > { %v4338_v23 = vpop.eup %4337  ;;  %v2682_v46 = vmul.f32 0.5, %v4336_v53 }
0x2543   : > { %2706 = vrot.lane.b32.xlu1 %v4332_v52, %s4440_s29  ;;  %v2684_v44 = vadd.f32 0.5, %v2680_v57  ;;  %v2681_v47 = vmul.f32 0.5, %v4338_v23  ;;  %v4340_v49 = vpop.eup %4339 }
0x2544   : > { %v2686_v62 = vadd.f32 0.5, %v2682_v46  ;;  %v2683_v37 = vmul.f32 0.5, %v4340_v49 }
0x2545   : > { %v2685_v12 = vadd.f32 0.5, %v2681_v47  ;;  %v2692_v6 = vmul.f32 %v2684_v44, %v5202_v1 }
0x2546   : > { %v2687_v8 = vadd.f32 0.5, %v2683_v37  ;;  %v2694_v45 = vmul.f32 %v2686_v62, %v5207_v51 }
0x2547   : > { %v2693_v40 = vmul.f32 %v2685_v12, %v5209_v30 }
0x2548   : > { %v2695_v24 = vmul.f32 %v2687_v8, %v5214_v59 }
0x25ad   : > { %v2701_v5 = vpop.permute.xlu0 %2700 }
0x25ae   : > { %v2712_v31 = vmul.f32 %v2701_v5, %v2684_v44 }
0x25b0   : > { %2720 = vrot.lane.b32.xlu0 %v2712_v31, %s4439_s28 }
0x25b1   : > { %v2705_v36 = vpop.permute.xlu0 %2704  ;;  %v2703_v15 = vpop.permute.xlu1 %2702 }
0x25b2   : > { %v2714_v63 = vmul.f32 %v2705_v36, %v2686_v62  ;;  %v2713_v7 = vmul.f32 %v2703_v15, %v2685_v12 }
0x25b4   : > { %2724 = vrot.lane.b32.xlu0 %v2714_v63, %s4439_s28  ;;  %2722 = vrot.lane.b32.xlu1 %v2713_v7, %s4439_s28 }
0x25b5   : > { %v2707_v10 = vpop.permute.xlu1 %2706 }
0x25b6   : > { %v2715_v14 = vmul.f32 %v2707_v10, %v2687_v8 }
0x25b8   : > { %2726 = vrot.lane.b32.xlu1 %v2715_v14, %s4439_s28 }
0x2622   : > { %v2721_v17 = vpop.permute.xlu0 %2720 }
0x2623   : > { %v5249_v13 = vadd.f32 %v2721_v17, %v2692_v6 }
0x2625   : > { %4341 = vtanh.f32 %v5249_v13 }
0x2626   : > { %v2725_v19 = vpop.permute.xlu0 %2724  ;;  %v2723_v22 = vpop.permute.xlu1 %2722 }
0x2627   : > { %v5254_v21 = vadd.f32 %v2725_v19, %v2694_v45  ;;  %v5256_v50 = vadd.f32 %v2723_v22, %v2693_v40 }
0x2629   : > { %4343 = vtanh.f32 %v5254_v21 }
0x262a   : > { %4345 = vtanh.f32 %v5256_v50  ;;  %v2727_v1 = vpop.permute.xlu1 %2726 }
0x262b   : > { %v5261_v48 = vadd.f32 %v2727_v1, %v2695_v24 }
0x262d   : > { %4347 = vtanh.f32 %v5261_v48 }
0x2632   : > { %v4342_v51 = vpop.eup %4341 }
0x2633   : > { %2744 = vrot.lane.b32.xlu0 %v4342_v51, %s4440_s29 }
0x2636   : > { %v4344_v30 = vpop.eup %4343 }
0x2637   : > { %v4346_v33 = vpop.eup %4345  ;;  %2748 = vrot.lane.b32.xlu0 %v4344_v30, %s4440_s29 }
0x2638   : > { %2746 = vrot.lane.b32.xlu1 %v4346_v33, %s4440_s29 }
0x263a   : > { %v4348_v34 = vpop.eup %4347 }
0x263c   : > { %2750 = vrot.lane.b32.xlu1 %v4348_v34, %s4440_s29 }
0x2640   : > { %3971 = vrot.lane.b32.xlu1 %v5070_v54, %s4454_s9 }
0x2644   : > { %3986 = vrot.lane.b32.xlu1 %v5075_v0, %s4454_s9 }
0x26a5   : > { %v2745_v59 = vpop.permute.xlu0 %2744 }
0x26a6   : > { %v2756_v26 = vmul.f32 %v2745_v59, %v2684_v44 }
0x26a9   : > { %v2749_v27 = vpop.permute.xlu0 %2748 }
0x26aa   : > { %v2747_v58 = vpop.permute.xlu1 %2746  ;;  %v2758_v35 = vmul.f32 %v2749_v27, %v2686_v62 }
0x26ab   : > { %v2757_v61 = vmul.f32 %v2747_v58, %v2685_v12 }
0x26ad   : > { %v3975_v29 = vpack.i.bf16 %v2757_v61, %v2756_v26 }
0x26ae   : > { %v2751_v32 = vpop.permute.xlu1 %2750 }
0x26af   : > { %v2759_v60 = vmul.f32 %v2751_v32, %v2687_v8  ;;  %3976 = vrot.lane.b32.xlu0 %v3975_v29, %s4439_s28 }
0x26b1   : > { %v3980_v38 = vpack.i.bf16 %v2759_v60, %v2758_v35 }
0x26b2   : > { %v3972_v11 = vpop.permute.xlu1 %3971 }
0x26b3   : > { %3981 = vrot.lane.b32.xlu0 %v3980_v38, %s4439_s28  ;;  %v3974_v4 = vunpack.i.h.bf16 %v3972_v11  ;;  %v3973_v9 = vunpack.i.l.bf16 %v3972_v11 }
0x26b6   : > { %v3987_v39 = vpop.permute.xlu1 %3986 }
0x26b7   : > { %v3989_v18 = vunpack.i.h.bf16 %v3987_v39  ;;  %v3988_v20 = vunpack.i.l.bf16 %v3987_v39 }
0x2721   : > { %v3977_v54 = vpop.permute.xlu0 %3976 }
0x2722   : > { %v3979_v0 = vunpack.i.h.bf16 %v3977_v54  ;;  %v3978_v3 = vunpack.i.l.bf16 %v3977_v54 }
0x2724   : > { %v2789_v16 = vsel %vm232_vm1, %v3979_v0, %v3974_v4  ;;  %v2788_v41 = vsel %vm232_vm1, %v3978_v3, %v3973_v9 }
0x2725   : > { %v2793_v2 = vsel %vm237_vm2, %v2789_v16, 1.0  ;;  %v2792_v55 = vsel %vm237_vm2, %v2788_v41, 1.0  ;;  %v3982_v52 = vpop.permute.xlu0 %3981  ;;  %v4428_v16 = vld [vmem:[%s4524_s27 + $0x8] sm:$0xff] }
0x2726   : > { %v3984_v28 = vunpack.i.h.bf16 %v3982_v52  ;;  %v3983_v56 = vunpack.i.l.bf16 %v3982_v52  ;;  %v2796_v42 = vpack.c.bf16 %v2793_v2, %v2792_v55 }
0x2728   : > { %v2791_v43 = vsel %vm232_vm1, %v3984_v28, %v3989_v18  ;;  %v2790_v25 = vsel %vm232_vm1, %v3983_v56, %v3988_v20  ;;  %3623 = vmatprep.mubr.msk.bf16.mxu0 %vm259_vm3, %v2796_v42  ;;  %v4429_v18 = vld [vmem:[%s4524_s27 + $0x10] sm:$0xff]  ;;  %v4430_v20 = vld [vmem:[%s4524_s27 + $0x18] sm:$0xff] }
0x2729   : > { %v2795_v53 = vsel %vm237_vm2, %v2791_v43, 1.0  ;;  %v2794_v57 = vsel %vm237_vm2, %v2790_v25, 1.0  ;;  %v4005_v2 = vpack.i.bf16 %v4430_v20, %v4429_v18 }
0x272a   : > { %v2797_v23 = vpack.c.bf16 %v2795_v53, %v2794_v57 }
0x272c   : > { %3624 = vmatmul.mubr.msk.bf16.vlgmr.msra.gmra.mxu0 %vm259_vm3, %v2797_v23 }
0x27ec   : > { %v3625_v44 = vpop.f32.mrf.mxu0 }
0x27ed   : > { %v2855_v36 = vmul.f32 0.5, %v3625_v44 }
0x27ee   : > { %v2838_v46 = vpop.f32.mrf.mxu0 }
0x27ef   : > { %4349 = vtanh.f32 %v2838_v46  ;;  %v2853_v37 = vmul.f32 0.5, %v2838_v46 }
0x27f0   : > { %v3626_v47 = vpop.f32.mrf.mxu0  ;;  %4351 = vtanh.f32 %v3625_v44 }
0x27f1   : > { %v2856_v63 = vmul.f32 0.5, %v3626_v47 }
0x27f2   : > { %v2841_v49 = vpop.f32.mrf.mxu0 }
0x27f3   : > { %4353 = vtanh.f32 %v2841_v49  ;;  %v2854_v15 = vmul.f32 0.5, %v2841_v49 }
0x27f4   : > { %4355 = vtanh.f32 %v3626_v47 }
0x27f5   : > { %4357 = vtanh.f32 %v2853_v37 }
0x27f6   : > { %4359 = vtanh.f32 %v2855_v36 }
0x27f7   : > { %4361 = vtanh.f32 %v2854_v15 }
0x27f8   : > { %4363 = vtanh.f32 %v2856_v63 }
0x27fc   : > { %v4350_v5 = vpop.eup %4349 }
0x27fd   : > { %2881 = vrot.lane.b32.xlu0 %v4350_v5, %s4440_s29  ;;  %v4352_v31 = vpop.eup %4351 }
0x2800   : > { %v4354_v62 = vpop.eup %4353 }
0x2801   : > { %2885 = vrot.lane.b32.xlu0 %v4352_v31, %s4440_s29  ;;  %2883 = vrot.lane.b32.xlu1 %v4354_v62, %s4440_s29  ;;  %v4356_v12 = vpop.eup %4355 }
0x2802   : > { %v4358_v7 = vpop.eup %4357 }
0x2803   : > { %v4360_v8 = vpop.eup %4359  ;;  %v2861_v10 = vmul.f32 0.5, %v4358_v7 }
0x2804   : > { %v4362_v14 = vpop.eup %4361  ;;  %v2863_v17 = vmul.f32 0.5, %v4360_v8 }
0x2805   : > { %2887 = vrot.lane.b32.xlu1 %v4356_v12, %s4440_s29  ;;  %v2865_v6 = vadd.f32 0.5, %v2861_v10  ;;  %v2862_v45 = vmul.f32 0.5, %v4362_v14  ;;  %v4364_v40 = vpop.eup %4363 }
0x2806   : > { %v2867_v24 = vadd.f32 0.5, %v2863_v17  ;;  %v2864_v51 = vmul.f32 0.5, %v4364_v40 }
0x2807   : > { %v2866_v1 = vadd.f32 0.5, %v2862_v45  ;;  %v2873_v27 = vmul.f32 %v2865_v6, %v5249_v13 }
0x2808   : > { %v2868_v58 = vadd.f32 0.5, %v2864_v51  ;;  %v2875_v35 = vmul.f32 %v2867_v24, %v5254_v21 }
0x2809   : > { %v2874_v60 = vmul.f32 %v2866_v1, %v5256_v50 }
0x280a   : > { %v2876_v13 = vmul.f32 %v2868_v58, %v5261_v48  ;;  %v4427_v48 = vld [vmem:[%s4524_s27] sm:$0xff] }
0x280b   : > { %v3990_v41 = vpack.i.bf16 %v4428_v16, %v4427_v48 }
0x286f   : > { %v2882_v19 = vpop.permute.xlu0 %2881 }
0x2870   : > { %v2893_v22 = vmul.f32 %v2882_v19, %v2865_v6 }
0x2872   : > { %2901 = vrot.lane.b32.xlu0 %v2893_v22, %s4439_s28 }
0x2873   : > { %v2886_v30 = vpop.permute.xlu0 %2885  ;;  %v2884_v33 = vpop.permute.xlu1 %2883 }
0x2874   : > { %v2895_v34 = vmul.f32 %v2886_v30, %v2867_v24  ;;  %v2894_v59 = vmul.f32 %v2884_v33, %v2866_v1 }
0x2876   : > { %2905 = vrot.lane.b32.xlu0 %v2895_v34, %s4439_s28  ;;  %2903 = vrot.lane.b32.xlu1 %v2894_v59, %s4439_s28 }
0x2877   : > { %v2888_v26 = vpop.permute.xlu1 %2887 }
0x2878   : > { %v2896_v61 = vmul.f32 %v2888_v26, %v2868_v58 }
0x287a   : > { %2907 = vrot.lane.b32.xlu1 %v2896_v61, %s4439_s28 }
0x28e4   : > { %v2902_v29 = vpop.permute.xlu0 %2901 }
0x28e5   : > { %v5291_v32 = vadd.f32 %v2902_v29, %v2873_v27 }
0x28e7   : > { %4365 = vtanh.f32 %v5291_v32 }
0x28e8   : > { %v2906_v38 = vpop.permute.xlu0 %2905  ;;  %v2904_v11 = vpop.permute.xlu1 %2903 }
0x28e9   : > { %v5296_v4 = vadd.f32 %v2906_v38, %v2875_v35  ;;  %v5298_v9 = vadd.f32 %v2904_v11, %v2874_v60 }
0x28eb   : > { %4367 = vtanh.f32 %v5296_v4 }
0x28ec   : > { %4369 = vtanh.f32 %v5298_v9  ;;  %v2908_v54 = vpop.permute.xlu1 %2907 }
0x28ed   : > { %v5303_v39 = vadd.f32 %v2908_v54, %v2876_v13 }
0x28ef   : > { %4371 = vtanh.f32 %v5303_v39 }
0x28f4   : > { %v4366_v21 = vpop.eup %4365 }
0x28f5   : > { %2925 = vrot.lane.b32.xlu0 %v4366_v21, %s4440_s29 }
0x28f8   : > { %v4368_v50 = vpop.eup %4367 }
0x28f9   : > { %v4370_v0 = vpop.eup %4369  ;;  %2929 = vrot.lane.b32.xlu0 %v4368_v50, %s4440_s29 }
0x28fa   : > { %2927 = vrot.lane.b32.xlu1 %v4370_v0, %s4440_s29 }
0x28fc   : > { %v4372_v3 = vpop.eup %4371 }
0x28fe   : > { %2931 = vrot.lane.b32.xlu1 %v4372_v3, %s4440_s29 }
0x2902   : > { %3991 = vrot.lane.b32.xlu1 %v3990_v41, %s4455_s10 }
0x2906   : > { %4006 = vrot.lane.b32.xlu1 %v4005_v2, %s4455_s10 }
0x2967   : > { %v2926_v55 = vpop.permute.xlu0 %2925 }
0x2968   : > { %v2937_v28 = vmul.f32 %v2926_v55, %v2865_v6 }
0x296b   : > { %v2930_v42 = vpop.permute.xlu0 %2929 }
0x296c   : > { %v2928_v52 = vpop.permute.xlu1 %2927  ;;  %v2939_v53 = vmul.f32 %v2930_v42, %v2867_v24 }
0x296d   : > { %v2938_v56 = vmul.f32 %v2928_v52, %v2866_v1 }
0x296f   : > { %v3995_v43 = vpack.i.bf16 %v2938_v56, %v2937_v28 }
0x2970   : > { %v2932_v25 = vpop.permute.xlu1 %2931 }
0x2971   : > { %v2940_v57 = vmul.f32 %v2932_v25, %v2868_v58  ;;  %3996 = vrot.lane.b32.xlu0 %v3995_v43, %s4439_s28 }
0x2973   : > { %v4000_v23 = vpack.i.bf16 %v2940_v57, %v2939_v53 }
0x2974   : > { %v3992_v44 = vpop.permute.xlu1 %3991 }
0x2975   : > { %4001 = vrot.lane.b32.xlu0 %v4000_v23, %s4439_s28  ;;  %v3994_v46 = vunpack.i.h.bf16 %v3992_v44  ;;  %v3993_v47 = vunpack.i.l.bf16 %v3992_v44 }
0x2978   : > { %v4007_v5 = vpop.permute.xlu1 %4006 }
0x2979   : > { %v4009_v36 = vunpack.i.h.bf16 %v4007_v5  ;;  %v4008_v15 = vunpack.i.l.bf16 %v4007_v5 }
0x29e3   : > { %v3997_v49 = vpop.permute.xlu0 %3996 }
0x29e4   : > { %v3999_v31 = vunpack.i.h.bf16 %v3997_v49  ;;  %v3998_v62 = vunpack.i.l.bf16 %v3997_v49 }
0x29e6   : > { %v2970_v12 = vsel %vm232_vm1, %v3999_v31, %v3994_v46  ;;  %v2969_v37 = vsel %vm232_vm1, %v3998_v62, %v3993_v47 }
0x29e7   : > { %v2974_v63 = vsel %vm237_vm2, %v2970_v12, 1.0  ;;  %v2973_v7 = vsel %vm237_vm2, %v2969_v37, 1.0  ;;  %v4002_v8 = vpop.permute.xlu0 %4001  ;;  %v212_v37 = vld [vmem:[%s5392_s2 + $0x8] sm:$0xff] }
0x29e8   : > { %v4004_v10 = vunpack.i.h.bf16 %v4002_v8  ;;  %v4003_v14 = vunpack.i.l.bf16 %v4002_v8  ;;  %v2977_v6 = vpack.c.bf16 %v2974_v63, %v2973_v7 }
0x29ea   : > { %v2972_v17 = vsel %vm232_vm1, %v4004_v10, %v4009_v36  ;;  %v2971_v45 = vsel %vm232_vm1, %v4003_v14, %v4008_v15  ;;  %3633 = vmatprep.mubr.msk.bf16.mxu1 %vm259_vm3, %v2977_v6  ;;  %v211_v36 = vld [vmem:[%s5392_s2] sm:$0xff] }
0x29eb   : > { %v2976_v40 = vsel %vm237_vm2, %v2972_v17, 1.0  ;;  %v2975_v19 = vsel %vm237_vm2, %v2971_v45, 1.0 }
0x29ec   : > { %v2978_v22 = vpack.c.bf16 %v2976_v40, %v2975_v19 }
0x29ee   : > { %3634 = vmatmul.mubr.msk.bf16.vlgmr.msra.gmra.mxu1 %vm259_vm3, %v2978_v22 }
0x2aae   : > { %v3635_v24 = vpop.f32.mrf.mxu1 }
0x2aaf   : > { %v3036_v61 = vmul.f32 0.5, %v3635_v24 }
0x2ab0   : > { %v3019_v1 = vpop.f32.mrf.mxu1 }
0x2ab1   : > { %4373 = vtanh.f32 %v3019_v1  ;;  %v3034_v26 = vmul.f32 0.5, %v3019_v1 }
0x2ab2   : > { %v3636_v51 = vpop.f32.mrf.mxu1  ;;  %4375 = vtanh.f32 %v3635_v24  ;;  %v3382_v24 = vld [vmem:[%s5393_s3] ss:$0 sm:$0xff] }
0x2ab3   : > { %v3037_v29 = vmul.f32 0.5, %v3636_v51 }
0x2ab4   : > { %v3022_v30 = vpop.f32.mrf.mxu1 }
0x2ab5   : > { %4377 = vtanh.f32 %v3022_v30  ;;  %v3035_v27 = vmul.f32 0.5, %v3022_v30 }
0x2ab6   : > { %4379 = vtanh.f32 %v3636_v51 }
0x2ab7   : > { %4381 = vtanh.f32 %v3034_v26 }
0x2ab8   : > { %4383 = vtanh.f32 %v3036_v61 }
0x2ab9   : > { %4385 = vtanh.f32 %v3035_v27 }
0x2aba   : > { %4387 = vtanh.f32 %v3037_v29 }
0x2abe   : > { %v4374_v33 = vpop.eup %4373 }
0x2abf   : > { %3062 = vrot.lane.b32.xlu0 %v4374_v33, %s4440_s29  ;;  %v4376_v34 = vpop.eup %4375 }
0x2ac2   : > { %v4378_v59 = vpop.eup %4377 }
0x2ac3   : > { %3066 = vrot.lane.b32.xlu0 %v4376_v34, %s4440_s29  ;;  %3064 = vrot.lane.b32.xlu1 %v4378_v59, %s4440_s29  ;;  %v4380_v58 = vpop.eup %4379 }
0x2ac4   : > { %v4382_v35 = vpop.eup %4381 }
0x2ac5   : > { %v4384_v60 = vpop.eup %4383  ;;  %v3042_v38 = vmul.f32 0.5, %v4382_v35 }
0x2ac6   : > { %v4386_v11 = vpop.eup %4385  ;;  %v3044_v54 = vmul.f32 0.5, %v4384_v60 }
0x2ac7   : > { %3068 = vrot.lane.b32.xlu1 %v4380_v58, %s4440_s29  ;;  %v5330_v13 = vadd.f32 0.5, %v3042_v38  ;;  %v3043_v21 = vmul.f32 0.5, %v4386_v11  ;;  %v4388_v50 = vpop.eup %4387 }
0x2ac8   : > { %v3048_v48 = vadd.f32 0.5, %v3044_v54  ;;  %v3045_v41 = vmul.f32 0.5, %v4388_v50 }
0x2ac9   : > { %v3047_v16 = vadd.f32 0.5, %v3043_v21  ;;  %v3054_v42 = vmul.f32 %v5330_v13, %v5291_v32  ;;  %v214_v32 = vld [vmem:[%s5392_s2 + $0x18] sm:$0xff] }
0x2aca   : > { %v3049_v52 = vadd.f32 0.5, %v3045_v41  ;;  %v3056_v53 = vmul.f32 %v3048_v48, %v5296_v4  ;;  %v213_v4 = vld [vmem:[%s5392_s2 + $0x10] sm:$0xff]  ;;  %3637 = vmatprep.subr.mxu0 %v214_v32  ;;  %3651 = vmatprep.subr.mxu1 %v214_v32 }
0x2acb   : > { %v3055_v57 = vmul.f32 %v3047_v16, %v5298_v9  ;;  %3638 = vmatpush3.msra.mxu0 %v214_v32  ;;  %3655 = vmatpush3.msra.mxu1 %v214_v32 }
0x2acc   : > { %v3057_v49 = vmul.f32 %v3049_v52, %v5303_v39  ;;  %3639 = vmatprep.subr.mxu0 %v213_v4  ;;  %3652 = vmatprep.subr.mxu1 %v213_v4 }
0x2acd   : > { %3640 = vmatpush3.msra.mxu0 %v213_v4  ;;  %3656 = vmatpush3.msra.mxu1 %v213_v4 }
0x2ace   : > { %3641 = vmatprep.subr.mxu0 %v212_v37  ;;  %3653 = vmatprep.subr.mxu1 %v212_v37 }
0x2acf   : > { %3642 = vmatpush3.msra.mxu0 %v212_v37  ;;  %3657 = vmatpush3.msra.mxu1 %v212_v37 }
0x2ad0   : > { %3643 = vmatprep.subr.mxu0 %v211_v36  ;;  %3654 = vmatprep.subr.mxu1 %v211_v36 }
0x2ad1   : > { %3644 = vmatpush3.msra.mxu0 %v211_v36  ;;  %3658 = vmatpush3.msra.mxu1 %v211_v36 }
0x2b31   : > { %v3063_v0 = vpop.permute.xlu0 %3062 }
0x2b32   : > { %v3074_v3 = vmul.f32 %v3063_v0, %v5330_v13 }
0x2b34   : > { %3082 = vrot.lane.b32.xlu0 %v3074_v3, %s4439_s28 }
0x2b35   : > { %v3067_v18 = vpop.permute.xlu0 %3066  ;;  %v3065_v20 = vpop.permute.xlu1 %3064 }
0x2b36   : > { %v3076_v2 = vmul.f32 %v3067_v18, %v3048_v48  ;;  %v3075_v55 = vmul.f32 %v3065_v20, %v3047_v16 }
0x2b38   : > { %3086 = vrot.lane.b32.xlu0 %v3076_v2, %s4439_s28  ;;  %3084 = vrot.lane.b32.xlu1 %v3075_v55, %s4439_s28 }
0x2b39   : > { %v3069_v28 = vpop.permute.xlu1 %3068 }
0x2b3a   : > { %v3077_v56 = vmul.f32 %v3069_v28, %v3049_v52 }
0x2b3c   : > { %3088 = vrot.lane.b32.xlu1 %v3077_v56, %s4439_s28 }
0x2ba6   : > { %v3083_v43 = vpop.permute.xlu0 %3082 }
0x2ba7   : > { %v3094_v25 = vadd.f32 %v3083_v43, %v3054_v42 }
0x2ba9   : > { %4389 = vtanh.f32 %v3094_v25 }
0x2baa   : > { %v3087_v23 = vpop.permute.xlu0 %3086  ;;  %v3085_v44 = vpop.permute.xlu1 %3084 }
0x2bab   : > { %v3096_v46 = vadd.f32 %v3087_v23, %v3056_v53  ;;  %v3095_v47 = vadd.f32 %v3085_v44, %v3055_v57 }
0x2bad   : > { %4391 = vtanh.f32 %v3096_v46 }
0x2bae   : > { %4393 = vtanh.f32 %v3095_v47  ;;  %v3089_v5 = vpop.permute.xlu1 %3088 }
0x2baf   : > { %v3097_v31 = vadd.f32 %v3089_v5, %v3057_v49 }
0x2bb1   : > { %4395 = vtanh.f32 %v3097_v31 }
0x2bb6   : > { %v4390_v9 = vpop.eup %4389 }
0x2bb7   : > { %3106 = vrot.lane.b32.xlu0 %v4390_v9, %s4440_s29 }
0x2bba   : > { %v4392_v39 = vpop.eup %4391 }
0x2bbb   : > { %v4394_v62 = vpop.eup %4393  ;;  %3110 = vrot.lane.b32.xlu0 %v4392_v39, %s4440_s29 }
0x2bbc   : > { %3108 = vrot.lane.b32.xlu1 %v4394_v62, %s4440_s29 }
0x2bbe   : > { %v4396_v12 = vpop.eup %4395 }
0x2bc0   : > { %3112 = vrot.lane.b32.xlu1 %v4396_v12, %s4440_s29 }
0x2c29   : > { %v3107_v15 = vpop.permute.xlu0 %3106 }
0x2c2a   : > { %v3118_v63 = vmul.f32 %v3107_v15, %v5330_v13 }
0x2c2c   : > { %3132 = vrot.lane.b32.xlu0 %v3118_v63, %s4439_s28 }
0x2c2d   : > { %v3111_v7 = vpop.permute.xlu0 %3110 }
0x2c2e   : > { %v3120_v8 = vmul.f32 %v3111_v7, %v3048_v48  ;;  %v3109_v10 = vpop.permute.xlu1 %3108 }
0x2c2f   : > { %v3119_v14 = vmul.f32 %v3109_v10, %v3047_v16 }
0x2c30   : > { %3136 = vrot.lane.b32.xlu0 %v3120_v8, %s4439_s28 }
0x2c31   : > { %3134 = vrot.lane.b32.xlu1 %v3119_v14, %s4439_s28 }
0x2c32   : > { %v3113_v6 = vpop.permute.xlu1 %3112 }
0x2c33   : > { %v3121_v17 = vmul.f32 %v3113_v6, %v3049_v52 }
0x2c35   : > { %3138 = vrot.lane.b32.xlu1 %v3121_v17, %s4439_s28 }
0x2c9e   : > { %v3133_v45 = vpop.permute.xlu0 %3132 }
0x2c9f   : > { %3645 = vmatprep.mubr.msk.f32.mxu0 %vm232_vm1, %v3133_v45 }
0x2ca2   : > { %v3137_v40 = vpop.permute.xlu0 %3136 }
0x2ca3   : > { %v3135_v19 = vpop.permute.xlu1 %3134  ;;  %3648 = vmatprep.mubr.msk.f32.mxu1 %vm232_vm1, %v3137_v40 }
0x2ca4   : > { %3646 = vmatmul.mubr.msk.f32.vlgmr.msra.gmra.mxu0 %vm232_vm1, %v3135_v19 }
0x2ca7   : > { %v3139_v22 = vpop.permute.xlu1 %3138 }
0x2ca8   : > { %3649 = vmatmul.mubr.msk.f32.vlgmr.msra.gmra.mxu1 %vm232_vm1, %v3139_v22 }
0x2d64   : > { %v3647_v1 = vpop.f32.mrf.mxu0 }
0x2d65   : > { %v3220_v51 = vadd.f32 %v3647_v1, %v3382_v24 }
0x2d66   : > { %v3214_v34 = vpop.f32.mrf.mxu0 }
0x2d67   : > { %v3237_v30 = vsel %vm3233_vm4, %v3220_v51, -inf  ;;  %v3215_v26 = vadd.f32 %v3382_v24, %v3214_v34 }
0x2d68   : > { %3238 = vmax.xlane.f32.xlu1 %v3237_v30  ;;  %v3650_v33 = vpop.f32.mrf.mxu1 }
0x2d69   : > { %v3230_v27 = vadd.f32 %v3650_v33, %v3382_v24  ;;  %v3234_v29 = vsel %vm3233_vm4, %v3215_v26, -inf }
0x2d6a   : > { %v3224_v59 = vpop.f32.mrf.mxu1 }
0x2d6b   : > { %v3225_v58 = vadd.f32 %v3382_v24, %v3224_v59  ;;  %v3243_v35 = vsel %vm3233_vm4, %v3230_v27, -inf }
0x2d6d   : > { %v3240_v61 = vsel %vm3233_vm4, %v3225_v58, -inf }
0x2d6e   : > { %3241 = vmax.xlane.f32.xlu0 %v3240_v61 }
0x2d72   : > { %3235 = vmax.xlane.f32.xlu0 %v3234_v29 }
0x2d76   : > { %3244 = vmax.xlane.f32.xlu0 %v3243_v35 }
0x2df1   : > { %v3239_v60 = vpop.xlane.xlu1 %3238 }
0x2df2   : > { %v3247_v38 = vsub.f32 %v3220_v51, %v3239_v60 }
0x2df4   : > { %v3252_v11 = vmul.f32 1.442695, %v3247_v38 }
0x2df6   : > { %4397 = vpow2.f32 %v3252_v11 }
0x2df7   : > { %v3242_v13 = vpop.xlane.xlu0 %3241 }
0x2df8   : > { %v3248_v54 = vsub.f32 %v3225_v58, %v3242_v13 }
0x2dfa   : > { %v3254_v0 = vmul.f32 1.442695, %v3248_v54 }
0x2dfb   : > { %v3236_v21 = vpop.xlane.xlu0 %3235 }
0x2dfc   : > { %v3246_v50 = vsub.f32 %v3215_v26, %v3236_v21 }
0x2dfe   : > { %v3250_v3 = vmul.f32 1.442695, %v3246_v50 }
0x2dff   : > { %v3245_v48 = vpop.xlane.xlu0 %3244 }
0x2e00   : > { %4399 = vpow2.f32 %v3250_v3  ;;  %v3249_v16 = vsub.f32 %v3230_v27, %v3245_v48 }
0x2e01   : > { %4401 = vpow2.f32 %v3254_v0 }
0x2e02   : > { %v3256_v41 = vmul.f32 1.442695, %v3249_v16 }
0x2e03   : > { %v4398_v18 = vpop.eup %4397 }
0x2e04   : > { %4403 = vpow2.f32 %v3256_v41  ;;  %v3261_v20 = vsel %vm3233_vm4, %v4398_v18, 0.0 }
0x2e05   : > { %3262 = vadd.xlane.f32.xlu0 %v3261_v20 }
0x2e0d   : > { %v4400_v2 = vpop.eup %4399 }
0x2e0e   : > { %v3258_v55 = vsel %vm3233_vm4, %v4400_v2, 0.0  ;;  %v4402_v52 = vpop.eup %4401 }
0x2e0f   : > { %3259 = vadd.xlane.f32.xlu1 %v3258_v55  ;;  %v3264_v56 = vsel %vm3233_vm4, %v4402_v52, 0.0 }
0x2e11   : > { %v4404_v28 = vpop.eup %4403 }
0x2e12   : > { %v3267_v42 = vsel %vm3233_vm4, %v4404_v28, 0.0 }
0x2e13   : > { %3265 = vadd.xlane.f32.xlu1 %v3264_v56  ;;  %3268 = vadd.xlane.f32.xlu0 %v3267_v42 }
0x2e8e   : > { %v3263_v43 = vpop.xlane.xlu0 %3262 }
0x2e8f   : > { %4405 = vrcp.f32 %v3263_v43 }
0x2e98   : > { %v3260_v25 = vpop.xlane.xlu1 %3259 }
0x2e99   : > { %4407 = vrcp.f32 %v3260_v25 }
0x2e9c   : > { %v3269_v53 = vpop.xlane.xlu0 %3268  ;;  %v3266_v57 = vpop.xlane.xlu1 %3265 }
0x2e9d   : > { %4409 = vrcp.f32 %v3269_v53  ;;  %v4406_v23 = vpop.eup %4405 }
0x2e9e   : > { %4411 = vrcp.f32 %v3266_v57  ;;  %v3273_v47 = vmul.f32 %v4406_v23, %v4398_v18 }
0x2ea0   : > { %3279 = vst.msk [vmem:[%s199_s23 + $0x8] sm:$0xff] %vm3233_vm4, %v3273_v47 }
0x2ea6   : > { %v4408_v44 = vpop.eup %4407 }
0x2ea7   : > { %v3271_v46 = vmul.f32 %v4408_v44, %v4400_v2 }
0x2ea9   : > { %3278 = vst.msk [vmem:[%s199_s23] sm:$0xff] %vm3233_vm4, %v3271_v46 }
0x2eaa   : > { %v4410_v49 = vpop.eup %4409 }
0x2eab   : > { %v4412_v5 = vpop.eup %4411  ;;  %v3277_v31 = vmul.f32 %v4410_v49, %v4404_v28 }
0x2eac   : > { %v3275_v32 = vmul.f32 %v4412_v5, %v4402_v52 }
0x2ead   : > { %3281 = vst.msk [vmem:[%s199_s23 + $0x18] sm:$0xff] %vm3233_vm4, %v3277_v31 }
0x2eae   : > { %3280 = vst.msk [vmem:[%s199_s23 + $0x10] sm:$0xff] %vm3233_vm4, %v3275_v32 }
0x2eaf PF: > { %s14_s15 = sadd.s32 1, %s4437_s15  }
0x2eb0   : > { %p11_p4 = scmp.ge.s32.totalorder %s14_s15, 4  }
0x2eb2   :  { %13 = sbr.rel (!%p11_p4) target bundleno = 1 (0x1), region = 66 }

</bundles_post_ra>
